<compile_context>
chip_gen: v7x
topology: tpu7x:2x2x1
jax: 0.10.0
libtpu: 0.0.40
codegen_flags: <defaults>
</compile_context>

<pallas_src>
import functools
import math

import jax
import jax.numpy as jnp
from jax import lax
from jax.experimental import pallas as pl
from jax.experimental.pallas import tpu as pltpu


# ----------------------------- kernel bodies ----------------------------------

def _pad1_vmem(x):
    """Zero-pad a (H, W, C) value by 1 on each spatial side, entirely in VMEM/vregs."""
    H, W, C = x.shape
    zc = jnp.zeros((H, 1, C), x.dtype)
    x = jnp.concatenate([zc, x, zc], axis=1)            # (H, W+2, C)
    zr = jnp.zeros((1, W + 2, C), x.dtype)
    return jnp.concatenate([zr, x, zr], axis=0)         # (H+2, W+2, C)


def _conv3x3_kernel(*refs, n_in, H, W, act):
    """Fused 3x3 'same' conv (+ folded-BN bias + LeakyReLU) over one batch image.

    refs = (x_0..x_{n_in-1}, w_0..w_{n_in-1}, bias, out)
      x_i  : (1, H, W, C_i) bf16
      w_i  : (9, C_i, O)    bf16   (tap index 3*di + dj, BN scale pre-folded)
      bias : (1, O)         f32    (BN beta - mean*scale)
      out  : (1, H, W, O)   bf16
    """
    x_refs = refs[:n_in]
    w_refs = refs[n_in:2 * n_in]
    b_ref = refs[2 * n_in]
    o_ref = refs[2 * n_in + 1]
    O = o_ref.shape[-1]

    acc = jnp.zeros((H * W, O), jnp.float32) + b_ref[...]
    for x_ref, w_ref in zip(x_refs, w_refs):
        C = x_ref.shape[-1]
        xp = _pad1_vmem(x_ref[0])                        # (H+2, W+2, C)
        for dj in range(3):
            xcol = xp[:, dj:dj + W, :]                   # (H+2, W, C)
            for di in range(3):
                lhs = xcol[di:di + H, :, :].reshape(H * W, C)
                acc = acc + jnp.dot(lhs, w_ref[3 * di + dj],
                                    preferred_element_type=jnp.float32)
    if act == "leaky":
        acc = jnp.where(acc > 0, acc, 0.2 * acc)
    o_ref[0] = acc.reshape(H, W, O).astype(o_ref.dtype)


def _upsample_convtrans_kernel(x_ref, w_ref, b_ref, o_ref, *, H, W):
    """Fused ConvTranspose2d(k=4, s=2, p=1) + bias via sub-pixel decomposition.

      x_ref : (1, H, W, I)       bf16
      w_ref : (16, I, O)         bf16; tap index a*8 + b*4 + di*2 + dj holds the
                                  torch weight w[:, :, 3-a-2*di, 3-b-2*dj]
      b_ref : (1, O)             f32
      o_ref : (1, H, 2, W, 2*O)  bf16; element [0, i, a, j, b*O + o] is the output
              pixel (2i+a, 2j+b, o), so the final (n, 2H, 2W, O) tensor is a free
              row-major reshape of this buffer (interleave fused, no extra HBM pass).
    """
    I = x_ref.shape[-1]
    O = o_ref.shape[-1] // 2
    xp = _pad1_vmem(x_ref[0])                            # (H+2, W+2, I)
    for a in (0, 1):
        phases = []
        for b in (0, 1):
            acc = jnp.zeros((H * W, O), jnp.float32) + b_ref[...]
            for di in (0, 1):
                for dj in (0, 1):
                    lhs = xp[a + di:a + di + H, b + dj:b + dj + W, :].reshape(H * W, I)
                    acc = acc + jnp.dot(lhs, w_ref[a * 8 + b * 4 + di * 2 + dj],
                                        preferred_element_type=jnp.float32)
            phases.append(acc.reshape(H, W, O).astype(o_ref.dtype))
        o_ref[0, :, a] = jnp.concatenate(phases, axis=-1)   # (H, W, 2*O)


# ----------------------------- pallas_call wrappers ----------------------------

def conv3x3_bn_lrelu(xs, ws, bias, act="leaky"):
    """Sum_i conv3x3(x_i, w_i) + bias, then LeakyReLU.  xs: list of NHWC bf16 arrays
    sharing (n, H, W); ws: list of (9, C_i, O) bf16; bias: (1, O) f32."""
    n, H, W, _ = xs[0].shape
    O = ws[0].shape[-1]
    n_in = len(xs)
    for x, w in zip(xs, ws):
        assert x.shape[:3] == (n, H, W), (x.shape, (n, H, W))
        assert w.shape == (9, x.shape[-1], O), (w.shape, x.shape)
    assert bias.shape == (1, O), bias.shape

    kern = functools.partial(_conv3x3_kernel, n_in=n_in, H=H, W=W, act=act)
    in_specs = (
        [pl.BlockSpec((1, H, W, x.shape[-1]), lambda bidx: (bidx, 0, 0, 0)) for x in xs]
        + [pl.BlockSpec(w.shape, lambda bidx: (0, 0, 0)) for w in ws]
        + [pl.BlockSpec((1, O), lambda bidx: (0, 0))])
    flops = 2 * n * H * W * O * sum(9 * x.shape[-1] for x in xs)
    bytes_acc = (sum(int(x.size) * 2 for x in xs) + sum(int(w.size) * 2 for w in ws)
                 + 4 * O + n * H * W * O * 2)
    return pl.pallas_call(
        kern,
        out_shape=jax.ShapeDtypeStruct((n, H, W, O), jnp.bfloat16),
        grid=(n,),
        in_specs=in_specs,
        out_specs=pl.BlockSpec((1, H, W, O), lambda bidx: (bidx, 0, 0, 0)),
        compiler_params=pltpu.CompilerParams(dimension_semantics=("parallel",)),
        cost_estimate=pl.CostEstimate(flops=flops, transcendentals=0,
                                      bytes_accessed=bytes_acc),
    )(*xs, *ws, bias)


def upsample_convtrans(x, p):
    """ConvTranspose2d(k=4, s=2, p=1) upsample: (n, H, W, I) -> (n, 2H, 2W, O)."""
    n, H, W, I = x.shape
    O = p["cout"]
    assert p["w"].shape == (16, I, O), (p["w"].shape, I, O)
    kern = functools.partial(_upsample_convtrans_kernel, H=H, W=W)
    flops = 2 * n * H * W * 16 * I * O
    bytes_acc = int(x.size) * 2 + int(p["w"].size) * 2 + 4 * O + n * 4 * H * W * O * 2
    y = pl.pallas_call(
        kern,
        out_shape=jax.ShapeDtypeStruct((n, H, 2, W, 2 * O), jnp.bfloat16),
        grid=(n,),
        in_specs=[pl.BlockSpec((1, H, W, I), lambda bidx: (bidx, 0, 0, 0)),
                  pl.BlockSpec((16, I, O), lambda bidx: (0, 0, 0)),
                  pl.BlockSpec((1, O), lambda bidx: (0, 0))],
        out_specs=pl.BlockSpec((1, H, 2, W, 2 * O), lambda bidx: (bidx, 0, 0, 0, 0)),
        compiler_params=pltpu.CompilerParams(dimension_semantics=("parallel",)),
        cost_estimate=pl.CostEstimate(flops=flops, transcendentals=0,
                                      bytes_accessed=bytes_acc),
    )(x, p["w"], p["b"])
    # Phase interleave: (n, H, 2, W, 2*O) -> (n, 2H, 2W, O) is a pure row-major
    # reshape (zero-copy) by construction of the kernel's output layout.
    return y.reshape(n, 2 * H, 2 * W, O)


# ----------------------------- parameters & prep -------------------------------

class Rng:
    def __init__(self, key):
        self._key = key

    def next(self):
        self._key, k = jax.random.split(self._key)
        return k


def conv_weight(rng, o, i, kh, kw):
    fan_in = i * kh * kw
    return jax.random.normal(rng.next(), (o, i, kh, kw), jnp.float32) * math.sqrt(2.0 / fan_in)


def make_bn(c):
    return dict(gamma=jnp.ones((c,), jnp.float32), beta=jnp.zeros((c,), jnp.float32),
                mean=jnp.zeros((c,), jnp.float32), var=jnp.ones((c,), jnp.float32))


def make_convblock(rng, cin, cout):
    return dict(w=conv_weight(rng, cout, cin, 3, 3), bn=make_bn(cout))


def make_upblock_params(rng, in_features, out_features, concat_features=None):
    if concat_features is None:
        concat_features = out_features * 2
    return dict(
        ct_w=jax.random.normal(rng.next(), (in_features, out_features, 4, 4), jnp.float32)
        * math.sqrt(1.0 / (in_features * 16)),
        ct_b=jnp.zeros((out_features,), jnp.float32),
        ca1=make_convblock(rng, out_features, out_features),
        ca2=make_convblock(rng, out_features, out_features),
        conv1=make_convblock(rng, concat_features, out_features),
        conv2=make_convblock(rng, out_features, out_features),
    )


def bn_fold(bn, eps=1e-5):
    scale = bn["gamma"] / jnp.sqrt(bn["var"] + eps)
    return scale, bn["beta"] - bn["mean"] * scale


def prep_conv3x3(w, bn):
    """ConvBlock conv prep: BN scale folded into (9, I, O) bf16 weights (tap 3*di+dj)."""
    O, I, _, _ = w.shape
    scale, bias = bn_fold(bn)
    wt = (jnp.transpose(w, (2, 3, 1, 0)) * scale).reshape(9, I, O).astype(jnp.bfloat16)
    return dict(w=wt, b=bias.reshape(1, O).astype(jnp.float32))


def prep_conv3x3_split(w, bn, c0):
    """conv1 prep, K rows split so torch.cat([u, x2], dim=1) is never materialized."""
    O, I, _, _ = w.shape
    scale, bias = bn_fold(bn)
    wt = (jnp.transpose(w, (2, 3, 1, 0)) * scale).astype(jnp.bfloat16)   # (3, 3, I, O)
    return dict(wu=wt[:, :, :c0, :].reshape(9, c0, O),
                wx=wt[:, :, c0:, :].reshape(9, I - c0, O),
                b=bias.reshape(1, O).astype(jnp.float32))


def prep_convtrans4x4(w, bias):
    """ConvTranspose2d(k=4,s=2,p=1) as 4 sub-pixel phases x 4 taps. w: (I, O, 4, 4);
    tap index a*8 + b*4 + di*2 + dj holds w[:, :, 3-a-2*di, 3-b-2*dj]."""
    I, O, _, _ = w.shape
    taps = []
    for a in (0, 1):
        for b in (0, 1):
            for di in (0, 1):
                for dj in (0, 1):
                    taps.append(w[:, :, 3 - a - 2 * di, 3 - b - 2 * dj])   # (I, O)
    wt = jnp.stack(taps, axis=0).astype(jnp.bfloat16)                       # (16, I, O)
    return dict(w=wt, b=bias.reshape(1, O).astype(jnp.float32), cout=O)


def prep_upblock_params(p):
    out_features = p["ca2"]["w"].shape[0]
    return dict(
        ct=prep_convtrans4x4(p["ct_w"], p["ct_b"]),
        ca1=prep_conv3x3(p["ca1"]["w"], p["ca1"]["bn"]),
        ca2=prep_conv3x3(p["ca2"]["w"], p["ca2"]["bn"]),
        conv1=prep_conv3x3_split(p["conv1"]["w"], p["conv1"]["bn"], out_features),
        conv2=prep_conv3x3(p["conv2"]["w"], p["conv2"]["bn"]),
    )


# ----------------------------- Upblock forward ---------------------------------

def upblock_forward(prep, x1_nchw, x2_nchw):
    """Upblock.forward(x1, x2): upsample(x1) -> cat([x1, x2], C) -> conv1 -> conv2.
    NCHW in / NCHW out (PyTorch convention); internally NHWC bf16 (channels on lanes)."""
    x1 = jnp.transpose(x1_nchw, (0, 2, 3, 1)).astype(jnp.bfloat16)
    x2 = jnp.transpose(x2_nchw, (0, 2, 3, 1)).astype(jnp.bfloat16)
    u = upsample_convtrans(x1, prep["ct"])                                   # bias only
    u = conv3x3_bn_lrelu([u], [prep["ca1"]["w"]], prep["ca1"]["b"])
    u = conv3x3_bn_lrelu([u], [prep["ca2"]["w"]], prep["ca2"]["b"])
    # conv1 on torch.cat([u, x2], dim=1) without materializing the concat:
    y = conv3x3_bn_lrelu([u, x2], [prep["conv1"]["wu"], prep["conv1"]["wx"]],
                         prep["conv1"]["b"])
    out = conv3x3_bn_lrelu([y], [prep["conv2"]["w"]], prep["conv2"]["b"])
    return jnp.transpose(out, (0, 3, 1, 2)).astype(jnp.float32)


# ----------------------------- pure-JAX f32 reference --------------------------

def upblock_reference(params, x1, x2):
    dn = ("NCHW", "OIHW", "NCHW")

    def convblock(y, p):
        y = lax.conv_general_dilated(y, p["w"], (1, 1), "SAME", dimension_numbers=dn)
        s, b = bn_fold(p["bn"])
        y = y * s[None, :, None, None] + b[None, :, None, None]
        return jnp.where(y > 0, y, 0.2 * y)

    w_conv = jnp.transpose(params["ct_w"][:, :, ::-1, ::-1], (1, 0, 2, 3))
    u = lax.conv_general_dilated(x1, w_conv, (1, 1), [(2, 2), (2, 2)],
                                 lhs_dilation=(2, 2), dimension_numbers=dn)
    u = u + params["ct_b"][None, :, None, None]
    u = convblock(u, params["ca1"])
    u = convblock(u, params["ca2"])
    ct = jnp.concatenate([u, x2], axis=1)
    ct = convblock(ct, params["conv1"])
    return convblock(ct, params["conv2"])


if __name__ == "__main__":
    key = jax.random.PRNGKey(0)
    k_params, k_x1, k_x2 = jax.random.split(key, 3)

    IN_F, OUT_F = 32, 16          # concat_features defaults to 2 * OUT_F
    N, H, W = 2, 8, 8             # x1 spatial; x2 is the skip at 2x spatial

    raw = make_upblock_params(Rng(k_params), IN_F, OUT_F)
    prep = prep_upblock_params(raw)    # one-time weight prep (BN fold / layout / bf16)

    x1 = jax.random.normal(k_x1, (N, IN_F, H, W), jnp.float32)
    x2 = jax.random.normal(k_x2, (N, OUT_F, 2 * H, 2 * W), jnp.float32)

    fwd = jax.jit(functools.partial(upblock_forward, prep))
    out = fwd(x1, x2)
    jax.block_until_ready(out)

    assert out.shape == (N, OUT_F, 2 * H, 2 * W), out.shape
    assert bool(jnp.isfinite(out).all())

    # sanity check vs pure-JAX f32 reference (generous tolerance for bf16 MXU path)
    ref = upblock_reference(raw, x1, x2)
    rel = float(jnp.linalg.norm(out - ref) / (jnp.linalg.norm(ref) + 1e-6))
    max_abs = float(jnp.max(jnp.abs(out - ref)))
    assert rel < 0.08 and max_abs < 1.0, (rel, max_abs)

    print("KERNEL_OK")
</pallas_src>

<mosaic_0001>
module attributes {stable_mosaic.version = 11 : i64} {
  func.func @_upsample_convtrans_kernel(%arg0: i32, %arg1: memref<1x8x8x32xbf16, #tpu.memory_space<vmem>>, %arg2: memref<16x32x16xbf16, #tpu.memory_space<vmem>>, %arg3: memref<1x16xf32, #tpu.memory_space<vmem>>, %arg4: memref<1x8x2x8x32xbf16, #tpu.memory_space<vmem>>) attributes {dimension_semantics = [#tpu.dimension_semantics<parallel>], iteration_bounds = array<i64: 2>, scalar_prefetch = 0 : i64, scratch_operands = 0 : i64, tpu.core_type = #tpu.core_type<tc>, window_params = [{transform_indices = @transform_0, window_bounds = array<i64: 1, 8, 8, 32>}, {pipeline_mode = #tpu.pipeline_mode<synchronous>, transform_indices = @transform_1, window_bounds = array<i64: 16, 32, 16>}, {pipeline_mode = #tpu.pipeline_mode<synchronous>, transform_indices = @transform_2, window_bounds = array<i64: 1, 16>}, {transform_indices = @transform_3, window_bounds = array<i64: 1, 8, 2, 8, 32>}]} {
    %c0 = arith.constant 0 : index
    %c0_0 = arith.constant 0 : index
    %c0_1 = arith.constant 0 : index
    %c0_2 = arith.constant 0 : index
    %0 = vector.load %arg1[%c0, %c0_0, %c0_1, %c0_2] : memref<1x8x8x32xbf16, #tpu.memory_space<vmem>>, vector<1x8x8x32xbf16>
    %1 = vector.shape_cast %0 : vector<1x8x8x32xbf16> to vector<8x8x32xbf16>
    %cst = arith.constant 0.000000e+00 : bf16
    %2 = vector.broadcast %cst : bf16 to vector<8x1x32xbf16>
    %3 = tpu.concatenate %2, %1, %2 in 1 : vector<8x1x32xbf16>, vector<8x8x32xbf16>, vector<8x1x32xbf16> -> vector<8x10x32xbf16>
    %cst_3 = arith.constant 0.000000e+00 : bf16
    %4 = vector.broadcast %cst_3 : bf16 to vector<1x10x32xbf16>
    %5 = tpu.concatenate %4, %3, %4 in 0 : vector<1x10x32xbf16>, vector<8x10x32xbf16>, vector<1x10x32xbf16> -> vector<10x10x32xbf16>
    %cst_4 = arith.constant 0.000000e+00 : f32
    %6 = vector.broadcast %cst_4 : f32 to vector<64x16xf32>
    %c0_5 = arith.constant 0 : index
    %c0_6 = arith.constant 0 : index
    %7 = vector.load %arg3[%c0_5, %c0_6] : memref<1x16xf32, #tpu.memory_space<vmem>>, vector<1x16xf32>
    %8 = vector.broadcast %7 : vector<1x16xf32> to vector<64x16xf32>
    %9 = arith.addf %6, %8 : vector<64x16xf32>
    %10 = vector.extract_strided_slice %5 {offsets = [0, 0, 0], sizes = [8, 8, 32], strides = [1, 1, 1]} : vector<10x10x32xbf16> to vector<8x8x32xbf16>
    %11 = vector.shape_cast %10 : vector<8x8x32xbf16> to vector<64x32xbf16>
    %c0_7 = arith.constant 0 : index
    %c0_8 = arith.constant 0 : index
    %c0_9 = arith.constant 0 : index
    %12 = vector.load %arg2[%c0_7, %c0_8, %c0_9] : memref<16x32x16xbf16, #tpu.memory_space<vmem>>, vector<1x32x16xbf16>
    %13 = vector.shape_cast %12 : vector<1x32x16xbf16> to vector<32x16xbf16>
    %cst_10 = arith.constant dense<0.000000e+00> : vector<64x16xf32>
    %14 = tpu.matmul %11, %13, %cst_10 {dimension_numbers = #tpu.dot_dimension_numbers<[1], [0], [0], [1], [0, 0, 1, 1], [], []>} : vector<64x32xbf16>, vector<32x16xbf16>, vector<64x16xf32> -> vector<64x16xf32>
    %15 = arith.addf %9, %14 : vector<64x16xf32>
    %16 = vector.extract_strided_slice %5 {offsets = [0, 1, 0], sizes = [8, 8, 32], strides = [1, 1, 1]} : vector<10x10x32xbf16> to vector<8x8x32xbf16>
    %17 = vector.shape_cast %16 : vector<8x8x32xbf16> to vector<64x32xbf16>
    %c1 = arith.constant 1 : index
    %c0_11 = arith.constant 0 : index
    %c0_12 = arith.constant 0 : index
    %18 = vector.load %arg2[%c1, %c0_11, %c0_12] : memref<16x32x16xbf16, #tpu.memory_space<vmem>>, vector<1x32x16xbf16>
    %19 = vector.shape_cast %18 : vector<1x32x16xbf16> to vector<32x16xbf16>
    %cst_13 = arith.constant dense<0.000000e+00> : vector<64x16xf32>
    %20 = tpu.matmul %17, %19, %cst_13 {dimension_numbers = #tpu.dot_dimension_numbers<[1], [0], [0], [1], [0, 0, 1, 1], [], []>} : vector<64x32xbf16>, vector<32x16xbf16>, vector<64x16xf32> -> vector<64x16xf32>
    %21 = arith.addf %15, %20 : vector<64x16xf32>
    %22 = vector.extract_strided_slice %5 {offsets = [1, 0, 0], sizes = [8, 8, 32], strides = [1, 1, 1]} : vector<10x10x32xbf16> to vector<8x8x32xbf16>
    %23 = vector.shape_cast %22 : vector<8x8x32xbf16> to vector<64x32xbf16>
    %c2 = arith.constant 2 : index
    %c0_14 = arith.constant 0 : index
    %c0_15 = arith.constant 0 : index
    %24 = vector.load %arg2[%c2, %c0_14, %c0_15] : memref<16x32x16xbf16, #tpu.memory_space<vmem>>, vector<1x32x16xbf16>
    %25 = vector.shape_cast %24 : vector<1x32x16xbf16> to vector<32x16xbf16>
    %cst_16 = arith.constant dense<0.000000e+00> : vector<64x16xf32>
    %26 = tpu.matmul %23, %25, %cst_16 {dimension_numbers = #tpu.dot_dimension_numbers<[1], [0], [0], [1], [0, 0, 1, 1], [], []>} : vector<64x32xbf16>, vector<32x16xbf16>, vector<64x16xf32> -> vector<64x16xf32>
    %27 = arith.addf %21, %26 : vector<64x16xf32>
    %28 = vector.extract_strided_slice %5 {offsets = [1, 1, 0], sizes = [8, 8, 32], strides = [1, 1, 1]} : vector<10x10x32xbf16> to vector<8x8x32xbf16>
    %29 = vector.shape_cast %28 : vector<8x8x32xbf16> to vector<64x32xbf16>
    %c3 = arith.constant 3 : index
    %c0_17 = arith.constant 0 : index
    %c0_18 = arith.constant 0 : index
    %30 = vector.load %arg2[%c3, %c0_17, %c0_18] : memref<16x32x16xbf16, #tpu.memory_space<vmem>>, vector<1x32x16xbf16>
    %31 = vector.shape_cast %30 : vector<1x32x16xbf16> to vector<32x16xbf16>
    %cst_19 = arith.constant dense<0.000000e+00> : vector<64x16xf32>
    %32 = tpu.matmul %29, %31, %cst_19 {dimension_numbers = #tpu.dot_dimension_numbers<[1], [0], [0], [1], [0, 0, 1, 1], [], []>} : vector<64x32xbf16>, vector<32x16xbf16>, vector<64x16xf32> -> vector<64x16xf32>
    %33 = arith.addf %27, %32 : vector<64x16xf32>
    %34 = vector.shape_cast %33 : vector<64x16xf32> to vector<8x8x16xf32>
    %35 = arith.truncf %34 : vector<8x8x16xf32> to vector<8x8x16xbf16>
    %cst_20 = arith.constant 0.000000e+00 : f32
    %36 = vector.broadcast %cst_20 : f32 to vector<64x16xf32>
    %c0_21 = arith.constant 0 : index
    %c0_22 = arith.constant 0 : index
    %37 = vector.load %arg3[%c0_21, %c0_22] : memref<1x16xf32, #tpu.memory_space<vmem>>, vector<1x16xf32>
    %38 = vector.broadcast %37 : vector<1x16xf32> to vector<64x16xf32>
    %39 = arith.addf %36, %38 : vector<64x16xf32>
    %40 = vector.extract_strided_slice %5 {offsets = [0, 1, 0], sizes = [8, 8, 32], strides = [1, 1, 1]} : vector<10x10x32xbf16> to vector<8x8x32xbf16>
    %41 = vector.shape_cast %40 : vector<8x8x32xbf16> to vector<64x32xbf16>
    %c4 = arith.constant 4 : index
    %c0_23 = arith.constant 0 : index
    %c0_24 = arith.constant 0 : index
    %42 = vector.load %arg2[%c4, %c0_23, %c0_24] : memref<16x32x16xbf16, #tpu.memory_space<vmem>>, vector<1x32x16xbf16>
    %43 = vector.shape_cast %42 : vector<1x32x16xbf16> to vector<32x16xbf16>
    %cst_25 = arith.constant dense<0.000000e+00> : vector<64x16xf32>
    %44 = tpu.matmul %41, %43, %cst_25 {dimension_numbers = #tpu.dot_dimension_numbers<[1], [0], [0], [1], [0, 0, 1, 1], [], []>} : vector<64x32xbf16>, vector<32x16xbf16>, vector<64x16xf32> -> vector<64x16xf32>
    %45 = arith.addf %39, %44 : vector<64x16xf32>
    %46 = vector.extract_strided_slice %5 {offsets = [0, 2, 0], sizes = [8, 8, 32], strides = [1, 1, 1]} : vector<10x10x32xbf16> to vector<8x8x32xbf16>
    %47 = vector.shape_cast %46 : vector<8x8x32xbf16> to vector<64x32xbf16>
    %c5 = arith.constant 5 : index
    %c0_26 = arith.constant 0 : index
    %c0_27 = arith.constant 0 : index
    %48 = vector.load %arg2[%c5, %c0_26, %c0_27] : memref<16x32x16xbf16, #tpu.memory_space<vmem>>, vector<1x32x16xbf16>
    %49 = vector.shape_cast %48 : vector<1x32x16xbf16> to vector<32x16xbf16>
    %cst_28 = arith.constant dense<0.000000e+00> : vector<64x16xf32>
    %50 = tpu.matmul %47, %49, %cst_28 {dimension_numbers = #tpu.dot_dimension_numbers<[1], [0], [0], [1], [0, 0, 1, 1], [], []>} : vector<64x32xbf16>, vector<32x16xbf16>, vector<64x16xf32> -> vector<64x16xf32>
    %51 = arith.addf %45, %50 : vector<64x16xf32>
    %52 = vector.extract_strided_slice %5 {offsets = [1, 1, 0], sizes = [8, 8, 32], strides = [1, 1, 1]} : vector<10x10x32xbf16> to vector<8x8x32xbf16>
    %53 = vector.shape_cast %52 : vector<8x8x32xbf16> to vector<64x32xbf16>
    %c6 = arith.constant 6 : index
    %c0_29 = arith.constant 0 : index
    %c0_30 = arith.constant 0 : index
    %54 = vector.load %arg2[%c6, %c0_29, %c0_30] : memref<16x32x16xbf16, #tpu.memory_space<vmem>>, vector<1x32x16xbf16>
    %55 = vector.shape_cast %54 : vector<1x32x16xbf16> to vector<32x16xbf16>
    %cst_31 = arith.constant dense<0.000000e+00> : vector<64x16xf32>
    %56 = tpu.matmul %53, %55, %cst_31 {dimension_numbers = #tpu.dot_dimension_numbers<[1], [0], [0], [1], [0, 0, 1, 1], [], []>} : vector<64x32xbf16>, vector<32x16xbf16>, vector<64x16xf32> -> vector<64x16xf32>
    %57 = arith.addf %51, %56 : vector<64x16xf32>
    %58 = vector.extract_strided_slice %5 {offsets = [1, 2, 0], sizes = [8, 8, 32], strides = [1, 1, 1]} : vector<10x10x32xbf16> to vector<8x8x32xbf16>
    %59 = vector.shape_cast %58 : vector<8x8x32xbf16> to vector<64x32xbf16>
    %c7 = arith.constant 7 : index
    %c0_32 = arith.constant 0 : index
    %c0_33 = arith.constant 0 : index
    %60 = vector.load %arg2[%c7, %c0_32, %c0_33] : memref<16x32x16xbf16, #tpu.memory_space<vmem>>, vector<1x32x16xbf16>
    %61 = vector.shape_cast %60 : vector<1x32x16xbf16> to vector<32x16xbf16>
    %cst_34 = arith.constant dense<0.000000e+00> : vector<64x16xf32>
    %62 = tpu.matmul %59, %61, %cst_34 {dimension_numbers = #tpu.dot_dimension_numbers<[1], [0], [0], [1], [0, 0, 1, 1], [], []>} : vector<64x32xbf16>, vector<32x16xbf16>, vector<64x16xf32> -> vector<64x16xf32>
    %63 = arith.addf %57, %62 : vector<64x16xf32>
    %64 = vector.shape_cast %63 : vector<64x16xf32> to vector<8x8x16xf32>
    %65 = arith.truncf %64 : vector<8x8x16xf32> to vector<8x8x16xbf16>
    %66 = tpu.concatenate %35, %65 in 2 : vector<8x8x16xbf16>, vector<8x8x16xbf16> -> vector<8x8x32xbf16>
    %c0_35 = arith.constant 0 : index
    %c0_36 = arith.constant 0 : index
    %c0_37 = arith.constant 0 : index
    %c0_38 = arith.constant 0 : index
    %c0_39 = arith.constant 0 : index
    %67 = vector.load %arg4[%c0_35, %c0_36, %c0_37, %c0_38, %c0_39] : memref<1x8x2x8x32xbf16, #tpu.memory_space<vmem>>, vector<1x8x1x8x32xbf16>
    %68 = vector.shape_cast %67 : vector<1x8x1x8x32xbf16> to vector<8x8x32xbf16>
    %69 = vector.shape_cast %66 : vector<8x8x32xbf16> to vector<1x8x1x8x32xbf16>
    tpu.vector_store %arg4[%c0_35, %c0_36, %c0_37, %c0_38, %c0_39], %69 {strides = array<i32>} : memref<1x8x2x8x32xbf16, #tpu.memory_space<vmem>>, vector<1x8x1x8x32xbf16>,
    %cst_40 = arith.constant 0.000000e+00 : f32
    %70 = vector.broadcast %cst_40 : f32 to vector<64x16xf32>
    %c0_41 = arith.constant 0 : index
    %c0_42 = arith.constant 0 : index
    %71 = vector.load %arg3[%c0_41, %c0_42] : memref<1x16xf32, #tpu.memory_space<vmem>>, vector<1x16xf32>
    %72 = vector.broadcast %71 : vector<1x16xf32> to vector<64x16xf32>
    %73 = arith.addf %70, %72 : vector<64x16xf32>
    %74 = vector.extract_strided_slice %5 {offsets = [1, 0, 0], sizes = [8, 8, 32], strides = [1, 1, 1]} : vector<10x10x32xbf16> to vector<8x8x32xbf16>
    %75 = vector.shape_cast %74 : vector<8x8x32xbf16> to vector<64x32xbf16>
    %c8 = arith.constant 8 : index
    %c0_43 = arith.constant 0 : index
    %c0_44 = arith.constant 0 : index
    %76 = vector.load %arg2[%c8, %c0_43, %c0_44] : memref<16x32x16xbf16, #tpu.memory_space<vmem>>, vector<1x32x16xbf16>
    %77 = vector.shape_cast %76 : vector<1x32x16xbf16> to vector<32x16xbf16>
    %cst_45 = arith.constant dense<0.000000e+00> : vector<64x16xf32>
    %78 = tpu.matmul %75, %77, %cst_45 {dimension_numbers = #tpu.dot_dimension_numbers<[1], [0], [0], [1], [0, 0, 1, 1], [], []>} : vector<64x32xbf16>, vector<32x16xbf16>, vector<64x16xf32> -> vector<64x16xf32>
    %79 = arith.addf %73, %78 : vector<64x16xf32>
    %80 = vector.extract_strided_slice %5 {offsets = [1, 1, 0], sizes = [8, 8, 32], strides = [1, 1, 1]} : vector<10x10x32xbf16> to vector<8x8x32xbf16>
    %81 = vector.shape_cast %80 : vector<8x8x32xbf16> to vector<64x32xbf16>
    %c9 = arith.constant 9 : index
    %c0_46 = arith.constant 0 : index
    %c0_47 = arith.constant 0 : index
    %82 = vector.load %arg2[%c9, %c0_46, %c0_47] : memref<16x32x16xbf16, #tpu.memory_space<vmem>>, vector<1x32x16xbf16>
    %83 = vector.shape_cast %82 : vector<1x32x16xbf16> to vector<32x16xbf16>
    %cst_48 = arith.constant dense<0.000000e+00> : vector<64x16xf32>
    %84 = tpu.matmul %81, %83, %cst_48 {dimension_numbers = #tpu.dot_dimension_numbers<[1], [0], [0], [1], [0, 0, 1, 1], [], []>} : vector<64x32xbf16>, vector<32x16xbf16>, vector<64x16xf32> -> vector<64x16xf32>
    %85 = arith.addf %79, %84 : vector<64x16xf32>
    %86 = vector.extract_strided_slice %5 {offsets = [2, 0, 0], sizes = [8, 8, 32], strides = [1, 1, 1]} : vector<10x10x32xbf16> to vector<8x8x32xbf16>
    %87 = vector.shape_cast %86 : vector<8x8x32xbf16> to vector<64x32xbf16>
    %c10 = arith.constant 10 : index
    %c0_49 = arith.constant 0 : index
    %c0_50 = arith.constant 0 : index
    %88 = vector.load %arg2[%c10, %c0_49, %c0_50] : memref<16x32x16xbf16, #tpu.memory_space<vmem>>, vector<1x32x16xbf16>
    %89 = vector.shape_cast %88 : vector<1x32x16xbf16> to vector<32x16xbf16>
    %cst_51 = arith.constant dense<0.000000e+00> : vector<64x16xf32>
    %90 = tpu.matmul %87, %89, %cst_51 {dimension_numbers = #tpu.dot_dimension_numbers<[1], [0], [0], [1], [0, 0, 1, 1], [], []>} : vector<64x32xbf16>, vector<32x16xbf16>, vector<64x16xf32> -> vector<64x16xf32>
    %91 = arith.addf %85, %90 : vector<64x16xf32>
    %92 = vector.extract_strided_slice %5 {offsets = [2, 1, 0], sizes = [8, 8, 32], strides = [1, 1, 1]} : vector<10x10x32xbf16> to vector<8x8x32xbf16>
    %93 = vector.shape_cast %92 : vector<8x8x32xbf16> to vector<64x32xbf16>
    %c11 = arith.constant 11 : index
    %c0_52 = arith.constant 0 : index
    %c0_53 = arith.constant 0 : index
    %94 = vector.load %arg2[%c11, %c0_52, %c0_53] : memref<16x32x16xbf16, #tpu.memory_space<vmem>>, vector<1x32x16xbf16>
    %95 = vector.shape_cast %94 : vector<1x32x16xbf16> to vector<32x16xbf16>
    %cst_54 = arith.constant dense<0.000000e+00> : vector<64x16xf32>
    %96 = tpu.matmul %93, %95, %cst_54 {dimension_numbers = #tpu.dot_dimension_numbers<[1], [0], [0], [1], [0, 0, 1, 1], [], []>} : vector<64x32xbf16>, vector<32x16xbf16>, vector<64x16xf32> -> vector<64x16xf32>
    %97 = arith.addf %91, %96 : vector<64x16xf32>
    %98 = vector.shape_cast %97 : vector<64x16xf32> to vector<8x8x16xf32>
    %99 = arith.truncf %98 : vector<8x8x16xf32> to vector<8x8x16xbf16>
    %cst_55 = arith.constant 0.000000e+00 : f32
    %100 = vector.broadcast %cst_55 : f32 to vector<64x16xf32>
    %c0_56 = arith.constant 0 : index
    %c0_57 = arith.constant 0 : index
    %101 = vector.load %arg3[%c0_56, %c0_57] : memref<1x16xf32, #tpu.memory_space<vmem>>, vector<1x16xf32>
    %102 = vector.broadcast %101 : vector<1x16xf32> to vector<64x16xf32>
    %103 = arith.addf %100, %102 : vector<64x16xf32>
    %104 = vector.extract_strided_slice %5 {offsets = [1, 1, 0], sizes = [8, 8, 32], strides = [1, 1, 1]} : vector<10x10x32xbf16> to vector<8x8x32xbf16>
    %105 = vector.shape_cast %104 : vector<8x8x32xbf16> to vector<64x32xbf16>
    %c12 = arith.constant 12 : index
    %c0_58 = arith.constant 0 : index
    %c0_59 = arith.constant 0 : index
    %106 = vector.load %arg2[%c12, %c0_58, %c0_59] : memref<16x32x16xbf16, #tpu.memory_space<vmem>>, vector<1x32x16xbf16>
    %107 = vector.shape_cast %106 : vector<1x32x16xbf16> to vector<32x16xbf16>
    %cst_60 = arith.constant dense<0.000000e+00> : vector<64x16xf32>
    %108 = tpu.matmul %105, %107, %cst_60 {dimension_numbers = #tpu.dot_dimension_numbers<[1], [0], [0], [1], [0, 0, 1, 1], [], []>} : vector<64x32xbf16>, vector<32x16xbf16>, vector<64x16xf32> -> vector<64x16xf32>
    %109 = arith.addf %103, %108 : vector<64x16xf32>
    %110 = vector.extract_strided_slice %5 {offsets = [1, 2, 0], sizes = [8, 8, 32], strides = [1, 1, 1]} : vector<10x10x32xbf16> to vector<8x8x32xbf16>
    %111 = vector.shape_cast %110 : vector<8x8x32xbf16> to vector<64x32xbf16>
    %c13 = arith.constant 13 : index
    %c0_61 = arith.constant 0 : index
    %c0_62 = arith.constant 0 : index
    %112 = vector.load %arg2[%c13, %c0_61, %c0_62] : memref<16x32x16xbf16, #tpu.memory_space<vmem>>, vector<1x32x16xbf16>
    %113 = vector.shape_cast %112 : vector<1x32x16xbf16> to vector<32x16xbf16>
    %cst_63 = arith.constant dense<0.000000e+00> : vector<64x16xf32>
    %114 = tpu.matmul %111, %113, %cst_63 {dimension_numbers = #tpu.dot_dimension_numbers<[1], [0], [0], [1], [0, 0, 1, 1], [], []>} : vector<64x32xbf16>, vector<32x16xbf16>, vector<64x16xf32> -> vector<64x16xf32>
    %115 = arith.addf %109, %114 : vector<64x16xf32>
    %116 = vector.extract_strided_slice %5 {offsets = [2, 1, 0], sizes = [8, 8, 32], strides = [1, 1, 1]} : vector<10x10x32xbf16> to vector<8x8x32xbf16>
    %117 = vector.shape_cast %116 : vector<8x8x32xbf16> to vector<64x32xbf16>
    %c14 = arith.constant 14 : index
    %c0_64 = arith.constant 0 : index
    %c0_65 = arith.constant 0 : index
    %118 = vector.load %arg2[%c14, %c0_64, %c0_65] : memref<16x32x16xbf16, #tpu.memory_space<vmem>>, vector<1x32x16xbf16>
    %119 = vector.shape_cast %118 : vector<1x32x16xbf16> to vector<32x16xbf16>
    %cst_66 = arith.constant dense<0.000000e+00> : vector<64x16xf32>
    %120 = tpu.matmul %117, %119, %cst_66 {dimension_numbers = #tpu.dot_dimension_numbers<[1], [0], [0], [1], [0, 0, 1, 1], [], []>} : vector<64x32xbf16>, vector<32x16xbf16>, vector<64x16xf32> -> vector<64x16xf32>
    %121 = arith.addf %115, %120 : vector<64x16xf32>
    %122 = vector.extract_strided_slice %5 {offsets = [2, 2, 0], sizes = [8, 8, 32], strides = [1, 1, 1]} : vector<10x10x32xbf16> to vector<8x8x32xbf16>
    %123 = vector.shape_cast %122 : vector<8x8x32xbf16> to vector<64x32xbf16>
    %c15 = arith.constant 15 : index
    %c0_67 = arith.constant 0 : index
    %c0_68 = arith.constant 0 : index
    %124 = vector.load %arg2[%c15, %c0_67, %c0_68] : memref<16x32x16xbf16, #tpu.memory_space<vmem>>, vector<1x32x16xbf16>
    %125 = vector.shape_cast %124 : vector<1x32x16xbf16> to vector<32x16xbf16>
    %cst_69 = arith.constant dense<0.000000e+00> : vector<64x16xf32>
    %126 = tpu.matmul %123, %125, %cst_69 {dimension_numbers = #tpu.dot_dimension_numbers<[1], [0], [0], [1], [0, 0, 1, 1], [], []>} : vector<64x32xbf16>, vector<32x16xbf16>, vector<64x16xf32> -> vector<64x16xf32>
    %127 = arith.addf %121, %126 : vector<64x16xf32>
    %128 = vector.shape_cast %127 : vector<64x16xf32> to vector<8x8x16xf32>
    %129 = arith.truncf %128 : vector<8x8x16xf32> to vector<8x8x16xbf16>
    %130 = tpu.concatenate %99, %129 in 2 : vector<8x8x16xbf16>, vector<8x8x16xbf16> -> vector<8x8x32xbf16>
    %c0_70 = arith.constant 0 : index
    %c0_71 = arith.constant 0 : index
    %c1_72 = arith.constant 1 : index
    %c0_73 = arith.constant 0 : index
    %c0_74 = arith.constant 0 : index
    %131 = vector.load %arg4[%c0_70, %c0_71, %c1_72, %c0_73, %c0_74] : memref<1x8x2x8x32xbf16, #tpu.memory_space<vmem>>, vector<1x8x1x8x32xbf16>
    %132 = vector.shape_cast %131 : vector<1x8x1x8x32xbf16> to vector<8x8x32xbf16>
    %133 = vector.shape_cast %130 : vector<8x8x32xbf16> to vector<1x8x1x8x32xbf16>
    tpu.vector_store %arg4[%c0_70, %c0_71, %c1_72, %c0_73, %c0_74], %133 {strides = array<i32>} : memref<1x8x2x8x32xbf16, #tpu.memory_space<vmem>>, vector<1x8x1x8x32xbf16>,
    return
  }
  func.func @transform_0(%arg0: i32) -> (i32, i32, i32, i32) {
    %c0_i32 = arith.constant 0 : i32
    %c0_i32_0 = arith.constant 0 : i32
    %c0_i32_1 = arith.constant 0 : i32
    %c0_i32_2 = arith.constant 0 : i32
    return %arg0, %c0_i32, %c0_i32_0, %c0_i32_1 : i32, i32, i32, i32
  }
  func.func @transform_1(%arg0: i32) -> (i32, i32, i32) {
    %c0_i32 = arith.constant 0 : i32
    %c0_i32_0 = arith.constant 0 : i32
    %c0_i32_1 = arith.constant 0 : i32
    %c0_i32_2 = arith.constant 0 : i32
    return %c0_i32, %c0_i32_0, %c0_i32_1 : i32, i32, i32
  }
  func.func @transform_2(%arg0: i32) -> (i32, i32) {
    %c0_i32 = arith.constant 0 : i32
    %c0_i32_0 = arith.constant 0 : i32
    %c0_i32_1 = arith.constant 0 : i32
    return %c0_i32, %c0_i32_0 : i32, i32
  }
  func.func @transform_3(%arg0: i32) -> (i32, i32, i32, i32, i32) {
    %c0_i32 = arith.constant 0 : i32
    %c0_i32_0 = arith.constant 0 : i32
    %c0_i32_1 = arith.constant 0 : i32
    %c0_i32_2 = arith.constant 0 : i32
    %c0_i32_3 = arith.constant 0 : i32
    return %arg0, %c0_i32, %c0_i32_0, %c0_i32_1, %c0_i32_2 : i32, i32, i32, i32, i32
  }
}

module attributes {stable_mosaic.version = 11 : i64} {
  func.func @_conv3x3_kernel(%arg0: i32, %arg1: memref<1x16x16x16xbf16, #tpu.memory_space<vmem>>, %arg2: memref<9x16x16xbf16, #tpu.memory_space<vmem>>, %arg3: memref<1x16xf32, #tpu.memory_space<vmem>>, %arg4: memref<1x16x16x16xbf16, #tpu.memory_space<vmem>>) attributes {dimension_semantics = [#tpu.dimension_semantics<parallel>], iteration_bounds = array<i64: 2>, scalar_prefetch = 0 : i64, scratch_operands = 0 : i64, tpu.core_type = #tpu.core_type<tc>, window_params = [{transform_indices = @transform_0, window_bounds = array<i64: 1, 16, 16, 16>}, {pipeline_mode = #tpu.pipeline_mode<synchronous>, transform_indices = @transform_1, window_bounds = array<i64: 9, 16, 16>}, {pipeline_mode = #tpu.pipeline_mode<synchronous>, transform_indices = @transform_2, window_bounds = array<i64: 1, 16>}, {transform_indices = @transform_3, window_bounds = array<i64: 1, 16, 16, 16>}]} {
    %cst = arith.constant 0.000000e+00 : f32
    %0 = vector.broadcast %cst : f32 to vector<256x16xf32>
    %c0 = arith.constant 0 : index
    %c0_0 = arith.constant 0 : index
    %1 = vector.load %arg3[%c0, %c0_0] : memref<1x16xf32, #tpu.memory_space<vmem>>, vector<1x16xf32>
    %2 = vector.broadcast %1 : vector<1x16xf32> to vector<256x16xf32>
    %3 = arith.addf %0, %2 : vector<256x16xf32>
    %c0_1 = arith.constant 0 : index
    %c0_2 = arith.constant 0 : index
    %c0_3 = arith.constant 0 : index
    %c0_4 = arith.constant 0 : index
    %4 = vector.load %arg1[%c0_1, %c0_2, %c0_3, %c0_4] : memref<1x16x16x16xbf16, #tpu.memory_space<vmem>>, vector<1x16x16x16xbf16>
    %5 = vector.shape_cast %4 : vector<1x16x16x16xbf16> to vector<16x16x16xbf16>
    %cst_5 = arith.constant 0.000000e+00 : bf16
    %6 = vector.broadcast %cst_5 : bf16 to vector<16x1x16xbf16>
    %7 = tpu.concatenate %6, %5, %6 in 1 : vector<16x1x16xbf16>, vector<16x16x16xbf16>, vector<16x1x16xbf16> -> vector<16x18x16xbf16>
    %cst_6 = arith.constant 0.000000e+00 : bf16
    %8 = vector.broadcast %cst_6 : bf16 to vector<1x18x16xbf16>
    %9 = tpu.concatenate %8, %7, %8 in 0 : vector<1x18x16xbf16>, vector<16x18x16xbf16>, vector<1x18x16xbf16> -> vector<18x18x16xbf16>
    %10 = vector.extract_strided_slice %9 {offsets = [0, 0, 0], sizes = [18, 16, 16], strides = [1, 1, 1]} : vector<18x18x16xbf16> to vector<18x16x16xbf16>
    %11 = vector.extract_strided_slice %10 {offsets = [0, 0, 0], sizes = [16, 16, 16], strides = [1, 1, 1]} : vector<18x16x16xbf16> to vector<16x16x16xbf16>
    %12 = vector.shape_cast %11 : vector<16x16x16xbf16> to vector<256x16xbf16>
    %c0_7 = arith.constant 0 : index
    %c0_8 = arith.constant 0 : index
    %c0_9 = arith.constant 0 : index
    %13 = vector.load %arg2[%c0_7, %c0_8, %c0_9] : memref<9x16x16xbf16, #tpu.memory_space<vmem>>, vector<1x16x16xbf16>
    %14 = vector.shape_cast %13 : vector<1x16x16xbf16> to vector<16x16xbf16>
    %cst_10 = arith.constant dense<0.000000e+00> : vector<256x16xf32>
    %15 = tpu.matmul %12, %14, %cst_10 {dimension_numbers = #tpu.dot_dimension_numbers<[1], [0], [0], [1], [0, 0, 1, 1], [], []>} : vector<256x16xbf16>, vector<16x16xbf16>, vector<256x16xf32> -> vector<256x16xf32>
    %16 = arith.addf %3, %15 : vector<256x16xf32>
    %17 = vector.extract_strided_slice %10 {offsets = [1, 0, 0], sizes = [16, 16, 16], strides = [1, 1, 1]} : vector<18x16x16xbf16> to vector<16x16x16xbf16>
    %18 = vector.shape_cast %17 : vector<16x16x16xbf16> to vector<256x16xbf16>
    %c3 = arith.constant 3 : index
    %c0_11 = arith.constant 0 : index
    %c0_12 = arith.constant 0 : index
    %19 = vector.load %arg2[%c3, %c0_11, %c0_12] : memref<9x16x16xbf16, #tpu.memory_space<vmem>>, vector<1x16x16xbf16>
    %20 = vector.shape_cast %19 : vector<1x16x16xbf16> to vector<16x16xbf16>
    %cst_13 = arith.constant dense<0.000000e+00> : vector<256x16xf32>
    %21 = tpu.matmul %18, %20, %cst_13 {dimension_numbers = #tpu.dot_dimension_numbers<[1], [0], [0], [1], [0, 0, 1, 1], [], []>} : vector<256x16xbf16>, vector<16x16xbf16>, vector<256x16xf32> -> vector<256x16xf32>
    %22 = arith.addf %16, %21 : vector<256x16xf32>
    %23 = vector.extract_strided_slice %10 {offsets = [2, 0, 0], sizes = [16, 16, 16], strides = [1, 1, 1]} : vector<18x16x16xbf16> to vector<16x16x16xbf16>
    %24 = vector.shape_cast %23 : vector<16x16x16xbf16> to vector<256x16xbf16>
    %c6 = arith.constant 6 : index
    %c0_14 = arith.constant 0 : index
    %c0_15 = arith.constant 0 : index
    %25 = vector.load %arg2[%c6, %c0_14, %c0_15] : memref<9x16x16xbf16, #tpu.memory_space<vmem>>, vector<1x16x16xbf16>
    %26 = vector.shape_cast %25 : vector<1x16x16xbf16> to vector<16x16xbf16>
    %cst_16 = arith.constant dense<0.000000e+00> : vector<256x16xf32>
    %27 = tpu.matmul %24, %26, %cst_16 {dimension_numbers = #tpu.dot_dimension_numbers<[1], [0], [0], [1], [0, 0, 1, 1], [], []>} : vector<256x16xbf16>, vector<16x16xbf16>, vector<256x16xf32> -> vector<256x16xf32>
    %28 = arith.addf %22, %27 : vector<256x16xf32>
    %29 = vector.extract_strided_slice %9 {offsets = [0, 1, 0], sizes = [18, 16, 16], strides = [1, 1, 1]} : vector<18x18x16xbf16> to vector<18x16x16xbf16>
    %30 = vector.extract_strided_slice %29 {offsets = [0, 0, 0], sizes = [16, 16, 16], strides = [1, 1, 1]} : vector<18x16x16xbf16> to vector<16x16x16xbf16>
    %31 = vector.shape_cast %30 : vector<16x16x16xbf16> to vector<256x16xbf16>
    %c1 = arith.constant 1 : index
    %c0_17 = arith.constant 0 : index
    %c0_18 = arith.constant 0 : index
    %32 = vector.load %arg2[%c1, %c0_17, %c0_18] : memref<9x16x16xbf16, #tpu.memory_space<vmem>>, vector<1x16x16xbf16>
    %33 = vector.shape_cast %32 : vector<1x16x16xbf16> to vector<16x16xbf16>
    %cst_19 = arith.constant dense<0.000000e+00> : vector<256x16xf32>
    %34 = tpu.matmul %31, %33, %cst_19 {dimension_numbers = #tpu.dot_dimension_numbers<[1], [0], [0], [1], [0, 0, 1, 1], [], []>} : vector<256x16xbf16>, vector<16x16xbf16>, vector<256x16xf32> -> vector<256x16xf32>
    %35 = arith.addf %28, %34 : vector<256x16xf32>
    %36 = vector.extract_strided_slice %29 {offsets = [1, 0, 0], sizes = [16, 16, 16], strides = [1, 1, 1]} : vector<18x16x16xbf16> to vector<16x16x16xbf16>
    %37 = vector.shape_cast %36 : vector<16x16x16xbf16> to vector<256x16xbf16>
    %c4 = arith.constant 4 : index
    %c0_20 = arith.constant 0 : index
    %c0_21 = arith.constant 0 : index
    %38 = vector.load %arg2[%c4, %c0_20, %c0_21] : memref<9x16x16xbf16, #tpu.memory_space<vmem>>, vector<1x16x16xbf16>
    %39 = vector.shape_cast %38 : vector<1x16x16xbf16> to vector<16x16xbf16>
    %cst_22 = arith.constant dense<0.000000e+00> : vector<256x16xf32>
    %40 = tpu.matmul %37, %39, %cst_22 {dimension_numbers = #tpu.dot_dimension_numbers<[1], [0], [0], [1], [0, 0, 1, 1], [], []>} : vector<256x16xbf16>, vector<16x16xbf16>, vector<256x16xf32> -> vector<256x16xf32>
    %41 = arith.addf %35, %40 : vector<256x16xf32>
    %42 = vector.extract_strided_slice %29 {offsets = [2, 0, 0], sizes = [16, 16, 16], strides = [1, 1, 1]} : vector<18x16x16xbf16> to vector<16x16x16xbf16>
    %43 = vector.shape_cast %42 : vector<16x16x16xbf16> to vector<256x16xbf16>
    %c7 = arith.constant 7 : index
    %c0_23 = arith.constant 0 : index
    %c0_24 = arith.constant 0 : index
    %44 = vector.load %arg2[%c7, %c0_23, %c0_24] : memref<9x16x16xbf16, #tpu.memory_space<vmem>>, vector<1x16x16xbf16>
    %45 = vector.shape_cast %44 : vector<1x16x16xbf16> to vector<16x16xbf16>
    %cst_25 = arith.constant dense<0.000000e+00> : vector<256x16xf32>
    %46 = tpu.matmul %43, %45, %cst_25 {dimension_numbers = #tpu.dot_dimension_numbers<[1], [0], [0], [1], [0, 0, 1, 1], [], []>} : vector<256x16xbf16>, vector<16x16xbf16>, vector<256x16xf32> -> vector<256x16xf32>
    %47 = arith.addf %41, %46 : vector<256x16xf32>
    %48 = vector.extract_strided_slice %9 {offsets = [0, 2, 0], sizes = [18, 16, 16], strides = [1, 1, 1]} : vector<18x18x16xbf16> to vector<18x16x16xbf16>
    %49 = vector.extract_strided_slice %48 {offsets = [0, 0, 0], sizes = [16, 16, 16], strides = [1, 1, 1]} : vector<18x16x16xbf16> to vector<16x16x16xbf16>
    %50 = vector.shape_cast %49 : vector<16x16x16xbf16> to vector<256x16xbf16>
    %c2 = arith.constant 2 : index
    %c0_26 = arith.constant 0 : index
    %c0_27 = arith.constant 0 : index
    %51 = vector.load %arg2[%c2, %c0_26, %c0_27] : memref<9x16x16xbf16, #tpu.memory_space<vmem>>, vector<1x16x16xbf16>
    %52 = vector.shape_cast %51 : vector<1x16x16xbf16> to vector<16x16xbf16>
    %cst_28 = arith.constant dense<0.000000e+00> : vector<256x16xf32>
    %53 = tpu.matmul %50, %52, %cst_28 {dimension_numbers = #tpu.dot_dimension_numbers<[1], [0], [0], [1], [0, 0, 1, 1], [], []>} : vector<256x16xbf16>, vector<16x16xbf16>, vector<256x16xf32> -> vector<256x16xf32>
    %54 = arith.addf %47, %53 : vector<256x16xf32>
    %55 = vector.extract_strided_slice %48 {offsets = [1, 0, 0], sizes = [16, 16, 16], strides = [1, 1, 1]} : vector<18x16x16xbf16> to vector<16x16x16xbf16>
    %56 = vector.shape_cast %55 : vector<16x16x16xbf16> to vector<256x16xbf16>
    %c5 = arith.constant 5 : index
    %c0_29 = arith.constant 0 : index
    %c0_30 = arith.constant 0 : index
    %57 = vector.load %arg2[%c5, %c0_29, %c0_30] : memref<9x16x16xbf16, #tpu.memory_space<vmem>>, vector<1x16x16xbf16>
    %58 = vector.shape_cast %57 : vector<1x16x16xbf16> to vector<16x16xbf16>
    %cst_31 = arith.constant dense<0.000000e+00> : vector<256x16xf32>
    %59 = tpu.matmul %56, %58, %cst_31 {dimension_numbers = #tpu.dot_dimension_numbers<[1], [0], [0], [1], [0, 0, 1, 1], [], []>} : vector<256x16xbf16>, vector<16x16xbf16>, vector<256x16xf32> -> vector<256x16xf32>
    %60 = arith.addf %54, %59 : vector<256x16xf32>
    %61 = vector.extract_strided_slice %48 {offsets = [2, 0, 0], sizes = [16, 16, 16], strides = [1, 1, 1]} : vector<18x16x16xbf16> to vector<16x16x16xbf16>
    %62 = vector.shape_cast %61 : vector<16x16x16xbf16> to vector<256x16xbf16>
    %c8 = arith.constant 8 : index
    %c0_32 = arith.constant 0 : index
    %c0_33 = arith.constant 0 : index
    %63 = vector.load %arg2[%c8, %c0_32, %c0_33] : memref<9x16x16xbf16, #tpu.memory_space<vmem>>, vector<1x16x16xbf16>
    %64 = vector.shape_cast %63 : vector<1x16x16xbf16> to vector<16x16xbf16>
    %cst_34 = arith.constant dense<0.000000e+00> : vector<256x16xf32>
    %65 = tpu.matmul %62, %64, %cst_34 {dimension_numbers = #tpu.dot_dimension_numbers<[1], [0], [0], [1], [0, 0, 1, 1], [], []>} : vector<256x16xbf16>, vector<16x16xbf16>, vector<256x16xf32> -> vector<256x16xf32>
    %66 = arith.addf %60, %65 : vector<256x16xf32>
    %cst_35 = arith.constant 0.000000e+00 : f32
    %67 = vector.broadcast %cst_35 : f32 to vector<256x16xf32>
    %68 = arith.cmpf ogt, %66, %67 : vector<256x16xf32>
    %cst_36 = arith.constant 2.000000e-01 : f32
    %69 = vector.broadcast %cst_36 : f32 to vector<256x16xf32>
    %70 = arith.mulf %69, %66 : vector<256x16xf32>
    %71 = arith.select %68, %66, %70 : vector<256x16xi1>, vector<256x16xf32>
    %72 = vector.shape_cast %71 : vector<256x16xf32> to vector<16x16x16xf32>
    %73 = arith.truncf %72 : vector<16x16x16xf32> to vector<16x16x16xbf16>
    %c0_37 = arith.constant 0 : index
    %c0_38 = arith.constant 0 : index
    %c0_39 = arith.constant 0 : index
    %c0_40 = arith.constant 0 : index
    %74 = vector.load %arg4[%c0_37, %c0_38, %c0_39, %c0_40] : memref<1x16x16x16xbf16, #tpu.memory_space<vmem>>, vector<1x16x16x16xbf16>
    %75 = vector.shape_cast %74 : vector<1x16x16x16xbf16> to vector<16x16x16xbf16>
    %76 = vector.shape_cast %73 : vector<16x16x16xbf16> to vector<1x16x16x16xbf16>
    tpu.vector_store %arg4[%c0_37, %c0_38, %c0_39, %c0_40], %76 {strides = array<i32>} : memref<1x16x16x16xbf16, #tpu.memory_space<vmem>>, vector<1x16x16x16xbf16>,
    return
  }
  func.func @transform_0(%arg0: i32) -> (i32, i32, i32, i32) {
    %c0_i32 = arith.constant 0 : i32
    %c0_i32_0 = arith.constant 0 : i32
    %c0_i32_1 = arith.constant 0 : i32
    %c0_i32_2 = arith.constant 0 : i32
    return %arg0, %c0_i32, %c0_i32_0, %c0_i32_1 : i32, i32, i32, i32
  }
  func.func @transform_1(%arg0: i32) -> (i32, i32, i32) {
    %c0_i32 = arith.constant 0 : i32
    %c0_i32_0 = arith.constant 0 : i32
    %c0_i32_1 = arith.constant 0 : i32
    %c0_i32_2 = arith.constant 0 : i32
    return %c0_i32, %c0_i32_0, %c0_i32_1 : i32, i32, i32
  }
  func.func @transform_2(%arg0: i32) -> (i32, i32) {
    %c0_i32 = arith.constant 0 : i32
    %c0_i32_0 = arith.constant 0 : i32
    %c0_i32_1 = arith.constant 0 : i32
    return %c0_i32, %c0_i32_0 : i32, i32
  }
  func.func @transform_3(%arg0: i32) -> (i32, i32, i32, i32) {
    %c0_i32 = arith.constant 0 : i32
    %c0_i32_0 = arith.constant 0 : i32
    %c0_i32_1 = arith.constant 0 : i32
    %c0_i32_2 = arith.constant 0 : i32
    return %arg0, %c0_i32, %c0_i32_0, %c0_i32_1 : i32, i32, i32, i32
  }
}

module attributes {stable_mosaic.version = 11 : i64} {
  func.func @_conv3x3_kernel(%arg0: i32, %arg1: memref<1x16x16x16xbf16, #tpu.memory_space<vmem>>, %arg2: memref<1x16x16x16xbf16, #tpu.memory_space<vmem>>, %arg3: memref<9x16x16xbf16, #tpu.memory_space<vmem>>, %arg4: memref<9x16x16xbf16, #tpu.memory_space<vmem>>, %arg5: memref<1x16xf32, #tpu.memory_space<vmem>>, %arg6: memref<1x16x16x16xbf16, #tpu.memory_space<vmem>>) attributes {dimension_semantics = [#tpu.dimension_semantics<parallel>], iteration_bounds = array<i64: 2>, scalar_prefetch = 0 : i64, scratch_operands = 0 : i64, tpu.core_type = #tpu.core_type<tc>, window_params = [{transform_indices = @transform_0, window_bounds = array<i64: 1, 16, 16, 16>}, {transform_indices = @transform_1, window_bounds = array<i64: 1, 16, 16, 16>}, {pipeline_mode = #tpu.pipeline_mode<synchronous>, transform_indices = @transform_2, window_bounds = array<i64: 9, 16, 16>}, {pipeline_mode = #tpu.pipeline_mode<synchronous>, transform_indices = @transform_3, window_bounds = array<i64: 9, 16, 16>}, {pipeline_mode = #tpu.pipeline_mode<synchronous>, transform_indices = @transform_4, window_bounds = array<i64: 1, 16>}, {transform_indices = @transform_5, window_bounds = array<i64: 1, 16, 16, 16>}]} {
    %cst = arith.constant 0.000000e+00 : f32
    %0 = vector.broadcast %cst : f32 to vector<256x16xf32>
    %c0 = arith.constant 0 : index
    %c0_0 = arith.constant 0 : index
    %1 = vector.load %arg5[%c0, %c0_0] : memref<1x16xf32, #tpu.memory_space<vmem>>, vector<1x16xf32>
    %2 = vector.broadcast %1 : vector<1x16xf32> to vector<256x16xf32>
    %3 = arith.addf %0, %2 : vector<256x16xf32>
    %c0_1 = arith.constant 0 : index
    %c0_2 = arith.constant 0 : index
    %c0_3 = arith.constant 0 : index
    %c0_4 = arith.constant 0 : index
    %4 = vector.load %arg1[%c0_1, %c0_2, %c0_3, %c0_4] : memref<1x16x16x16xbf16, #tpu.memory_space<vmem>>, vector<1x16x16x16xbf16>
    %5 = vector.shape_cast %4 : vector<1x16x16x16xbf16> to vector<16x16x16xbf16>
    %cst_5 = arith.constant 0.000000e+00 : bf16
    %6 = vector.broadcast %cst_5 : bf16 to vector<16x1x16xbf16>
    %7 = tpu.concatenate %6, %5, %6 in 1 : vector<16x1x16xbf16>, vector<16x16x16xbf16>, vector<16x1x16xbf16> -> vector<16x18x16xbf16>
    %cst_6 = arith.constant 0.000000e+00 : bf16
    %8 = vector.broadcast %cst_6 : bf16 to vector<1x18x16xbf16>
    %9 = tpu.concatenate %8, %7, %8 in 0 : vector<1x18x16xbf16>, vector<16x18x16xbf16>, vector<1x18x16xbf16> -> vector<18x18x16xbf16>
    %10 = vector.extract_strided_slice %9 {offsets = [0, 0, 0], sizes = [18, 16, 16], strides = [1, 1, 1]} : vector<18x18x16xbf16> to vector<18x16x16xbf16>
    %11 = vector.extract_strided_slice %10 {offsets = [0, 0, 0], sizes = [16, 16, 16], strides = [1, 1, 1]} : vector<18x16x16xbf16> to vector<16x16x16xbf16>
    %12 = vector.shape_cast %11 : vector<16x16x16xbf16> to vector<256x16xbf16>
    %c0_7 = arith.constant 0 : index
    %c0_8 = arith.constant 0 : index
    %c0_9 = arith.constant 0 : index
    %13 = vector.load %arg3[%c0_7, %c0_8, %c0_9] : memref<9x16x16xbf16, #tpu.memory_space<vmem>>, vector<1x16x16xbf16>
    %14 = vector.shape_cast %13 : vector<1x16x16xbf16> to vector<16x16xbf16>
    %cst_10 = arith.constant dense<0.000000e+00> : vector<256x16xf32>
    %15 = tpu.matmul %12, %14, %cst_10 {dimension_numbers = #tpu.dot_dimension_numbers<[1], [0], [0], [1], [0, 0, 1, 1], [], []>} : vector<256x16xbf16>, vector<16x16xbf16>, vector<256x16xf32> -> vector<256x16xf32>
    %16 = arith.addf %3, %15 : vector<256x16xf32>
    %17 = vector.extract_strided_slice %10 {offsets = [1, 0, 0], sizes = [16, 16, 16], strides = [1, 1, 1]} : vector<18x16x16xbf16> to vector<16x16x16xbf16>
    %18 = vector.shape_cast %17 : vector<16x16x16xbf16> to vector<256x16xbf16>
    %c3 = arith.constant 3 : index
    %c0_11 = arith.constant 0 : index
    %c0_12 = arith.constant 0 : index
    %19 = vector.load %arg3[%c3, %c0_11, %c0_12] : memref<9x16x16xbf16, #tpu.memory_space<vmem>>, vector<1x16x16xbf16>
    %20 = vector.shape_cast %19 : vector<1x16x16xbf16> to vector<16x16xbf16>
    %cst_13 = arith.constant dense<0.000000e+00> : vector<256x16xf32>
    %21 = tpu.matmul %18, %20, %cst_13 {dimension_numbers = #tpu.dot_dimension_numbers<[1], [0], [0], [1], [0, 0, 1, 1], [], []>} : vector<256x16xbf16>, vector<16x16xbf16>, vector<256x16xf32> -> vector<256x16xf32>
    %22 = arith.addf %16, %21 : vector<256x16xf32>
    %23 = vector.extract_strided_slice %10 {offsets = [2, 0, 0], sizes = [16, 16, 16], strides = [1, 1, 1]} : vector<18x16x16xbf16> to vector<16x16x16xbf16>
    %24 = vector.shape_cast %23 : vector<16x16x16xbf16> to vector<256x16xbf16>
    %c6 = arith.constant 6 : index
    %c0_14 = arith.constant 0 : index
    %c0_15 = arith.constant 0 : index
    %25 = vector.load %arg3[%c6, %c0_14, %c0_15] : memref<9x16x16xbf16, #tpu.memory_space<vmem>>, vector<1x16x16xbf16>
    %26 = vector.shape_cast %25 : vector<1x16x16xbf16> to vector<16x16xbf16>
    %cst_16 = arith.constant dense<0.000000e+00> : vector<256x16xf32>
    %27 = tpu.matmul %24, %26, %cst_16 {dimension_numbers = #tpu.dot_dimension_numbers<[1], [0], [0], [1], [0, 0, 1, 1], [], []>} : vector<256x16xbf16>, vector<16x16xbf16>, vector<256x16xf32> -> vector<256x16xf32>
    %28 = arith.addf %22, %27 : vector<256x16xf32>
    %29 = vector.extract_strided_slice %9 {offsets = [0, 1, 0], sizes = [18, 16, 16], strides = [1, 1, 1]} : vector<18x18x16xbf16> to vector<18x16x16xbf16>
    %30 = vector.extract_strided_slice %29 {offsets = [0, 0, 0], sizes = [16, 16, 16], strides = [1, 1, 1]} : vector<18x16x16xbf16> to vector<16x16x16xbf16>
    %31 = vector.shape_cast %30 : vector<16x16x16xbf16> to vector<256x16xbf16>
    %c1 = arith.constant 1 : index
    %c0_17 = arith.constant 0 : index
    %c0_18 = arith.constant 0 : index
    %32 = vector.load %arg3[%c1, %c0_17, %c0_18] : memref<9x16x16xbf16, #tpu.memory_space<vmem>>, vector<1x16x16xbf16>
    %33 = vector.shape_cast %32 : vector<1x16x16xbf16> to vector<16x16xbf16>
    %cst_19 = arith.constant dense<0.000000e+00> : vector<256x16xf32>
    %34 = tpu.matmul %31, %33, %cst_19 {dimension_numbers = #tpu.dot_dimension_numbers<[1], [0], [0], [1], [0, 0, 1, 1], [], []>} : vector<256x16xbf16>, vector<16x16xbf16>, vector<256x16xf32> -> vector<256x16xf32>
    %35 = arith.addf %28, %34 : vector<256x16xf32>
    %36 = vector.extract_strided_slice %29 {offsets = [1, 0, 0], sizes = [16, 16, 16], strides = [1, 1, 1]} : vector<18x16x16xbf16> to vector<16x16x16xbf16>
    %37 = vector.shape_cast %36 : vector<16x16x16xbf16> to vector<256x16xbf16>
    %c4 = arith.constant 4 : index
    %c0_20 = arith.constant 0 : index
    %c0_21 = arith.constant 0 : index
    %38 = vector.load %arg3[%c4, %c0_20, %c0_21] : memref<9x16x16xbf16, #tpu.memory_space<vmem>>, vector<1x16x16xbf16>
    %39 = vector.shape_cast %38 : vector<1x16x16xbf16> to vector<16x16xbf16>
    %cst_22 = arith.constant dense<0.000000e+00> : vector<256x16xf32>
    %40 = tpu.matmul %37, %39, %cst_22 {dimension_numbers = #tpu.dot_dimension_numbers<[1], [0], [0], [1], [0, 0, 1, 1], [], []>} : vector<256x16xbf16>, vector<16x16xbf16>, vector<256x16xf32> -> vector<256x16xf32>
    %41 = arith.addf %35, %40 : vector<256x16xf32>
    %42 = vector.extract_strided_slice %29 {offsets = [2, 0, 0], sizes = [16, 16, 16], strides = [1, 1, 1]} : vector<18x16x16xbf16> to vector<16x16x16xbf16>
    %43 = vector.shape_cast %42 : vector<16x16x16xbf16> to vector<256x16xbf16>
    %c7 = arith.constant 7 : index
    %c0_23 = arith.constant 0 : index
    %c0_24 = arith.constant 0 : index
    %44 = vector.load %arg3[%c7, %c0_23, %c0_24] : memref<9x16x16xbf16, #tpu.memory_space<vmem>>, vector<1x16x16xbf16>
    %45 = vector.shape_cast %44 : vector<1x16x16xbf16> to vector<16x16xbf16>
    %cst_25 = arith.constant dense<0.000000e+00> : vector<256x16xf32>
    %46 = tpu.matmul %43, %45, %cst_25 {dimension_numbers = #tpu.dot_dimension_numbers<[1], [0], [0], [1], [0, 0, 1, 1], [], []>} : vector<256x16xbf16>, vector<16x16xbf16>, vector<256x16xf32> -> vector<256x16xf32>
    %47 = arith.addf %41, %46 : vector<256x16xf32>
    %48 = vector.extract_strided_slice %9 {offsets = [0, 2, 0], sizes = [18, 16, 16], strides = [1, 1, 1]} : vector<18x18x16xbf16> to vector<18x16x16xbf16>
    %49 = vector.extract_strided_slice %48 {offsets = [0, 0, 0], sizes = [16, 16, 16], strides = [1, 1, 1]} : vector<18x16x16xbf16> to vector<16x16x16xbf16>
    %50 = vector.shape_cast %49 : vector<16x16x16xbf16> to vector<256x16xbf16>
    %c2 = arith.constant 2 : index
    %c0_26 = arith.constant 0 : index
    %c0_27 = arith.constant 0 : index
    %51 = vector.load %arg3[%c2, %c0_26, %c0_27] : memref<9x16x16xbf16, #tpu.memory_space<vmem>>, vector<1x16x16xbf16>
    %52 = vector.shape_cast %51 : vector<1x16x16xbf16> to vector<16x16xbf16>
    %cst_28 = arith.constant dense<0.000000e+00> : vector<256x16xf32>
    %53 = tpu.matmul %50, %52, %cst_28 {dimension_numbers = #tpu.dot_dimension_numbers<[1], [0], [0], [1], [0, 0, 1, 1], [], []>} : vector<256x16xbf16>, vector<16x16xbf16>, vector<256x16xf32> -> vector<256x16xf32>
    %54 = arith.addf %47, %53 : vector<256x16xf32>
    %55 = vector.extract_strided_slice %48 {offsets = [1, 0, 0], sizes = [16, 16, 16], strides = [1, 1, 1]} : vector<18x16x16xbf16> to vector<16x16x16xbf16>
    %56 = vector.shape_cast %55 : vector<16x16x16xbf16> to vector<256x16xbf16>
    %c5 = arith.constant 5 : index
    %c0_29 = arith.constant 0 : index
    %c0_30 = arith.constant 0 : index
    %57 = vector.load %arg3[%c5, %c0_29, %c0_30] : memref<9x16x16xbf16, #tpu.memory_space<vmem>>, vector<1x16x16xbf16>
    %58 = vector.shape_cast %57 : vector<1x16x16xbf16> to vector<16x16xbf16>
    %cst_31 = arith.constant dense<0.000000e+00> : vector<256x16xf32>
    %59 = tpu.matmul %56, %58, %cst_31 {dimension_numbers = #tpu.dot_dimension_numbers<[1], [0], [0], [1], [0, 0, 1, 1], [], []>} : vector<256x16xbf16>, vector<16x16xbf16>, vector<256x16xf32> -> vector<256x16xf32>
    %60 = arith.addf %54, %59 : vector<256x16xf32>
    %61 = vector.extract_strided_slice %48 {offsets = [2, 0, 0], sizes = [16, 16, 16], strides = [1, 1, 1]} : vector<18x16x16xbf16> to vector<16x16x16xbf16>
    %62 = vector.shape_cast %61 : vector<16x16x16xbf16> to vector<256x16xbf16>
    %c8 = arith.constant 8 : index
    %c0_32 = arith.constant 0 : index
    %c0_33 = arith.constant 0 : index
    %63 = vector.load %arg3[%c8, %c0_32, %c0_33] : memref<9x16x16xbf16, #tpu.memory_space<vmem>>, vector<1x16x16xbf16>
    %64 = vector.shape_cast %63 : vector<1x16x16xbf16> to vector<16x16xbf16>
    %cst_34 = arith.constant dense<0.000000e+00> : vector<256x16xf32>
    %65 = tpu.matmul %62, %64, %cst_34 {dimension_numbers = #tpu.dot_dimension_numbers<[1], [0], [0], [1], [0, 0, 1, 1], [], []>} : vector<256x16xbf16>, vector<16x16xbf16>, vector<256x16xf32> -> vector<256x16xf32>
    %66 = arith.addf %60, %65 : vector<256x16xf32>
    %c0_35 = arith.constant 0 : index
    %c0_36 = arith.constant 0 : index
    %c0_37 = arith.constant 0 : index
    %c0_38 = arith.constant 0 : index
    %67 = vector.load %arg2[%c0_35, %c0_36, %c0_37, %c0_38] : memref<1x16x16x16xbf16, #tpu.memory_space<vmem>>, vector<1x16x16x16xbf16>
    %68 = vector.shape_cast %67 : vector<1x16x16x16xbf16> to vector<16x16x16xbf16>
    %cst_39 = arith.constant 0.000000e+00 : bf16
    %69 = vector.broadcast %cst_39 : bf16 to vector<16x1x16xbf16>
    %70 = tpu.concatenate %69, %68, %69 in 1 : vector<16x1x16xbf16>, vector<16x16x16xbf16>, vector<16x1x16xbf16> -> vector<16x18x16xbf16>
    %cst_40 = arith.constant 0.000000e+00 : bf16
    %71 = vector.broadcast %cst_40 : bf16 to vector<1x18x16xbf16>
    %72 = tpu.concatenate %71, %70, %71 in 0 : vector<1x18x16xbf16>, vector<16x18x16xbf16>, vector<1x18x16xbf16> -> vector<18x18x16xbf16>
    %73 = vector.extract_strided_slice %72 {offsets = [0, 0, 0], sizes = [18, 16, 16], strides = [1, 1, 1]} : vector<18x18x16xbf16> to vector<18x16x16xbf16>
    %74 = vector.extract_strided_slice %73 {offsets = [0, 0, 0], sizes = [16, 16, 16], strides = [1, 1, 1]} : vector<18x16x16xbf16> to vector<16x16x16xbf16>
    %75 = vector.shape_cast %74 : vector<16x16x16xbf16> to vector<256x16xbf16>
    %c0_41 = arith.constant 0 : index
    %c0_42 = arith.constant 0 : index
    %c0_43 = arith.constant 0 : index
    %76 = vector.load %arg4[%c0_41, %c0_42, %c0_43] : memref<9x16x16xbf16, #tpu.memory_space<vmem>>, vector<1x16x16xbf16>
    %77 = vector.shape_cast %76 : vector<1x16x16xbf16> to vector<16x16xbf16>
    %cst_44 = arith.constant dense<0.000000e+00> : vector<256x16xf32>
    %78 = tpu.matmul %75, %77, %cst_44 {dimension_numbers = #tpu.dot_dimension_numbers<[1], [0], [0], [1], [0, 0, 1, 1], [], []>} : vector<256x16xbf16>, vector<16x16xbf16>, vector<256x16xf32> -> vector<256x16xf32>
    %79 = arith.addf %66, %78 : vector<256x16xf32>
    %80 = vector.extract_strided_slice %73 {offsets = [1, 0, 0], sizes = [16, 16, 16], strides = [1, 1, 1]} : vector<18x16x16xbf16> to vector<16x16x16xbf16>
    %81 = vector.shape_cast %80 : vector<16x16x16xbf16> to vector<256x16xbf16>
    %c3_45 = arith.constant 3 : index
    %c0_46 = arith.constant 0 : index
    %c0_47 = arith.constant 0 : index
    %82 = vector.load %arg4[%c3_45, %c0_46, %c0_47] : memref<9x16x16xbf16, #tpu.memory_space<vmem>>, vector<1x16x16xbf16>
    %83 = vector.shape_cast %82 : vector<1x16x16xbf16> to vector<16x16xbf16>
    %cst_48 = arith.constant dense<0.000000e+00> : vector<256x16xf32>
    %84 = tpu.matmul %81, %83, %cst_48 {dimension_numbers = #tpu.dot_dimension_numbers<[1], [0], [0], [1], [0, 0, 1, 1], [], []>} : vector<256x16xbf16>, vector<16x16xbf16>, vector<256x16xf32> -> vector<256x16xf32>
    %85 = arith.addf %79, %84 : vector<256x16xf32>
    %86 = vector.extract_strided_slice %73 {offsets = [2, 0, 0], sizes = [16, 16, 16], strides = [1, 1, 1]} : vector<18x16x16xbf16> to vector<16x16x16xbf16>
    %87 = vector.shape_cast %86 : vector<16x16x16xbf16> to vector<256x16xbf16>
    %c6_49 = arith.constant 6 : index
    %c0_50 = arith.constant 0 : index
    %c0_51 = arith.constant 0 : index
    %88 = vector.load %arg4[%c6_49, %c0_50, %c0_51] : memref<9x16x16xbf16, #tpu.memory_space<vmem>>, vector<1x16x16xbf16>
    %89 = vector.shape_cast %88 : vector<1x16x16xbf16> to vector<16x16xbf16>
    %cst_52 = arith.constant dense<0.000000e+00> : vector<256x16xf32>
    %90 = tpu.matmul %87, %89, %cst_52 {dimension_numbers = #tpu.dot_dimension_numbers<[1], [0], [0], [1], [0, 0, 1, 1], [], []>} : vector<256x16xbf16>, vector<16x16xbf16>, vector<256x16xf32> -> vector<256x16xf32>
    %91 = arith.addf %85, %90 : vector<256x16xf32>
    %92 = vector.extract_strided_slice %72 {offsets = [0, 1, 0], sizes = [18, 16, 16], strides = [1, 1, 1]} : vector<18x18x16xbf16> to vector<18x16x16xbf16>
    %93 = vector.extract_strided_slice %92 {offsets = [0, 0, 0], sizes = [16, 16, 16], strides = [1, 1, 1]} : vector<18x16x16xbf16> to vector<16x16x16xbf16>
    %94 = vector.shape_cast %93 : vector<16x16x16xbf16> to vector<256x16xbf16>
    %c1_53 = arith.constant 1 : index
    %c0_54 = arith.constant 0 : index
    %c0_55 = arith.constant 0 : index
    %95 = vector.load %arg4[%c1_53, %c0_54, %c0_55] : memref<9x16x16xbf16, #tpu.memory_space<vmem>>, vector<1x16x16xbf16>
    %96 = vector.shape_cast %95 : vector<1x16x16xbf16> to vector<16x16xbf16>
    %cst_56 = arith.constant dense<0.000000e+00> : vector<256x16xf32>
    %97 = tpu.matmul %94, %96, %cst_56 {dimension_numbers = #tpu.dot_dimension_numbers<[1], [0], [0], [1], [0, 0, 1, 1], [], []>} : vector<256x16xbf16>, vector<16x16xbf16>, vector<256x16xf32> -> vector<256x16xf32>
    %98 = arith.addf %91, %97 : vector<256x16xf32>
    %99 = vector.extract_strided_slice %92 {offsets = [1, 0, 0], sizes = [16, 16, 16], strides = [1, 1, 1]} : vector<18x16x16xbf16> to vector<16x16x16xbf16>
    %100 = vector.shape_cast %99 : vector<16x16x16xbf16> to vector<256x16xbf16>
    %c4_57 = arith.constant 4 : index
    %c0_58 = arith.constant 0 : index
    %c0_59 = arith.constant 0 : index
    %101 = vector.load %arg4[%c4_57, %c0_58, %c0_59] : memref<9x16x16xbf16, #tpu.memory_space<vmem>>, vector<1x16x16xbf16>
    %102 = vector.shape_cast %101 : vector<1x16x16xbf16> to vector<16x16xbf16>
    %cst_60 = arith.constant dense<0.000000e+00> : vector<256x16xf32>
    %103 = tpu.matmul %100, %102, %cst_60 {dimension_numbers = #tpu.dot_dimension_numbers<[1], [0], [0], [1], [0, 0, 1, 1], [], []>} : vector<256x16xbf16>, vector<16x16xbf16>, vector<256x16xf32> -> vector<256x16xf32>
    %104 = arith.addf %98, %103 : vector<256x16xf32>
    %105 = vector.extract_strided_slice %92 {offsets = [2, 0, 0], sizes = [16, 16, 16], strides = [1, 1, 1]} : vector<18x16x16xbf16> to vector<16x16x16xbf16>
    %106 = vector.shape_cast %105 : vector<16x16x16xbf16> to vector<256x16xbf16>
    %c7_61 = arith.constant 7 : index
    %c0_62 = arith.constant 0 : index
    %c0_63 = arith.constant 0 : index
    %107 = vector.load %arg4[%c7_61, %c0_62, %c0_63] : memref<9x16x16xbf16, #tpu.memory_space<vmem>>, vector<1x16x16xbf16>
    %108 = vector.shape_cast %107 : vector<1x16x16xbf16> to vector<16x16xbf16>
    %cst_64 = arith.constant dense<0.000000e+00> : vector<256x16xf32>
    %109 = tpu.matmul %106, %108, %cst_64 {dimension_numbers = #tpu.dot_dimension_numbers<[1], [0], [0], [1], [0, 0, 1, 1], [], []>} : vector<256x16xbf16>, vector<16x16xbf16>, vector<256x16xf32> -> vector<256x16xf32>
    %110 = arith.addf %104, %109 : vector<256x16xf32>
    %111 = vector.extract_strided_slice %72 {offsets = [0, 2, 0], sizes = [18, 16, 16], strides = [1, 1, 1]} : vector<18x18x16xbf16> to vector<18x16x16xbf16>
    %112 = vector.extract_strided_slice %111 {offsets = [0, 0, 0], sizes = [16, 16, 16], strides = [1, 1, 1]} : vector<18x16x16xbf16> to vector<16x16x16xbf16>
    %113 = vector.shape_cast %112 : vector<16x16x16xbf16> to vector<256x16xbf16>
    %c2_65 = arith.constant 2 : index
    %c0_66 = arith.constant 0 : index
    %c0_67 = arith.constant 0 : index
    %114 = vector.load %arg4[%c2_65, %c0_66, %c0_67] : memref<9x16x16xbf16, #tpu.memory_space<vmem>>, vector<1x16x16xbf16>
    %115 = vector.shape_cast %114 : vector<1x16x16xbf16> to vector<16x16xbf16>
    %cst_68 = arith.constant dense<0.000000e+00> : vector<256x16xf32>
    %116 = tpu.matmul %113, %115, %cst_68 {dimension_numbers = #tpu.dot_dimension_numbers<[1], [0], [0], [1], [0, 0, 1, 1], [], []>} : vector<256x16xbf16>, vector<16x16xbf16>, vector<256x16xf32> -> vector<256x16xf32>
    %117 = arith.addf %110, %116 : vector<256x16xf32>
    %118 = vector.extract_strided_slice %111 {offsets = [1, 0, 0], sizes = [16, 16, 16], strides = [1, 1, 1]} : vector<18x16x16xbf16> to vector<16x16x16xbf16>
    %119 = vector.shape_cast %118 : vector<16x16x16xbf16> to vector<256x16xbf16>
    %c5_69 = arith.constant 5 : index
    %c0_70 = arith.constant 0 : index
    %c0_71 = arith.constant 0 : index
    %120 = vector.load %arg4[%c5_69, %c0_70, %c0_71] : memref<9x16x16xbf16, #tpu.memory_space<vmem>>, vector<1x16x16xbf16>
    %121 = vector.shape_cast %120 : vector<1x16x16xbf16> to vector<16x16xbf16>
    %cst_72 = arith.constant dense<0.000000e+00> : vector<256x16xf32>
    %122 = tpu.matmul %119, %121, %cst_72 {dimension_numbers = #tpu.dot_dimension_numbers<[1], [0], [0], [1], [0, 0, 1, 1], [], []>} : vector<256x16xbf16>, vector<16x16xbf16>, vector<256x16xf32> -> vector<256x16xf32>
    %123 = arith.addf %117, %122 : vector<256x16xf32>
    %124 = vector.extract_strided_slice %111 {offsets = [2, 0, 0], sizes = [16, 16, 16], strides = [1, 1, 1]} : vector<18x16x16xbf16> to vector<16x16x16xbf16>
    %125 = vector.shape_cast %124 : vector<16x16x16xbf16> to vector<256x16xbf16>
    %c8_73 = arith.constant 8 : index
    %c0_74 = arith.constant 0 : index
    %c0_75 = arith.constant 0 : index
    %126 = vector.load %arg4[%c8_73, %c0_74, %c0_75] : memref<9x16x16xbf16, #tpu.memory_space<vmem>>, vector<1x16x16xbf16>
    %127 = vector.shape_cast %126 : vector<1x16x16xbf16> to vector<16x16xbf16>
    %cst_76 = arith.constant dense<0.000000e+00> : vector<256x16xf32>
    %128 = tpu.matmul %125, %127, %cst_76 {dimension_numbers = #tpu.dot_dimension_numbers<[1], [0], [0], [1], [0, 0, 1, 1], [], []>} : vector<256x16xbf16>, vector<16x16xbf16>, vector<256x16xf32> -> vector<256x16xf32>
    %129 = arith.addf %123, %128 : vector<256x16xf32>
    %cst_77 = arith.constant 0.000000e+00 : f32
    %130 = vector.broadcast %cst_77 : f32 to vector<256x16xf32>
    %131 = arith.cmpf ogt, %129, %130 : vector<256x16xf32>
    %cst_78 = arith.constant 2.000000e-01 : f32
    %132 = vector.broadcast %cst_78 : f32 to vector<256x16xf32>
    %133 = arith.mulf %132, %129 : vector<256x16xf32>
    %134 = arith.select %131, %129, %133 : vector<256x16xi1>, vector<256x16xf32>
    %135 = vector.shape_cast %134 : vector<256x16xf32> to vector<16x16x16xf32>
    %136 = arith.truncf %135 : vector<16x16x16xf32> to vector<16x16x16xbf16>
    %c0_79 = arith.constant 0 : index
    %c0_80 = arith.constant 0 : index
    %c0_81 = arith.constant 0 : index
    %c0_82 = arith.constant 0 : index
    %137 = vector.load %arg6[%c0_79, %c0_80, %c0_81, %c0_82] : memref<1x16x16x16xbf16, #tpu.memory_space<vmem>>, vector<1x16x16x16xbf16>
    %138 = vector.shape_cast %137 : vector<1x16x16x16xbf16> to vector<16x16x16xbf16>
    %139 = vector.shape_cast %136 : vector<16x16x16xbf16> to vector<1x16x16x16xbf16>
    tpu.vector_store %arg6[%c0_79, %c0_80, %c0_81, %c0_82], %139 {strides = array<i32>} : memref<1x16x16x16xbf16, #tpu.memory_space<vmem>>, vector<1x16x16x16xbf16>,
    return
  }
  func.func @transform_0(%arg0: i32) -> (i32, i32, i32, i32) {
    %c0_i32 = arith.constant 0 : i32
    %c0_i32_0 = arith.constant 0 : i32
    %c0_i32_1 = arith.constant 0 : i32
    %c0_i32_2 = arith.constant 0 : i32
    return %arg0, %c0_i32, %c0_i32_0, %c0_i32_1 : i32, i32, i32, i32
  }
  func.func @transform_1(%arg0: i32) -> (i32, i32, i32, i32) {
    %c0_i32 = arith.constant 0 : i32
    %c0_i32_0 = arith.constant 0 : i32
    %c0_i32_1 = arith.constant 0 : i32
    %c0_i32_2 = arith.constant 0 : i32
    return %arg0, %c0_i32, %c0_i32_0, %c0_i32_1 : i32, i32, i32, i32
  }
  func.func @transform_2(%arg0: i32) -> (i32, i32, i32) {
    %c0_i32 = arith.constant 0 : i32
    %c0_i32_0 = arith.constant 0 : i32
    %c0_i32_1 = arith.constant 0 : i32
    %c0_i32_2 = arith.constant 0 : i32
    return %c0_i32, %c0_i32_0, %c0_i32_1 : i32, i32, i32
  }
  func.func @transform_3(%arg0: i32) -> (i32, i32, i32) {
    %c0_i32 = arith.constant 0 : i32
    %c0_i32_0 = arith.constant 0 : i32
    %c0_i32_1 = arith.constant 0 : i32
    %c0_i32_2 = arith.constant 0 : i32
    return %c0_i32, %c0_i32_0, %c0_i32_1 : i32, i32, i32
  }
  func.func @transform_4(%arg0: i32) -> (i32, i32) {
    %c0_i32 = arith.constant 0 : i32
    %c0_i32_0 = arith.constant 0 : i32
    %c0_i32_1 = arith.constant 0 : i32
    return %c0_i32, %c0_i32_0 : i32, i32
  }
  func.func @transform_5(%arg0: i32) -> (i32, i32, i32, i32) {
    %c0_i32 = arith.constant 0 : i32
    %c0_i32_0 = arith.constant 0 : i32
    %c0_i32_1 = arith.constant 0 : i32
    %c0_i32_2 = arith.constant 0 : i32
    return %arg0, %c0_i32, %c0_i32_0, %c0_i32_1 : i32, i32, i32, i32
  }
}

</mosaic_0001>

<bundles_post_ra>
// kernel: upblock_forward.5
= control target key start
LH: loop header
LB: loop body
LE: loop exit
PB: predicated region body
PF: predicated region fallthrough
CT: control target
= control target key end

     0   :  { %8 = vsyncpa [#allocation3], 0  ;;  %s3057_s12 = smov 0   ;;  %s3721_s0 = inlined_call_operand.vmem [shape: bf16[2,8,8,32], index: 0, kind: input, shape index: {}]   ;;  %s3722_s1 = inlined_call_operand.hbm [shape: bf16[16,32,16], index: 1, kind: input, shape index: {}]   ;;  %s3723_s2 = inlined_call_operand.vmem [shape: f32[1,16], index: 2, kind: input, shape index: {}]   ;;  %s3724_s3 = inlined_call_operand.vmem [shape: bf16[2,8,2,8,32], index: 3, kind: output, shape index: {}]  }
   0x1 LB: > { %s3063_s13 = sadd.s32 4294967295, %s3030_s12   ;;  %p2332_p0 = scmp.ge.s32.totalorder %s3030_s12, 1  ;;  %s3030_s12 = sphi %s3057_s12, %s14_s12  }
   0x2   : > { %p113_p1 = scmp.lt.s32.totalorder %s3030_s12, 3  ;;  %s3032_s14 = smov [#allocation2]  }
   0x3   : > { %s125_s15 = sshll.u32 %s3032_s14, 4  ;;  %p3725_p3 = scmp.eq.s32.totalorder %s3063_s13, 0  ;;  %s126_s15 = int_to_ptr.vmem [resolvable:$true] %s125_s15 }
   0x4   : > { %p3067_p2 = pnand %p2332_p0, %p113_p1  ;;  %s2992_s20 = scalar_lea.hbm %s3722_s1, 4096 }
   0x5   : > { %p2993_p6 = scmp.ne.s32.totalorder %s3722_s1, %s2992_s20  ;;  %p2999_p10 = scmp.lt.u32.totalorder %s2992_s20, %s3722_s1 }
   0x6   : > { %s3727_s16 = scalar_select %p3067_p2, 1, 0 }
   0x7   : > { %p2933_p4 = pneg %p3067_p2 }
   0x9   : > { %p3076_p5 = pnand %p3725_p3, %p2933_p4 }
   0xb   : > { %p2994_p7 = pneg %p3076_p5 }
   0xd   : > { %p2995_p8 = pnand %p2994_p7, %p2993_p6 }
   0xf   : > { %p2996_p9 = pneg %p2995_p8 }
  0x11   : > { %p3001_p11 = pnand %p2999_p10, %p2996_p9 }
  0x13   : > { %3004 = shalt.err (!%p3001_p11)
}
  0x14   : > { %s3005_s25 = scalar_lea.vmem %s126_s15, 4096  ;;  %p3013_p1 = scmp.lt.s32.totalorder %s126_s15, %s126_s15 }
  0x15   : > { %p3006_p12 = scmp.ne.s32.totalorder %s126_s15, %s3005_s25  ;;  %p3014_p4 = scmp.lt.s32.totalorder %s3005_s25, %s3005_s25 }
  0x17   : > { %p3008_p13 = pnand %p3006_p12, %p2994_p7  ;;  %p3015_p3 = por %p3014_p4, %p3013_p1 }
  0x19   : > { %p3009_p0 = pneg %p3008_p13 }
  0x1b   : > { %p3016_p2 = pnand %p3015_p3, %p3009_p0 }
  0x1d   : > { %3019 = shalt.err (!%p3016_p2)
}
  0x1e   : > { %s3033_s26 = smov 64   ;;  %s3034_s27 = smov 4  }
  0x1f   : > { %2936 = dma.hbm_to_vmem [thread:$0]  (!%p3076_p5), %s3722_s1, 4096, %s126_s15, [#allocation3], %s3033_s26, %s3033_s26, %s3034_s27  }
  0x20   : > { %p3729_p6 = scmp.ne.s32.totalorder %s3727_s16, 0 }
  0x21   : > { %p3730_p8 = scmp.eq.s32.totalorder (!%p3729_p6), %s3063_s13, 0 }
  0x22   : > { %152 = sbr.rel (%p3729_p6) target bundleno = 545 (0x221), region = 32 }
  0x29   : > { %3025 = dma.done.wait (%p3730_p8), [#allocation3], 4096   ;;  %p3731_p7 = pmov %p3730_p8 }
  0x2a   : > { %p176_p2 = scmp.lt.s32.totalorder %s3063_s13, 1  ;;  %v3035_v0 = vmov 0   ;;  %vm283_vm0 = vcmask 1040384   ;;  %vm284_vm1 = vsmask.f32 256  ;;  %vm294_vm2 = vcmask 1044480  }
  0x2b   : > { %3027 = vsyncadd (%p3731_p7), [#allocation3], 4294963200  ;;  %v3108_v1 = vcombine.low %v3035_v0, %v3035_v0  ;;  %vm295_vm3 = vsmask.f32 4352  ;;  %v2952_v3 = vld [vmem:[#allocation2 + $0x40] sm:$0xff]   ;;  %v2953_v5 = vld [vmem:[#allocation2 + $0x48] sm:$0xff]   ;;  %v3126_v13 = vcombine.high %v3035_v0, %v3035_v0 }
  0x2c   : > { %s3741_s13 = smov (!%p176_p2, %s3063_s13), 1  ;;  %2657 = vmatprep.subr.bf16.mxu1 %v2952_v3  ;;  %v3128_v25 = vld [vmem:[#allocation2 + $0x50] sm:$0xff]   ;;  %vm3132_vm4 = vmand %vm283_vm0, %vm284_vm1  ;;  %vm459_vm6 = vsmask.f32 3328  ;;  %vm460_vm7 = vsmask.f32 7440 }
  0x2d   : > { %v463_v2 = vshrl.u32 %v3108_v1, 16  ;;  %s2511_s30 = sshll.u32 %s3741_s13, 5  ;;  %v466_v4 = vshll.u32 %v3108_v1, 16  ;;  %2658 = vmatpush3.bf16.msra.mxu1 %v2952_v3  ;;  %vm3138_vm5 = vmand %vm294_vm2, %vm295_vm3  ;;  %v472_v37 = vshll.u32 %v3126_v13, 16  ;;  %vm349_vm9 = vcmask 261120   ;;  %s3036_s9 = smov 16  }
  0x2e   : > { %s3116_s6 = scalar_lea.vmem %s3721_s0, %s2511_s30  ;;  %2659 = vmatprep.subr.bf16.mxu1 %v2953_v5  ;;  %vm3199_vm8 = vmor %vm459_vm6, %vm460_vm7  ;;  %vm1018_vm10 = vcmask 1042432   ;;  %vm1019_vm11 = vcmask 1046532   ;;  %s2512_s10 = sshll.u32 %s3741_s13, 6  ;;  %vm1400_vm13 = vcmask 130048   ;;  %vm1433_vm14 = vcmask 257024  }
  0x2f   : > { %v465_v6 = vrot.slane %v463_v2, 4  ;;  %v2954_v7 = vld [vmem:[%s3116_s6] ss:$0 sps:$4 sm:$0xff]   ;;  %v2955_v8 = vld [vmem:[%s3116_s6 + $0x4] ss:$0 sps:$4 sm:$0xff]   ;;  %v468_v21 = vrot.slane %v466_v4, 5  ;;  %vm3295_vm12 = vmor %vm1018_vm10, %vm1019_vm11  ;;  %s3640_s15 = scalar_lea.vmem %s3724_s3, %s2512_s10 }
  0x30   : > { %v2956_v9 = vld [vmem:[%s3116_s6 + $0x8] ss:$0 sps:$4 sm:$0xff]   ;;  %v2957_v10 = vld [vmem:[%s3116_s6 + $0xc] ss:$0 sps:$4 sm:$0xff]   ;;  %v2958_v11 = vld [vmem:[%s3116_s6 + $0x18] ss:$0 sps:$4 sm:$0xff]  }
  0x31   : > { %v2959_v12 = vld [vmem:[%s3116_s6 + $0x1c] ss:$0 sps:$4 sm:$0xff]   ;;  %v220_v14 = vshrl.u32 %v2954_v7, 16  ;;  %v223_v15 = vshll.u32 %v2954_v7, 16  ;;  %v227_v16 = vshrl.u32 %v2955_v8, 16  ;;  %v230_v17 = vshll.u32 %v2955_v8, 16  ;;  %2660 = vmatpush3.bf16.msra.mxu1 %v2953_v5 }
  0x32   : > { %v234_v18 = vshrl.u32 %v2956_v9, 16  ;;  %v237_v19 = vshll.u32 %v2956_v9, 16  ;;  %v241_v20 = vshrl.u32 %v2957_v10, 16  ;;  %v262_v24 = vshrl.u32 %v2958_v11, 16  ;;  %2669 = vmatprep.subr.bf16.mxu1 %v3128_v25  ;;  %v2978_v5 = vld [vmem:[#allocation2 + $0x20] sm:$0xff]  }
  0x33   : > { %v222_v22 = vrot.slane %v220_v14, 7  ;;  %v229_v23 = vrot.slane %v227_v16, 7  ;;  %v244_v28 = vshll.u32 %v2957_v10, 16  ;;  %v269_v29 = vshrl.u32 %v2959_v12, 16  ;;  %v2970_v14 = vld [vmem:[#allocation2] sm:$0xff]  }
  0x34   : > { %v236_v26 = vrot.slane %v234_v18, 7  ;;  %v243_v27 = vrot.slane %v241_v20, 7  ;;  %v265_v35 = vshll.u32 %v2958_v11, 16  ;;  %v469_v36 = vor.u32 %v468_v21, %v465_v6  ;;  %2609 = vmatprep.subr.bf16.mxu0 %v2970_v14 }
  0x35   : > { %v225_v31 = vor.u32 %v223_v15, %v222_v22  ;;  %v232_v32 = vor.u32 %v230_v17, %v229_v23  ;;  %v264_v38 = vrot.slane %v262_v24, 7  ;;  %v272_v39 = vshll.u32 %v2959_v12, 16  ;;  %v2972_v22 = vld [vmem:[#allocation2 + $0x8] sm:$0xff]   ;;  %2610 = vmatpush3.bf16.msra.mxu0 %v2970_v14 }
  0x36   : > { %v239_v34 = vor.u32 %v237_v19, %v236_v26  ;;  %v246_v42 = vor.u32 %v244_v28, %v243_v27  ;;  %v271_v43 = vrot.slane %v269_v29, 7  ;;  %v474_v50 = vrot.slane %v472_v37, 5  ;;  %2611 = vmatprep.subr.bf16.mxu0 %v2972_v22 }
  0x37   : > { %v286_v40 = vsel %vm3132_vm4, 0, %v225_v31  ;;  %v287_v41 = vsel %vm3132_vm4, 0, %v232_v32  ;;  %v267_v51 = vor.u32 %v265_v35, %v264_v38  ;;  %v470_v57 = vrot.slane %v469_v36, 4  ;;  %v3227_v35 = vld [vmem:[#allocation2 + $0x10] sm:$0xff]  }
  0x38   : > { %v288_v44 = vsel %vm3132_vm4, 0, %v239_v34  ;;  %v3152_v45 = vsel %vm3138_vm5, %v286_v40, 0  ;;  %v3156_v46 = vsel %vm3138_vm5, %v287_v41, 0  ;;  %v274_v55 = vor.u32 %v272_v39, %v271_v43  ;;  %v2962_v39 = vld [vmem:[#allocation2 + $0x58] sm:$0xff]  }
  0x39   : > { %v3160_v47 = vsel %vm3138_vm5, %v288_v44, 0  ;;  %v3164_v48 = vcombine.low %v3152_v45, %v3152_v45  ;;  %v3168_v49 = vcombine.high %v3152_v45, %v3152_v45  ;;  %v3172_v52 = vcombine.low %v3156_v46, %v3156_v46  ;;  %v2961_v44 = vld [vmem:[%s3116_s6 + $0x10] ss:$0 sps:$4 sm:$0xff]   ;;  %2612 = vmatpush3.bf16.msra.mxu0 %v2972_v22 }
  0x3a   : > { %v3176_v53 = vcombine.high %v3156_v46, %v3156_v46  ;;  %v3180_v54 = vcombine.low %v3160_v47, %v3160_v47  ;;  %v289_v56 = vsel %vm3132_vm4, 0, %v246_v42  ;;  %v3186_v58 = vcombine.high %v3160_v47, %v3160_v47  ;;  %2621 = vmatprep.subr.bf16.mxu0 %v3227_v35 }
  0x3b   : > { %v477_v59 = vshrl.u32 %v3164_v48, 16  ;;  %v480_v60 = vshll.u32 %v3164_v48, 16  ;;  %v486_v61 = vshll.u32 %v3168_v49, 16  ;;  %v491_v62 = vshrl.u32 %v3172_v52, 16 }
  0x3c   : > { %v494_v63 = vshll.u32 %v3172_v52, 16  ;;  %v500_v2 = vshll.u32 %v3176_v53, 16  ;;  %v505_v3 = vshrl.u32 %v3180_v54, 16  ;;  %v292_v4 = vsel %vm3132_vm4, 0, %v267_v51 }
  0x3d   : > { %v479_v6 = vrot.slane %v477_v59, 4  ;;  %v482_v7 = vrot.slane %v480_v60, 5  ;;  %v508_v8 = vshll.u32 %v3180_v54, 16  ;;  %v293_v9 = vsel %vm3132_vm4, 0, %v274_v55 }
  0x3e   : > { %v493_v10 = vrot.slane %v491_v62, 4  ;;  %v496_v11 = vrot.slane %v494_v63, 5  ;;  %v507_v12 = vrot.slane %v505_v3, 4  ;;  %v488_v16 = vrot.slane %v486_v61, 5 }
  0x3f   : > { %v483_v15 = vor.u32 %v482_v7, %v479_v6  ;;  %v510_v17 = vrot.slane %v508_v8, 5  ;;  %v514_v18 = vshll.u32 %v3186_v58, 16  ;;  %v3209_v19 = vsel %vm3199_vm8, %v470_v57, %v474_v50 }
  0x40   : > { %v497_v20 = vor.u32 %v496_v11, %v493_v10  ;;  %v502_v21 = vrot.slane %v500_v2, 5  ;;  %v3213_v23 = vsel %vm3138_vm5, %v293_v9, 0  ;;  %v3217_v28 = vsel %vm3138_vm5, %v289_v56, 0  ;;  %v2963_v56 = vld [vmem:[%s3116_s6 + $0x14] ss:$0 sps:$4 sm:$0xff]   ;;  %v3280_v9 = vld [vmem:[#allocation2 + $0x60] sm:$0xff]  }
  0x41   : > { %v484_v24 = vrot.slane %v483_v15, 4  ;;  %v511_v26 = vor.u32 %v510_v17, %v507_v12  ;;  %v516_v27 = vrot.slane %v514_v18, 5  ;;  %v3221_v29 = vsel %vm3138_vm5, %v292_v4, 0 }
  0x42   : > { %v498_v31 = vrot.slane %v497_v20, 4  ;;  %v3239_v38 = vcombine.low %v3213_v23, %v3213_v23  ;;  %v3243_v40 = vcombine.low %v3217_v28, %v3217_v28  ;;  %v3247_v41 = vcombine.low %v3221_v29, %v3221_v29 }
  0x43   : > { %v3225_v32 = vsel %vm3199_vm8, %v484_v24, %v488_v16  ;;  %v512_v34 = vrot.slane %v511_v26, 4  ;;  %v3255_v43 = vcombine.high %v3213_v23, %v3213_v23  ;;  %v3271_v59 = vcombine.high %v3217_v28, %v3217_v28 }
  0x44   : > { %v3231_v36 = vsel %vm3199_vm8, %v498_v31, %v502_v21  ;;  %v3235_v37 = vcombine.low %v3209_v19, %v3225_v32  ;;  %v800_v51 = vshrl.u32 %v3239_v38, 16  ;;  %v803_v55 = vshll.u32 %v3239_v38, 16 }
  0x45   : > { %v3251_v42 = vsel %vm3199_vm8, %v512_v34, %v516_v27  ;;  %v809_v57 = vshll.u32 %v3255_v43, 16  ;;  %v519_v62 = vshrl.u32 %v3243_v40, 16  ;;  %v522_v63 = vshll.u32 %v3243_v40, 16 }
  0x46   : > { %v3260_v50 = vcombine.low %v3231_v36, %v3251_v42  ;;  %2661 = vmatprep.mubr.msk.bf16.mxu1 %vm349_vm9, %v3235_v37  ;;  %v802_v60 = vrot.slane %v800_v51, 4  ;;  %v805_v61 = vrot.slane %v803_v55, 5  ;;  %v561_v2 = vshrl.u32 %v3247_v41, 16 }
  0x47   : > { %v564_v3 = vshll.u32 %v3247_v41, 16  ;;  %v811_v6 = vrot.slane %v809_v57, 5  ;;  %v248_v7 = vshrl.u32 %v2961_v44, 16  ;;  %v251_v8 = vshll.u32 %v2961_v44, 16 }
  0x48   : > { %2662 = vmatmul.mubr.msk.bf16.vlgmr.msra.gmra.mrb[0].mxu1 %vm349_vm9, %v3260_v50  ;;  %v806_v4 = vor.u32 %v805_v61, %v802_v60  ;;  %v3284_v10 = vcombine.high %v3221_v29, %v3221_v29  ;;  %v255_v11 = vshrl.u32 %v2963_v56, 16  ;;  %v258_v12 = vshll.u32 %v2963_v56, 16 }
  0x49   : > { %2670 = vmatpush3.bf16.msra.mxu1 %v3128_v25  ;;  %v528_v14 = vshll.u32 %v3271_v59, 16  ;;  %v1023_v16 = vrot.slane %v3126_v13, 5  ;;  %v250_v17 = vrot.slane %v248_v7, 7  ;;  %v521_v25 = vrot.slane %v519_v62, 4 }
  0x4a   : > { %2671 = vmatprep.subr.bf16.mxu1 %v2962_v39  ;;  %v807_v15 = vrot.slane %v806_v4, 4  ;;  %v524_v18 = vrot.slane %v522_v63, 5  ;;  %v257_v20 = vrot.slane %v255_v11, 7  ;;  %v2414_v21 = vrot.slane %v3108_v1, 9 }
  0x4b   : > { %v563_v22 = vrot.slane %v561_v2, 4  ;;  %v566_v24 = vrot.slane %v564_v3, 5  ;;  %v253_v13 = vor.u32 %v251_v8, %v250_v17  ;;  %v570_v31 = vshll.u32 %v3284_v10, 16 }
  0x4c   : > { %v3291_v26 = vsel %vm3199_vm8, %v807_v15, %v811_v6  ;;  %v260_v34 = vor.u32 %v258_v12, %v257_v20  ;;  %v525_v51 = vor.u32 %v524_v18, %v521_v25  ;;  %v3315_v57 = vsel %vm3295_vm12, %v2414_v21, %v1023_v16 }
  0x4d   : > { %2672 = vmatpush3.bf16.msra.mxu1 %v2962_v39  ;;  %v3303_v1 = vcombine.low %v3291_v26, %v3209_v19  ;;  %v530_v39 = vrot.slane %v528_v14, 5  ;;  %v290_v44 = vsel %vm3132_vm4, 0, %v253_v13  ;;  %v567_v60 = vor.u32 %v566_v24, %v563_v22 }
  0x4e   : > { %2681 = vmatprep.subr.bf16.mxu1 %v3280_v9  ;;  %v3309_v55 = vsel %vm3138_vm5, %v290_v44, 0  ;;  %v291_v56 = vsel %vm3132_vm4, 0, %v260_v34  ;;  %v572_v63 = vrot.slane %v570_v31, 5  ;;  %v1027_v30 = vrot.slane %v3168_v49, 5  ;;  %v2976_v44 = vld [vmem:[#allocation2 + $0x18] sm:$0xff]  }
  0x4f   : > { %v3319_v19 = vcombine.low %v3309_v55, %v3309_v55  ;;  %v3323_v61 = vcombine.high %v3309_v55, %v3309_v55  ;;  %v3327_v62 = vsel %vm3138_vm5, %v291_v56, 0  ;;  %v2415_v33 = vrot.slane %v3164_v48, 9 }
  0x50   : > { %v3332_v2 = vcombine.low %v3327_v62, %v3327_v62  ;;  %v3336_v3 = vcombine.high %v3327_v62, %v3327_v62  ;;  %v526_v8 = vrot.slane %v525_v51, 4  ;;  %v568_v14 = vrot.slane %v567_v60, 4 }
  0x51   : > { %v533_v4 = vshrl.u32 %v3319_v19, 16  ;;  %v536_v6 = vshll.u32 %v3319_v19, 16  ;;  %v542_v7 = vshll.u32 %v3323_v61, 16  ;;  %v2416_v15 = vrot.slane %v3172_v52, 9 }
  0x52   : > { %v547_v11 = vshrl.u32 %v3332_v2, 16  ;;  %v550_v49 = vshll.u32 %v3332_v2, 16  ;;  %v556_v12 = vshll.u32 %v3336_v3, 16  ;;  %v1031_v25 = vrot.slane %v3176_v53, 5 }
  0x53   : > { %v535_v16 = vrot.slane %v533_v4, 4  ;;  %v538_v17 = vrot.slane %v536_v6, 5  ;;  %v2438_v21 = vrot.slane %v3239_v38, 9  ;;  %v544_v48 = vrot.slane %v542_v7, 5 }
  0x54   : > { %v549_v18 = vrot.slane %v547_v11, 4  ;;  %v552_v20 = vrot.slane %v550_v49, 5  ;;  %v3350_v24 = vsel %vm3295_vm12, %v2415_v33, %v1027_v30  ;;  %v1259_v13 = vrot.slane %v3255_v43, 5 }
  0x55   : > { %v539_v22 = vor.u32 %v538_v17, %v535_v16  ;;  %v558_v34 = vrot.slane %v556_v12, 5  ;;  %v2350_v52 = vcombine.low %v3035_v0, %v3152_v45  ;;  %v3357_v53 = vcombine.low %v3156_v46, %v3160_v47 }
  0x56   : > { %v553_v31 = vor.u32 %v552_v20, %v549_v18  ;;  %v3361_v38 = vsel %vm3199_vm8, %v526_v8, %v530_v39  ;;  %v1035_v51 = vrot.slane %v3186_v58, 5  ;;  %v3366_v43 = vcombine.low %v3217_v28, %v3309_v55  ;;  %v2965_v20 = vld [vmem:[#allocation2 + $0x68] sm:$0xff]  }
  0x57   : > { %v540_v56 = vrot.slane %v539_v22, 4  ;;  %v3370_v60 = vsel %vm3199_vm8, %v568_v14, %v572_v63  ;;  %v2417_v4 = vrot.slane %v3180_v54, 9  ;;  %2613 = vmatprep.mubr.msk.bf16.mxu0 %vm349_vm9, %v2350_v52  ;;  %v2422_v58 = vcombine.low %v3315_v57, %v3350_v24  ;;  %v2967_v22 = vld [vmem:[#allocation2 + $0x78] sm:$0xff]  }
  0x58   : > { %v554_v30 = vrot.slane %v553_v31, 4  ;;  %v2418_v6 = vrot.slane %v3243_v40, 9  ;;  %v3381_v7 = vsel %vm3295_vm12, %v2438_v21, %v1259_v13  ;;  %2614 = vmatmul.mubr.msk.bf16.vlgmr.msra.gmra.mrb[0].mxu0 %vm349_vm9, %v3357_v53  ;;  %v1039_v33 = vrot.slane %v3271_v59, 5  ;;  %v2973_v52 = vld [vmem:[#allocation2 + $0xd8] sm:$0xff]  }
  0x59   : > { %v545_v39 = vsel %vm3199_vm8, %v540_v56, %v544_v48  ;;  %2617 = vmatprep.mubr.msk.bf16.mxu0 %vm349_vm9, %v3366_v43  ;;  %2622 = vmatpush3.bf16.msra.mxu0 %v3227_v35  ;;  %v2494_v40 = vcombine.low %v3381_v7, %v3315_v57  ;;  %v2419_v11 = vrot.slane %v3319_v19, 9  ;;  %v1043_v49 = vrot.slane %v3323_v61, 5  ;;  %v2983_v48 = vld [vmem:[#allocation2 + $0x38] sm:$0xff]   ;;  %v2977_v56 = vld [vmem:[#allocation2 + $0xe8] sm:$0xff]  }
  0x5a   : > { %v3386_v63 = vcombine.low %v3361_v38, %v545_v39  ;;  %v559_v54 = vsel %vm3199_vm8, %v554_v30, %v558_v34  ;;  %2623 = vmatprep.subr.bf16.mxu0 %v2976_v44  ;;  %v3403_v59 = vcombine.low %v3213_v23, %v3035_v0  ;;  %v3411_v35 = vcombine.low %v3327_v62, %v3221_v29  ;;  %v2986_v34 = vld [vmem:[#allocation2 + $0x90] sm:$0xff]   ;;  %v2989_v30 = vld [vmem:[#allocation2 + $0xa8] sm:$0xff]  }
  0x5b   : > { %v3397_v8 = vcombine.low %v559_v54, %v3370_v60  ;;  %v1032_v19 = vsel %vm3295_vm12, %v2416_v15, %v1031_v25  ;;  %v3418_v61 = vsel %vm3295_vm12, %v2417_v4, %v1035_v51  ;;  %v1040_v0 = vsel %vm3295_vm12, %v2418_v6, %v1039_v33  ;;  %v2988_v51 = vld [vmem:[#allocation2 + $0xa0] sm:$0xff]   ;;  %v2990_v4 = vld [vmem:[#allocation2 + $0xb0] sm:$0xff]  }
  0x5c   : > { %2665 = vmatprep.mubr.msk.bf16.mxu1 %vm349_vm9, %v3386_v63  ;;  %v1044_v12 = vsel %vm3295_vm12, %v2419_v11, %v1043_v49  ;;  %v3425_v14 = vcombine.low %v1032_v19, %v3418_v61  ;;  %v2421_v16 = vrot.slane %v3247_v41, 9  ;;  %v2420_v17 = vrot.slane %v3332_v2, 9 }
  0x5d   : > { %2666 = vmatmul.mubr.msk.bf16.gmra.mrb[4].mxu1 %vm349_vm9, %v3397_v8  ;;  %2624 = vmatpush3.bf16.msra.mxu0 %v2976_v44  ;;  %v3430_v15 = vcombine.low %v1040_v0, %v1044_v12  ;;  %v1047_v25 = vrot.slane %v3336_v3, 5  ;;  %v1051_v18 = vrot.slane %v3284_v10, 5  ;;  %v2966_v10 = vld [vmem:[#allocation2 + $0x70] sm:$0xff]   ;;  %v2980_v3 = vld [vmem:[#allocation2 + $0x28] sm:$0xff]   ;;  %v2386_v27 = vcombine.low %v3152_v45, %v3156_v46  ;;  %v2975_v44 = vld [vmem:[#allocation2 + $0xe0] sm:$0xff]  }
  0x5e   : > { %2673 = vmatprep.mubr.msk.bf16.mxu1 %vm349_vm9, %v2422_v58  ;;  %2633 = vmatprep.subr.bf16.mxu0 %v2978_v5  ;;  %v2387_v45 = vcombine.low %v3160_v47, %v3217_v28  ;;  %v2388_v46 = vcombine.low %v3309_v55, %v3327_v62  ;;  %v3481_v13 = vcombine.low %v3370_v60, %v3291_v26  ;;  %v2984_v47 = vld [vmem:[#allocation2 + $0x80] sm:$0xff]   ;;  %v2969_v62 = vld [vmem:[#allocation2 + $0xc8] sm:$0xff]   ;;  %v2979_v60 = vld [vmem:[#allocation2 + $0xf0] sm:$0xff]  }
  0x5f   : > { %v1048_v41 = vsel %vm3295_vm12, %v2420_v17, %v1047_v25  ;;  %v1052_v2 = vsel %vm3295_vm12, %v2421_v16, %v1051_v18  ;;  %v2439_v31 = vcombine.low %v3350_v24, %v1032_v19  ;;  %v2389_v28 = vcombine.low %v3221_v29, %v3213_v23  ;;  %v2971_v23 = vld [vmem:[#allocation2 + $0xd0] sm:$0xff]   ;;  %v2985_v29 = vld [vmem:[#allocation2 + $0x88] sm:$0xff]   ;;  %v2991_v58 = vld [vmem:[#allocation2 + $0xb8] sm:$0xff]  }
  0x60   : > { %2618 = vmatmul.mubr.msk.bf16.gmra.mrb[4].mxu0 %vm349_vm9, %v3411_v35  ;;  %v3446_v21 = vcombine.low %v1048_v41, %v1052_v2  ;;  %v2440_v26 = vcombine.low %v3418_v61, %v1040_v0  ;;  %v2441_v55 = vcombine.low %v1044_v12, %v1048_v41  ;;  %v2442_v24 = vcombine.low %v1052_v2, %v3381_v7 }
  0x61   : > { %2625 = vmatprep.mubr.msk.bf16.mxu0 %vm349_vm9, %v3235_v37  ;;  %v3452_v37 = vcombine.low %v3225_v32, %v3231_v36  ;;  %v3464_v32 = vcombine.low %v3251_v42, %v3361_v38  ;;  %v3468_v36 = vcombine.low %v545_v39, %v559_v54  ;;  %v2968_v42 = vld [vmem:[#allocation2 + $0xc0] sm:$0xff]   ;;  %v2987_v38 = vld [vmem:[#allocation2 + $0x98] sm:$0xff]  }
  0x62   : > { %v2981_v39 = vld [vmem:[#allocation2 + $0xf8] sm:$0xff]  }
  0x65   : > { %2674 = vmatmul.mubr.msk.bf16.vlgmr.msra.gmra.mrb[0].mxu1 %vm349_vm9, %v3425_v14 }
  0x66   : > { %2682 = vmatpush3.bf16.msra.mxu1 %v3280_v9  ;;  %2677 = vmatprep.mubr.msk.bf16.mxu1 %vm349_vm9, %v3430_v15  ;;  %v2982_v9 = vld [vmem:[#allocation2 + $0x30] sm:$0xff]  }
  0x67   : > { %2683 = vmatprep.subr.bf16.mxu1 %v2965_v20 }
  0x68   : > { %2626 = vmatmul.mubr.msk.bf16.vlgmr.msra.gmra.mrb[0].mxu0 %vm349_vm9, %v3260_v50 }
  0x69   : > { %2629 = vmatprep.mubr.msk.bf16.mxu0 %vm349_vm9, %v3386_v63  ;;  %2634 = vmatpush3.bf16.msra.mxu0 %v2978_v5 }
  0x6a   : > { %2684 = vmatpush3.bf16.msra.mxu1 %v2965_v20  ;;  %2635 = vmatprep.subr.bf16.mxu0 %v2980_v3 }
  0x6b   : > { %2693 = vmatprep.subr.bf16.mxu1 %v2966_v10 }
  0x6d   : > { %2678 = vmatmul.mubr.msk.bf16.gmra.mrb[4].mxu1 %vm349_vm9, %v3446_v21  ;;  %2636 = vmatpush3.bf16.msra.mxu0 %v2980_v3 }
  0x6e   : > { %2685 = vmatprep.mubr.msk.bf16.mxu1 %vm349_vm9, %v3452_v37  ;;  %2645 = vmatprep.subr.bf16.mxu0 %v2982_v9 }
  0x70   : > { %2630 = vmatmul.mubr.msk.bf16.gmra.mrb[4].mxu0 %vm349_vm9, %v3397_v8 }
  0x71   : > { %2637 = vmatprep.mubr.msk.bf16.mxu0 %vm349_vm9, %v2386_v27 }
  0x75   : > { %2686 = vmatmul.mubr.msk.bf16.vlgmr.msra.gmra.mrb[0].mxu1 %vm349_vm9, %v3464_v32 }
  0x76   : > { %2694 = vmatpush3.bf16.msra.mxu1 %v2966_v10  ;;  %2689 = vmatprep.mubr.msk.bf16.mxu1 %vm349_vm9, %v3468_v36 }
  0x77   : > { %2695 = vmatprep.subr.bf16.mxu1 %v2967_v22 }
  0x78   : > { %2638 = vmatmul.mubr.msk.bf16.vlgmr.msra.gmra.mrb[0].mxu0 %vm349_vm9, %v2387_v45 }
  0x79   : > { %2641 = vmatprep.mubr.msk.bf16.mxu0 %vm349_vm9, %v2388_v46  ;;  %2646 = vmatpush3.bf16.msra.mxu0 %v2982_v9 }
  0x7a   : > { %2696 = vmatpush3.bf16.msra.mxu1 %v2967_v22  ;;  %2647 = vmatprep.subr.bf16.mxu0 %v2983_v48 }
  0x7b   : > { %2753 = vmatprep.subr.bf16.mxu1 %v2968_v42 }
  0x7d   : > { %2690 = vmatmul.mubr.msk.bf16.gmra.mrb[4].mxu1 %vm349_vm9, %v3481_v13  ;;  %2648 = vmatpush3.bf16.msra.mxu0 %v2983_v48 }
  0x7e   : > { %2697 = vmatprep.mubr.msk.bf16.mxu1 %vm349_vm9, %v2439_v31  ;;  %2705 = vmatprep.subr.bf16.mxu0 %v2984_v47 }
  0x80   : > { %2642 = vmatmul.mubr.msk.bf16.gmra.mrb[4].mxu0 %vm349_vm9, %v2389_v28 }
  0x81   : > { %2649 = vmatprep.mubr.msk.bf16.mxu0 %vm349_vm9, %v3452_v37 }
  0x85   : > { %2698 = vmatmul.mubr.msk.bf16.vlgmr.msra.gmra.mrb[0].mxu1 %vm349_vm9, %v2440_v26 }
  0x86   : > { %2754 = vmatpush3.bf16.msra.mxu1 %v2968_v42  ;;  %2701 = vmatprep.mubr.msk.bf16.mxu1 %vm349_vm9, %v2441_v55 }
  0x87   : > { %2755 = vmatprep.subr.bf16.mxu1 %v2969_v62 }
  0x88   : > { %2650 = vmatmul.mubr.msk.bf16.vlgmr.msra.gmra.mrb[0].mxu0 %vm349_vm9, %v3464_v32 }
  0x89   : > { %2653 = vmatprep.mubr.msk.bf16.mxu0 %vm349_vm9, %v3468_v36  ;;  %2706 = vmatpush3.bf16.msra.mxu0 %v2984_v47 }
  0x8a   : > { %2756 = vmatpush3.bf16.msra.mxu1 %v2969_v62  ;;  %2707 = vmatprep.subr.bf16.mxu0 %v2985_v29 }
  0x8b   : > { %2765 = vmatprep.subr.bf16.mxu1 %v2971_v23 }
  0x8d   : > { %2702 = vmatmul.mubr.msk.bf16.gmra.mrb[4].mxu1 %vm349_vm9, %v2442_v24  ;;  %2708 = vmatpush3.bf16.msra.mxu0 %v2985_v29 }
  0x8e   : > { %2757 = vmatprep.mubr.msk.bf16.mxu1 %vm349_vm9, %v3452_v37  ;;  %2717 = vmatprep.subr.bf16.mxu0 %v2986_v34 }
  0x90   : > { %2654 = vmatmul.mubr.msk.bf16.gmra.mrb[4].mxu0 %vm349_vm9, %v3481_v13 }
  0x91   : > { %2709 = vmatprep.mubr.msk.bf16.mxu0 %vm349_vm9, %v2386_v27 }
  0x95   : > { %2758 = vmatmul.mubr.msk.bf16.vlgmr.msra.gmra.mrb[8].mxu1 %vm349_vm9, %v3464_v32 }
  0x96   : > { %2766 = vmatpush3.bf16.msra.mxu1 %v2971_v23  ;;  %2761 = vmatprep.mubr.msk.bf16.mxu1 %vm349_vm9, %v3468_v36 }
  0x97   : > { %2767 = vmatprep.subr.bf16.mxu1 %v2973_v52 }
  0x98   : > { %2710 = vmatmul.mubr.msk.bf16.vlgmr.msra.gmra.mrb[8].mxu0 %vm349_vm9, %v2387_v45 }
  0x99   : > { %2713 = vmatprep.mubr.msk.bf16.mxu0 %vm349_vm9, %v2388_v46  ;;  %2718 = vmatpush3.bf16.msra.mxu0 %v2986_v34 }
  0x9a   : > { %2768 = vmatpush3.bf16.msra.mxu1 %v2973_v52  ;;  %2719 = vmatprep.subr.bf16.mxu0 %v2987_v38 }
  0x9b   : > { %2777 = vmatprep.subr.bf16.mxu1 %v2975_v44 }
  0x9d   : > { %2762 = vmatmul.mubr.msk.bf16.gmra.mrb[12].mxu1 %vm349_vm9, %v3481_v13  ;;  %2720 = vmatpush3.bf16.msra.mxu0 %v2987_v38 }
  0x9e   : > { %2769 = vmatprep.mubr.msk.bf16.mxu1 %vm349_vm9, %v2439_v31  ;;  %2729 = vmatprep.subr.bf16.mxu0 %v2988_v51 }
  0xa0   : > { %2714 = vmatmul.mubr.msk.bf16.gmra.mrb[12].mxu0 %vm349_vm9, %v2389_v28 }
  0xa1   : > { %2721 = vmatprep.mubr.msk.bf16.mxu0 %vm349_vm9, %v3452_v37 }
  0xa5   : > { %2770 = vmatmul.mubr.msk.bf16.vlgmr.msra.gmra.mrb[8].mxu1 %vm349_vm9, %v2440_v26 }
  0xa6   : > { %2778 = vmatpush3.bf16.msra.mxu1 %v2975_v44  ;;  %2773 = vmatprep.mubr.msk.bf16.mxu1 %vm349_vm9, %v2441_v55 }
  0xa7   : > { %2779 = vmatprep.subr.bf16.mxu1 %v2977_v56 }
  0xa8   : > { %2722 = vmatmul.mubr.msk.bf16.vlgmr.msra.gmra.mrb[8].mxu0 %vm349_vm9, %v3464_v32 }
  0xa9   : > { %2725 = vmatprep.mubr.msk.bf16.mxu0 %vm349_vm9, %v3468_v36  ;;  %2730 = vmatpush3.bf16.msra.mxu0 %v2988_v51 }
  0xaa   : > { %2780 = vmatpush3.bf16.msra.mxu1 %v2977_v56  ;;  %2731 = vmatprep.subr.bf16.mxu0 %v2989_v30 }
  0xab   : > { %2789 = vmatprep.subr.bf16.mxu1 %v2979_v60 }
  0xad   : > { %2774 = vmatmul.mubr.msk.bf16.gmra.mrb[12].mxu1 %vm349_vm9, %v2442_v24  ;;  %2732 = vmatpush3.bf16.msra.mxu0 %v2989_v30 }
  0xae   : > { %2781 = vmatprep.mubr.msk.bf16.mxu1 %vm349_vm9, %v3260_v50  ;;  %2741 = vmatprep.subr.bf16.mxu0 %v2990_v4 }
  0xb0   : > { %2726 = vmatmul.mubr.msk.bf16.gmra.mrb[12].mxu0 %vm349_vm9, %v3481_v13 }
  0xb1   : > { %2733 = vmatprep.mubr.msk.bf16.mxu0 %vm349_vm9, %v3357_v53 }
  0xb5   : > { %2782 = vmatmul.mubr.msk.bf16.vlgmr.msra.gmra.mrb[8].mxu1 %vm349_vm9, %v3386_v63 }
  0xb6   : > { %2790 = vmatpush3.bf16.msra.mxu1 %v2979_v60  ;;  %2785 = vmatprep.mubr.msk.bf16.mxu1 %vm349_vm9, %v3397_v8 }
  0xb7   : > { %2791 = vmatprep.subr.bf16.mxu1 %v2981_v39 }
  0xb8   : > { %2734 = vmatmul.mubr.msk.bf16.vlgmr.msra.gmra.mrb[8].mxu0 %vm349_vm9, %v3366_v43 }
  0xb9   : > { %2737 = vmatprep.mubr.msk.bf16.mxu0 %vm349_vm9, %v3411_v35  ;;  %2742 = vmatpush3.bf16.msra.mxu0 %v2990_v4 }
  0xba   : > { %2792 = vmatpush3.bf16.msra.mxu1 %v2981_v39  ;;  %2743 = vmatprep.subr.bf16.mxu0 %v2991_v58 }
  0xbd   : > { %2786 = vmatmul.mubr.msk.bf16.gmra.mrb[12].mxu1 %vm349_vm9, %v3303_v1  ;;  %2744 = vmatpush3.bf16.msra.mxu0 %v2991_v58 }
  0xbe   : > { %2793 = vmatprep.mubr.msk.bf16.mxu1 %vm349_vm9, %v3425_v14 }
  0xc0   : > { %2738 = vmatmul.mubr.msk.bf16.gmra.mrb[12].mxu0 %vm349_vm9, %v3403_v59 }
  0xc1   : > { %2745 = vmatprep.mubr.msk.bf16.mxu0 %vm349_vm9, %v3260_v50  ;;  %v3566_v50 = vld [vmem:[%s3723_s2] ss:$0 sm:$0xff] }
  0xc5   : > { %2794 = vmatmul.mubr.msk.bf16.vlgmr.msra.gmra.mrb[8].mxu1 %vm349_vm9, %v3430_v15 }
  0xc6   : > { %2797 = vmatprep.mubr.msk.bf16.mxu1 %vm349_vm9, %v3446_v21 }
  0xc8   : > { %2746 = vmatmul.mubr.msk.bf16.vlgmr.msra.gmra.mrb[8].mxu0 %vm349_vm9, %v3386_v63 }
  0xc9   : > { %2749 = vmatprep.mubr.msk.bf16.mxu0 %vm349_vm9, %v3397_v8 }
  0xcd   : > { %2798 = vmatmul.mubr.msk.bf16.gmra.mrb[12].mxu1 %vm349_vm9, %v2494_v40 }
  0xd0   : > { %2750 = vmatmul.mubr.msk.bf16.gmra.mrb[12].mxu0 %vm349_vm9, %v3303_v1 }
 0x158   : > { %v2699_v53 = vpop.f32.mrb[0].mxu1 }
 0x159   : > { %v2809_v43 = vadd.f32 %v2699_v53, %v3566_v50  ;;  %v1329_v6 = vpop.f32.mrb[1].mxu1 }
 0x15a   : > { %v2810_v63 = vadd.f32 %v3566_v50, %v1329_v6  ;;  %v2700_v54 = vpop.f32.mrb[2].mxu1 }
 0x15b   : > { %v1370_v33 = vpack.c.bf16 %v2809_v43, %v2809_v43  ;;  %v2811_v57 = vadd.f32 %v2700_v54, %v3566_v50  ;;  %v1332_v7 = vpop.f32.mrb[3].mxu1  ;;  %v3572_v1 = vpop.f32.mrb[0].mxu0 }
 0x15c   : > { %v1368_v40 = vpack.c.bf16 %v2810_v63, %v2810_v63  ;;  %v2812_v8 = vadd.f32 %v3566_v50, %v1332_v7  ;;  %v3575_v11 = vpop.f32.mrb[1].mxu0  ;;  %v2801_v43 = vadd.f32 %v3572_v1, %v3566_v50 }
 0x15d   : > { %1388 = vrot.lane.b32.xlu1 %v1370_v33, %s3036_s9  ;;  %v3578_v49 = vpop.f32.mrb[2].mxu0  ;;  %v1371_v5 = vpack.c.bf16 %v2811_v57, %v2811_v57  ;;  %v2802_v6 = vadd.f32 %v3566_v50, %v3575_v11 }
 0x15e   : > { %1384 = vrot.lane.b32.xlu0 %v1368_v40, %s3036_s9  ;;  %v3580_v59 = vpop.f32.mrb[3].mxu0  ;;  %v1369_v35 = vpack.c.bf16 %v2812_v8, %v2812_v8  ;;  %v922_v63 = vpack.c.bf16 %v2801_v43, %v2801_v43  ;;  %v2803_v54 = vadd.f32 %v3578_v49, %v3566_v50 }
 0x15f   : > { %v920_v33 = vpack.c.bf16 %v2802_v6, %v2802_v6  ;;  %v2804_v57 = vadd.f32 %v3566_v50, %v3580_v59 }
 0x160   : > { %v2703_v19 = vpop.f32.mrb[4].mxu1  ;;  %v923_v11 = vpack.c.bf16 %v2803_v54, %v2803_v54 }
 0x161   : > { %v2813_v61 = vadd.f32 %v2703_v19, %v3566_v50  ;;  %1390 = vrot.lane.b32.xlu1 %v1371_v5, %s3036_s9  ;;  %v1345_v0 = vpop.f32.mrb[5].mxu1  ;;  %v921_v5 = vpack.c.bf16 %v2804_v57, %v2804_v57 }
 0x162   : > { %1386 = vrot.lane.b32.xlu0 %v1369_v35, %s3036_s9  ;;  %v2704_v12 = vpop.f32.mrb[6].mxu1  ;;  %v2814_v17 = vadd.f32 %v3566_v50, %v1345_v0 }
 0x163   : > { %v1374_v14 = vpack.c.bf16 %v2813_v61, %v2813_v61  ;;  %v2815_v16 = vadd.f32 %v2704_v12, %v3566_v50  ;;  %v1348_v15 = vpop.f32.mrb[7].mxu1  ;;  %v3587_v25 = vpop.f32.mrb[4].mxu0 }
 0x164   : > { %v2816_v20 = vadd.f32 %v3566_v50, %v1348_v15  ;;  %v3590_v41 = vpop.f32.mrb[5].mxu0  ;;  %v1372_v3 = vpack.c.bf16 %v2814_v17, %v2814_v17  ;;  %v2805_v49 = vadd.f32 %v3587_v25, %v3566_v50 }
 0x165   : > { %v1375_v18 = vpack.c.bf16 %v2815_v16, %v2815_v16  ;;  %v3593_v2 = vpop.f32.mrb[6].mxu0 }
 0x166   : > { %1396 = vrot.lane.b32.xlu0 %v1374_v14, %s3036_s9  ;;  %v3596_v10 = vpop.f32.mrb[7].mxu0  ;;  %v1373_v21 = vpack.c.bf16 %v2816_v20, %v2816_v20  ;;  %v2807_v59 = vadd.f32 %v3593_v2, %v3566_v50  ;;  %v926_v12 = vpack.c.bf16 %v2805_v49, %v2805_v49  ;;  %v2806_v14 = vadd.f32 %v3566_v50, %v3590_v41 }
 0x167   : > { %1398 = vrot.lane.b32.xlu1 %v1375_v18, %s3036_s9  ;;  %v2808_v15 = vadd.f32 %v3566_v50, %v3596_v10 }
 0x168   : > { %v927_v16 = vpack.c.bf16 %v2807_v59, %v2807_v59  ;;  %v924_v2 = vpack.c.bf16 %v2806_v14, %v2806_v14 }
 0x16a   : > { %1392 = vrot.lane.b32.xlu0 %v1372_v3, %s3036_s9  ;;  %v925_v3 = vpack.c.bf16 %v2808_v15, %v2808_v15 }
 0x16b   : > { %1394 = vrot.lane.b32.xlu1 %v1373_v21, %s3036_s9 }
 0x198   : > { %v2795_v37 = vpop.f32.mrb[8].mxu1 }
 0x199   : > { %v2825_v9 = vadd.f32 %v2795_v37, %v3566_v50  ;;  %v2151_v27 = vpop.f32.mrb[9].mxu1 }
 0x19a   : > { %v2796_v32 = vpop.f32.mrb[10].mxu1  ;;  %v2826_v22 = vadd.f32 %v3566_v50, %v2151_v27 }
 0x19b   : > { %v2192_v36 = vpack.c.bf16 %v2825_v9, %v2825_v9  ;;  %v2827_v45 = vadd.f32 %v2796_v32, %v3566_v50  ;;  %v2154_v46 = vpop.f32.mrb[11].mxu1  ;;  %v3603_v42 = vpop.f32.mrb[8].mxu0 }
 0x19c   : > { %v2828_v13 = vadd.f32 %v3566_v50, %v2154_v46  ;;  %v3607_v31 = vpop.f32.mrb[9].mxu0  ;;  %v2190_v28 = vpack.c.bf16 %v2826_v22, %v2826_v22  ;;  %v2817_v9 = vadd.f32 %v3603_v42, %v3566_v50 }
 0x19d   : > { %v2193_v48 = vpack.c.bf16 %v2827_v45, %v2827_v45  ;;  %2210 = vrot.lane.b32.xlu0 %v2192_v36, %s3036_s9  ;;  %v3609_v47 = vpop.f32.mrb[10].mxu0  ;;  %v2818_v36 = vadd.f32 %v3566_v50, %v3607_v31 }
 0x19e   : > { %v3612_v26 = vpop.f32.mrb[11].mxu0  ;;  %v2191_v62 = vpack.c.bf16 %v2828_v13, %v2828_v13  ;;  %v2819_v27 = vadd.f32 %v3609_v47, %v3566_v50  ;;  %v1820_v32 = vpack.c.bf16 %v2817_v9, %v2817_v9 }
 0x19f   : > { %2212 = vrot.lane.b32.xlu1 %v2193_v48, %s3036_s9  ;;  %v2820_v46 = vadd.f32 %v3566_v50, %v3612_v26  ;;  %v1818_v42 = vpack.c.bf16 %v2818_v36, %v2818_v36 }
 0x1a0   : > { %v2799_v55 = vpop.f32.mrb[12].mxu1  ;;  %v1821_v45 = vpack.c.bf16 %v2819_v27, %v2819_v27 }
 0x1a1   : > { %2206 = vrot.lane.b32.xlu0 %v2190_v28, %s3036_s9  ;;  %v2167_v23 = vpop.f32.mrb[13].mxu1  ;;  %v2829_v52 = vadd.f32 %v2799_v55, %v3566_v50  ;;  %v1819_v55 = vpack.c.bf16 %v2820_v46, %v2820_v46 }
 0x1a2   : > { %v2830_v29 = vadd.f32 %v3566_v50, %v2167_v23  ;;  %v2800_v24 = vpop.f32.mrb[14].mxu1 }
 0x1a3   : > { %v2170_v34 = vpop.f32.mrb[15].mxu1  ;;  %2208 = vrot.lane.b32.xlu1 %v2191_v62, %s3036_s9  ;;  %v3619_v51 = vpop.f32.mrb[12].mxu0  ;;  %v2831_v60 = vadd.f32 %v2800_v24, %v3566_v50  ;;  %v2196_v58 = vpack.c.bf16 %v2829_v52, %v2829_v52 }
 0x1a4   : > { %v2194_v44 = vpack.c.bf16 %v2830_v29, %v2830_v29  ;;  %v2832_v38 = vadd.f32 %v3566_v50, %v2170_v34  ;;  %v3621_v56 = vpop.f32.mrb[13].mxu0  ;;  %v2821_v24 = vadd.f32 %v3619_v51, %v3566_v50 }
 0x1a5   : > { %v3625_v4 = vpop.f32.mrb[14].mxu0  ;;  %v2197_v53 = vpack.c.bf16 %v2831_v60, %v2831_v60  ;;  %v2822_v47 = vadd.f32 %v3566_v50, %v3621_v56 }
 0x1a6   : > { %v2195_v30 = vpack.c.bf16 %v2832_v38, %v2832_v38  ;;  %2214 = vrot.lane.b32.xlu0 %v2194_v44, %s3036_s9  ;;  %v3627_v39 = vpop.f32.mrb[15].mxu0  ;;  %v2823_v44 = vadd.f32 %v3625_v4, %v3566_v50 }
 0x1a7   : > { %v2824_v26 = vadd.f32 %v3566_v50, %v3627_v39  ;;  %v1822_v34 = vpack.c.bf16 %v2822_v47, %v2822_v47 }
 0x1a8   : > { %2216 = vrot.lane.b32.xlu1 %v2195_v30, %s3036_s9  ;;  %v1824_v30 = vpack.c.bf16 %v2821_v24, %v2821_v24 }
 0x1a9   : > { %v1823_v38 = vpack.c.bf16 %v2824_v26, %v2824_v26 }
 0x1aa   : > { %2218 = vrot.lane.b32.xlu0 %v2196_v58, %s3036_s9  ;;  %v1825_v58 = vpack.c.bf16 %v2823_v44, %v2823_v44 }
 0x1ac   : > { %2220 = vrot.lane.b32.xlu1 %v2197_v53, %s3036_s9 }
 0x1cf   : > { %v1389_v7 = vpop.permute.xlu1 %1388 }
 0x1d0   : > { %v1411_v40 = vsel %vm1400_vm13, %v922_v63, %v1389_v7  ;;  %v1385_v8 = vpop.permute.xlu0 %1384 }
 0x1d1   : > { %1436 = vst.msk [vmem:[%s3640_s15 + $0x10] sm:$0xf] %vm1433_vm14, %v1411_v40  ;;  %v1403_v1 = vsel %vm1400_vm13, %v920_v33, %v1385_v8 }
 0x1d2   : > { %1434 = vst.msk [vmem:[%s3640_s15] sm:$0xf] %vm1433_vm14, %v1403_v1 }
 0x1d3   : > { %v1391_v35 = vpop.permute.xlu1 %1390 }
 0x1d4   : > { %v1415_v19 = vsel %vm1400_vm13, %v923_v11, %v1391_v35  ;;  %v1387_v61 = vpop.permute.xlu0 %1386 }
 0x1d5   : > { %1437 = vst.msk [vmem:[%s3640_s15 + $0x18] sm:$0xf] %vm1433_vm14, %v1415_v19  ;;  %v1407_v0 = vsel %vm1400_vm13, %v921_v5, %v1387_v61 }
 0x1d6   : > { %1435 = vst.msk [vmem:[%s3640_s15 + $0x8] sm:$0xf] %vm1433_vm14, %v1407_v0 }
 0x1d8   : > { %v1397_v17 = vpop.permute.xlu0 %1396 }
 0x1d9   : > { %v1427_v25 = vsel %vm1400_vm13, %v926_v12, %v1397_v17  ;;  %v1399_v18 = vpop.permute.xlu1 %1398 }
 0x1da   : > { %1440 = vst.msk [vmem:[%s3640_s15 + $0x30] sm:$0xf] %vm1433_vm14, %v1427_v25  ;;  %v1431_v20 = vsel %vm1400_vm13, %v927_v16, %v1399_v18 }
 0x1db   : > { %1441 = vst.msk [vmem:[%s3640_s15 + $0x38] sm:$0xf] %vm1433_vm14, %v1431_v20 }
 0x1dc   : > { %v1393_v21 = vpop.permute.xlu0 %1392 }
 0x1dd   : > { %v1419_v41 = vsel %vm1400_vm13, %v924_v2, %v1393_v21  ;;  %v1395_v37 = vpop.permute.xlu1 %1394 }
 0x1de   : > { %1438 = vst.msk [vmem:[%s3640_s15 + $0x20] sm:$0xf] %vm1433_vm14, %v1419_v41  ;;  %v1423_v10 = vsel %vm1400_vm13, %v925_v3, %v1395_v37 }
 0x1df   : > { %1439 = vst.msk [vmem:[%s3640_s15 + $0x28] sm:$0xf] %vm1433_vm14, %v1423_v10 }
 0x20f   : > { %v2211_v22 = vpop.permute.xlu0 %2210 }
 0x210   : > { %v2232_v48 = vsel %vm1400_vm13, %v1820_v32, %v2211_v22 }
 0x211   : > { %2503 = vst.msk [vmem:[%s3640_s15 + $0x14] sm:$0xf] %vm1433_vm14, %v2232_v48  ;;  %v2213_v13 = vpop.permute.xlu1 %2212 }
 0x212   : > { %v2236_v28 = vsel %vm1400_vm13, %v1821_v45, %v2213_v13 }
 0x213   : > { %2504 = vst.msk [vmem:[%s3640_s15 + $0x1c] sm:$0xf] %vm1433_vm14, %v2236_v28  ;;  %v2207_v31 = vpop.permute.xlu0 %2206 }
 0x214   : > { %v2224_v62 = vsel %vm1400_vm13, %v1818_v42, %v2207_v31 }
 0x215   : > { %2501 = vst.msk [vmem:[%s3640_s15 + $0x4] sm:$0xf] %vm1433_vm14, %v2224_v62  ;;  %v2209_v23 = vpop.permute.xlu1 %2208 }
 0x216   : > { %v2228_v29 = vsel %vm1400_vm13, %v1819_v55, %v2209_v23 }
 0x217   : > { %2502 = vst.msk [vmem:[%s3640_s15 + $0xc] sm:$0xf] %vm1433_vm14, %v2228_v29 }
 0x218   : > { %v2215_v52 = vpop.permute.xlu0 %2214 }
 0x219   : > { %v2240_v56 = vsel %vm1400_vm13, %v1822_v34, %v2215_v52 }
 0x21a   : > { %2505 = vst.msk [vmem:[%s3640_s15 + $0x24] sm:$0xf] %vm1433_vm14, %v2240_v56  ;;  %v2217_v60 = vpop.permute.xlu1 %2216 }
 0x21b   : > { %v2244_v39 = vsel %vm1400_vm13, %v1823_v38, %v2217_v60 }
 0x21c   : > { %2506 = vst.msk [vmem:[%s3640_s15 + $0x2c] sm:$0xf] %vm1433_vm14, %v2244_v39  ;;  %v2219_v51 = vpop.permute.xlu0 %2218 }
 0x21d   : > { %v2248_v53 = vsel %vm1400_vm13, %v1824_v30, %v2219_v51 }
 0x21e   : > { %2507 = vst.msk [vmem:[%s3640_s15 + $0x34] sm:$0xf] %vm1433_vm14, %v2248_v53  ;;  %v2221_v43 = vpop.permute.xlu1 %2220 }
 0x21f   : > { %v2252_v50 = vsel %vm1400_vm13, %v1825_v58, %v2221_v43 }
 0x220   : > { %2508 = vst.msk [vmem:[%s3640_s15 + $0x3c] sm:$0xf] %vm1433_vm14, %v2252_v50 }
 0x221 PF: > { %s14_s12 = sadd.s32 1, %s3030_s12  }
 0x222   : > { %p11_p3 = scmp.ge.s32.totalorder %s14_s12, 4  }
 0x224   :  { %13 = sbr.rel (!%p11_p3) target bundleno = 1 (0x1), region = 83 }
 0x22b   :  { %2284 = vsyncpa [#allocation3], 1 }
 0x22c   :  { %2286 = vsyncpa [#allocation3 + $0x1], 1 }

// kernel: upblock_forward.6
= control target key start
LH: loop header
LB: loop body
LE: loop exit
PB: predicated region body
PF: predicated region fallthrough
CT: control target
= control target key end

     0   :  { %s4095_s12 = smov 0   ;;  %s4923_s0 = inlined_call_operand.vmem [shape: bf16[2,16,16,16], index: 0, kind: input, shape index: {}]   ;;  %s4924_s1 = inlined_call_operand.vmem [shape: bf16[9,16,16], index: 1, kind: input, shape index: {}]   ;;  %s4925_s2 = inlined_call_operand.vmem [shape: f32[1,16], index: 2, kind: input, shape index: {}]   ;;  %s4926_s3 = inlined_call_operand.vmem [shape: bf16[2,16,16,16], index: 3, kind: output, shape index: {}]  }
   0x1 LB: > { %s3022_s13 = sadd.s32 4294967295, %s4072_s12   ;;  %p3026_p0 = scmp.ge.s32.totalorder %s4072_s12, 1  ;;  %s4072_s12 = sphi %s4095_s12, %s13_s12  }
   0x2   : > { %p137_p1 = scmp.lt.s32.totalorder %s4072_s12, 3 }
   0x4   : > { %p138_p2 = pnand %p3026_p0, %p137_p1 }
   0x6   : > { %141 = sbr.rel (%p138_p2) target bundleno = 537 (0x219), region = 32 }
   0xd   : > { %v4041_v0 = vld [vmem:[%s4924_s1] sm:$0xff]   ;;  %v4927_v1 = vmov 0   ;;  %p161_p3 = scmp.lt.s32.totalorder %s3022_s13, 1  ;;  %v4044_v3 = vld [vmem:[%s4924_s1 + $0x18] sm:$0xff]   ;;  %vm437_vm0 = vsmask.f32 256 }
   0xe   : > { %3438 = vmatprep.mubr.bf16.mxu1 %v4927_v1  ;;  %3436 = vmatprep.subr.bf16.mxu1 %v4041_v0  ;;  %v4112_v2 = vld [vmem:[%s4924_s1 + $0x20] sm:$0xff]   ;;  %v4122_v4 = vld [vmem:[%s4924_s1 + $0x38] sm:$0xff]   ;;  %vm436_vm1 = vcmask 1040384   ;;  %vm1128_vm2 = vsmask.f32 7424  ;;  %vm479_vm4 = vcmask 130048  }
   0xf   : > { %3437 = vmatpush3.bf16.msra.mxu1 %v4041_v0  ;;  %s4939_s13 = smov (!%p161_p3, %s3022_s13), 1  ;;  %3572 = vmatprep.subr.bf16.mxu0 %v4112_v2  ;;  %vm4139_vm3 = vmand %vm436_vm1, %vm437_vm0  ;;  %v4187_v51 = vld [vmem:[%s4924_s1 + $0x10] sm:$0xff]   ;;  %vm2000_vm5 = vcmask 1046528   ;;  %vm2934_vm8 = vcmask 125952  }
  0x10   : > { %s3249_s20 = sshll.u32 %s4939_s13, 7  ;;  %3573 = vmatpush3.bf16.msra.mxu0 %v4112_v2  ;;  %3470 = vmatprep.subr.bf16.mxu1 %v4044_v3 }
  0x11   : > { %s4129_s25 = scalar_lea.vmem %s4923_s0, %s3249_s20  ;;  %3606 = vmatprep.subr.bf16.mxu0 %v4122_v4  ;;  %s4818_s15 = scalar_lea.vmem %s4926_s3, %s3249_s20 }
  0x12   : > { %v4042_v5 = vld [vmem:[%s4129_s25] sm:$0xff]   ;;  %v4045_v6 = vld [vmem:[%s4129_s25 + $0x8] sm:$0xff]   ;;  %v4047_v11 = vld [vmem:[%s4129_s25 + $0x10] sm:$0xff]  }
  0x13   : > { %v293_v7 = vshrl.u32 %v4042_v5, 16  ;;  %v296_v8 = vshll.u32 %v4042_v5, 16  ;;  %v300_v9 = vshrl.u32 %v4045_v6, 16  ;;  %v303_v10 = vshll.u32 %v4045_v6, 16  ;;  %v4048_v12 = vld [vmem:[%s4129_s25 + $0x18] sm:$0xff]   ;;  %v4049_v14 = vld [vmem:[%s4129_s25 + $0x20] sm:$0xff]  }
  0x14   : > { %v307_v17 = vshrl.u32 %v4047_v11, 16  ;;  %v314_v18 = vshrl.u32 %v4048_v12, 16  ;;  %v310_v21 = vshll.u32 %v4047_v11, 16  ;;  %v321_v22 = vshrl.u32 %v4049_v14, 16  ;;  %v4050_v50 = vld [vmem:[%s4129_s25 + $0x28] sm:$0xff]   ;;  %v4051_v60 = vld [vmem:[%s4129_s25 + $0x30] sm:$0xff]  }
  0x15   : > { %v295_v13 = vrot.slane %v293_v7, 7  ;;  %v302_v16 = vrot.slane %v300_v9, 7  ;;  %v317_v26 = vshll.u32 %v4048_v12, 16  ;;  %v324_v45 = vshll.u32 %v4049_v14, 16 }
  0x16   : > { %v309_v25 = vrot.slane %v307_v17, 7  ;;  %v316_v29 = vrot.slane %v314_v18, 7  ;;  %v323_v33 = vrot.slane %v321_v22, 7  ;;  %v328_v6 = vshrl.u32 %v4050_v50, 16  ;;  %v4053_v22 = vld [vmem:[%s4129_s25 + $0x40] sm:$0xff]  }
  0x17   : > { %v298_v19 = vor.u32 %v296_v8, %v295_v13  ;;  %v4145_v20 = vsel %vm4139_vm3, %v295_v13, 0  ;;  %v305_v23 = vor.u32 %v303_v10, %v302_v16  ;;  %v4154_v28 = vsel %vm4139_vm3, %v302_v16, 0 }
  0x18   : > { %v1143_v24 = vshll.u32 %v4145_v20, 16  ;;  %v312_v35 = vor.u32 %v310_v21, %v309_v25  ;;  %v1154_v39 = vshll.u32 %v4154_v28, 16  ;;  %v319_v40 = vor.u32 %v317_v26, %v316_v29 }
  0x19   : > { %v4150_v27 = vsel %vm4139_vm3, 0, %v298_v19  ;;  %v4160_v30 = vsel %vm4139_vm3, 0, %v305_v23  ;;  %v4171_v41 = vsel %vm4139_vm3, %v309_v25, 0  ;;  %v326_v55 = vor.u32 %v324_v45, %v323_v33 }
  0x1a   : > { %3439 = vmatmul.mubr.msk.bf16.vlgmr.msra.gmra.mrb[0].mxu1 %vm479_vm4, %v4150_v27  ;;  %v1136_v31 = vshrl.u32 %v4150_v27, 16  ;;  %v1138_v32 = vshll.u32 %v4150_v27, 16  ;;  %v1145_v34 = vrot.slane %v1143_v24, 1  ;;  %v1147_v36 = vshrl.u32 %v4160_v30, 16 }
  0x1b   : > { %3471 = vmatpush3.bf16.msra.mxu1 %v4044_v3  ;;  %3442 = vmatprep.mubr.msk.bf16.mxu1 %vm479_vm4, %v4160_v30  ;;  %v1149_v37 = vshll.u32 %v4160_v30, 16  ;;  %v4175_v42 = vsel %vm4139_vm3, 0, %v312_v35  ;;  %v1165_v44 = vshll.u32 %v4171_v41, 16  ;;  %v1156_v47 = vrot.slane %v1154_v39, 1  ;;  %v4052_v3 = vld [vmem:[%s4129_s25 + $0x38] sm:$0xff]   ;;  %v4054_v39 = vld [vmem:[%s4129_s25 + $0x48] sm:$0xff]  }
  0x1c   : > { %v1140_v38 = vrot.slane %v1138_v32, 1  ;;  %v4180_v48 = vsel %vm4139_vm3, 0, %v319_v40  ;;  %v1158_v49 = vshrl.u32 %v4175_v42, 16  ;;  %v1160_v53 = vshll.u32 %v4175_v42, 16 }
  0x1d   : > { %v1151_v43 = vrot.slane %v1149_v37, 1  ;;  %v1167_v54 = vrot.slane %v1165_v44, 1  ;;  %v4195_v57 = vsel %vm4139_vm3, %v316_v29, 0  ;;  %v1169_v58 = vshrl.u32 %v4180_v48, 16 }
  0x1e   : > { %v1141_v46 = vor.u32 %v1140_v38, %v1136_v31  ;;  %v1171_v59 = vshll.u32 %v4180_v48, 16  ;;  %v1162_v62 = vrot.slane %v1160_v53, 1  ;;  %v4207_v63 = vsel %vm4139_vm3, 0, %v326_v55 }
  0x1f   : > { %v1152_v52 = vor.u32 %v1151_v43, %v1147_v36  ;;  %v1176_v0 = vshll.u32 %v4195_v57, 16  ;;  %v331_v7 = vshll.u32 %v4050_v50, 16  ;;  %v4217_v8 = vsel %vm4139_vm3, %v323_v33, 0 }
  0x20   : > { %v4191_v56 = vsel %vm1128_vm2, %v1141_v46, %v1145_v34  ;;  %v1173_v5 = vrot.slane %v1171_v59, 1  ;;  %v1163_v9 = vor.u32 %v1162_v62, %v1158_v49  ;;  %v1180_v11 = vshrl.u32 %v4207_v63, 16  ;;  %v4242_v34 = vld [vmem:[%s4924_s1 + $0x30] sm:$0xff]  }
  0x21   : > { %3574 = vmatprep.mubr.msk.bf16.mxu0 %vm479_vm4, %v4191_v56  ;;  %v4203_v61 = vsel %vm1128_vm2, %v1152_v52, %v1156_v47  ;;  %v1178_v10 = vrot.slane %v1176_v0, 1  ;;  %v1182_v12 = vshll.u32 %v4207_v63, 16  ;;  %v330_v14 = vrot.slane %v328_v6, 7  ;;  %v4056_v46 = vld [vmem:[%s4129_s25 + $0x50] sm:$0xff]   ;;  %3504 = vmatprep.subr.bf16.mxu1 %v4242_v34  ;;  %v4057_v0 = vld [vmem:[%s4129_s25 + $0x58] sm:$0xff]  }
  0x22   : > { %3443 = vmatmul.mubr.msk.bf16.gmra.mrb[4].mxu1 %vm479_vm4, %v4175_v42  ;;  %3575 = vmatmul.mubr.msk.bf16.vlgmr.msra.gmra.mrb[0].mxu0 %vm479_vm4, %v4203_v61  ;;  %v1174_v13 = vor.u32 %v1173_v5, %v1169_v58  ;;  %v1187_v16 = vshll.u32 %v4217_v8, 16  ;;  %v335_v17 = vshrl.u32 %v4051_v60, 16  ;;  %v4227_v18 = vsel %vm1128_vm2, %v1163_v9, %v1167_v54  ;;  %v4058_v9 = vld [vmem:[%s4129_s25 + $0x60] sm:$0xff]  }
  0x23   : > { %3607 = vmatpush3.bf16.msra.mxu0 %v4122_v4  ;;  %3446 = vmatprep.mubr.msk.bf16.mxu1 %vm479_vm4, %v4180_v48  ;;  %4933 = vst [vmem:[#allocation2_spill] sm:$0xff] %v4227_v18  ;;  %v1184_v4 = vrot.slane %v1182_v12, 1  ;;  %v338_v19 = vshll.u32 %v4051_v60, 16  ;;  %v342_v21 = vshrl.u32 %v4052_v3, 16  ;;  %v333_v24 = vor.u32 %v331_v7, %v330_v14 }
  0x24   : > { %3640 = vmatprep.subr.bf16.mxu0 %v4187_v51  ;;  %3578 = vmatprep.mubr.msk.bf16.mxu0 %vm479_vm4, %v4227_v18  ;;  %v4233_v23 = vsel %vm1128_vm2, %v1174_v13, %v1178_v10  ;;  %v1189_v25 = vrot.slane %v1187_v16, 1  ;;  %v337_v26 = vrot.slane %v335_v17, 7  ;;  %v4237_v31 = vsel %vm4139_vm3, %v330_v14, 0  ;;  %v4059_v13 = vld [vmem:[%s4129_s25 + $0x68] sm:$0xff]  }
  0x25   : > { %4934 = vst [vmem:[#allocation3_spill] sm:$0xff] %v4233_v23  ;;  %v1185_v29 = vor.u32 %v1184_v4, %v1180_v11  ;;  %v344_v32 = vrot.slane %v342_v21, 7  ;;  %v345_v33 = vshll.u32 %v4052_v3, 16  ;;  %v4246_v35 = vsel %vm4139_vm3, 0, %v333_v24  ;;  %v4060_v24 = vld [vmem:[%s4129_s25 + $0x70] sm:$0xff]  }
  0x26   : > { %v340_v36 = vor.u32 %v338_v19, %v337_v26  ;;  %v1198_v37 = vshll.u32 %v4237_v31, 16  ;;  %v4251_v38 = vsel %vm4139_vm3, %v337_v26, 0  ;;  %v1191_v43 = vshrl.u32 %v4246_v35, 16 }
  0x27   : > { %v4255_v40 = vsel %vm1128_vm2, %v1185_v29, %v1189_v25  ;;  %v1193_v44 = vshll.u32 %v4246_v35, 16  ;;  %v347_v45 = vor.u32 %v345_v33, %v344_v32  ;;  %v1209_v50 = vshll.u32 %v4251_v38, 16 }
  0x28   : > { %v4267_v47 = vsel %vm4139_vm3, 0, %v340_v36  ;;  %v1200_v49 = vrot.slane %v1198_v37, 1  ;;  %v349_v52 = vshrl.u32 %v4053_v22, 16  ;;  %v4284_v62 = vsel %vm4139_vm3, %v344_v32, 0 }
  0x29   : > { %v1195_v53 = vrot.slane %v1193_v44, 1  ;;  %v4276_v54 = vsel %vm4139_vm3, 0, %v347_v45  ;;  %v1202_v55 = vshrl.u32 %v4267_v47, 16  ;;  %v1204_v58 = vshll.u32 %v4267_v47, 16 }
  0x2a   : > { %3447 = vmatmul.mubr.msk.bf16.gmra.mrb[8].mxu1 %vm479_vm4, %v4207_v63  ;;  %3579 = vmatmul.mubr.msk.bf16.gmra.mrb[4].mxu0 %vm479_vm4, %v4233_v23  ;;  %v1211_v59 = vrot.slane %v1209_v50, 1  ;;  %v4280_v60 = vrot.slane %v349_v52, 7  ;;  %v352_v6 = vshll.u32 %v4053_v22, 16  ;;  %v1215_v7 = vshll.u32 %v4276_v54, 16 }
  0x2b   : > { %3450 = vmatprep.mubr.msk.bf16.mxu1 %vm479_vm4, %v4246_v35  ;;  %3582 = vmatprep.mubr.msk.bf16.mxu0 %vm479_vm4, %v4255_v40  ;;  %v1196_v3 = vor.u32 %v1195_v53, %v1191_v43  ;;  %v1206_v5 = vrot.slane %v1204_v58, 1  ;;  %v1213_v10 = vshrl.u32 %v4276_v54, 16  ;;  %v1220_v11 = vshll.u32 %v4284_v62, 16 }
  0x2c   : > { %v356_v12 = vshrl.u32 %v4054_v39, 16  ;;  %v1217_v17 = vrot.slane %v1215_v7, 1  ;;  %v363_v4 = vshrl.u32 %v4056_v46, 16  ;;  %v359_v21 = vshll.u32 %v4054_v39, 16 }
  0x2d   : > { %v4293_v14 = vsel %vm1128_vm2, %v1196_v3, %v1200_v49  ;;  %v1207_v16 = vor.u32 %v1206_v5, %v1202_v55  ;;  %v354_v25 = vor.u32 %v352_v6, %v4280_v60  ;;  %v370_v26 = vshrl.u32 %v4057_v0, 16 }
  0x2e   : > { %v4295_v19 = vrot.slane %v356_v12, 7  ;;  %v1222_v29 = vrot.slane %v1220_v11, 1  ;;  %v365_v32 = vrot.slane %v363_v4, 7  ;;  %v366_v33 = vshll.u32 %v4056_v46, 16 }
  0x2f   : > { %v4299_v22 = vsel %vm1128_vm2, %v1207_v16, %v1211_v59  ;;  %v377_v36 = vshrl.u32 %v4058_v9, 16  ;;  %v1218_v37 = vor.u32 %v1217_v17, %v1213_v10  ;;  %v372_v39 = vrot.slane %v370_v26, 7 }
  0x30   : > { %v373_v43 = vshll.u32 %v4057_v0, 16  ;;  %v384_v44 = vshrl.u32 %v4059_v13, 16  ;;  %v361_v45 = vor.u32 %v359_v21, %v4295_v19  ;;  %v391_v49 = vshrl.u32 %v4060_v24, 16 }
  0x31   : > { %v379_v50 = vrot.slane %v377_v36, 7  ;;  %v380_v52 = vshll.u32 %v4058_v9, 16  ;;  %v387_v55 = vshll.u32 %v4059_v13, 16  ;;  %v368_v58 = vor.u32 %v366_v33, %v365_v32 }
  0x32   : > { %3451 = vmatmul.mubr.msk.bf16.gmra.mrb[12].mxu1 %vm479_vm4, %v4267_v47  ;;  %3583 = vmatmul.mubr.msk.bf16.gmra.mrb[8].mxu0 %vm479_vm4, %v4293_v14  ;;  %v386_v53 = vrot.slane %v384_v44, 7  ;;  %v393_v46 = vrot.slane %v391_v49, 7  ;;  %v394_v59 = vshll.u32 %v4060_v24, 16  ;;  %v4313_v3 = vsel %vm4139_vm3, 0, %v354_v25 }
  0x33   : > { %3454 = vmatprep.mubr.msk.bf16.mxu1 %vm479_vm4, %v4276_v54  ;;  %3586 = vmatprep.mubr.msk.bf16.mxu0 %vm479_vm4, %v4299_v22  ;;  %v4316_v5 = vsel %vm1128_vm2, %v1218_v37, %v1222_v29  ;;  %v375_v6 = vor.u32 %v373_v43, %v372_v39  ;;  %v4320_v0 = vsel %vm4139_vm3, 0, %v361_v45  ;;  %v382_v7 = vor.u32 %v380_v52, %v379_v50 }
  0x34   : > { %v389_v10 = vor.u32 %v387_v55, %v386_v53  ;;  %v2004_v9 = vrot.slane %v4145_v20, 1  ;;  %v4329_v11 = vsel %vm4139_vm3, 0, %v368_v58  ;;  %v396_v12 = vor.u32 %v394_v59, %v393_v46 }
  0x35   : > { %v4333_v13 = vsel %vm4139_vm3, %v365_v32, 0  ;;  %v4341_v20 = vsel %vm4139_vm3, 0, %v375_v6  ;;  %v1246_v16 = vshrl.u32 %v4329_v11, 16  ;;  %v1248_v17 = vshll.u32 %v4329_v11, 16 }
  0x36   : > { %v1253_v4 = vshll.u32 %v4333_v13, 16  ;;  %v2003_v21 = vrot.slane %v4150_v27, 1  ;;  %v4349_v24 = vsel %vm4139_vm3, %v372_v39, 0  ;;  %v1257_v25 = vshrl.u32 %v4341_v20, 16 }
  0x37   : > { %v1259_v26 = vshll.u32 %v4341_v20, 16  ;;  %v4355_v29 = vsel %vm4139_vm3, 0, %v382_v7  ;;  %v4359_v32 = vsel %vm4139_vm3, 0, %v389_v10  ;;  %v1250_v33 = vrot.slane %v1248_v17, 1  ;;  %v4062_v10 = vld [vmem:[%s4129_s25 + $0x78] sm:$0xff]  }
  0x38   : > { %v1255_v36 = vrot.slane %v1253_v4, 1  ;;  %v4363_v37 = vsel %vm4139_vm3, 0, %v396_v12  ;;  %v1264_v43 = vshll.u32 %v4349_v24, 16  ;;  %v4368_v44 = vsel %vm4139_vm3, %v379_v50, 0  ;;  %v4382_v50 = vld [vmem:[%s4924_s1 + $0x28] sm:$0xff]  }
  0x39   : > { %v1261_v39 = vrot.slane %v1259_v26, 1  ;;  %v1251_v45 = vor.u32 %v1250_v33, %v1246_v16  ;;  %v1268_v49 = vshrl.u32 %v4355_v29, 16  ;;  %v1270_v52 = vshll.u32 %v4355_v29, 16 }
  0x3a   : > { %3455 = vmatmul.mubr.msk.bf16.gmra.mrb[16].mxu1 %vm479_vm4, %v4313_v3  ;;  %3587 = vmatmul.mubr.msk.bf16.gmra.mrb[12].mxu0 %vm479_vm4, %v4316_v5  ;;  %v1275_v55 = vshll.u32 %v4368_v44, 16  ;;  %v1266_v59 = vrot.slane %v1264_v43, 1  ;;  %v4375_v6 = vsel %vm4139_vm3, %v386_v53, 0  ;;  %v1279_v7 = vshrl.u32 %v4359_v32, 16 }
  0x3b   : > { %3458 = vmatprep.mubr.msk.bf16.mxu1 %vm479_vm4, %v4320_v0  ;;  %3608 = vmatprep.mubr.msk.bf16.mxu0 %vm479_vm4, %v4203_v61  ;;  %v1262_v58 = vor.u32 %v1261_v39, %v1257_v25  ;;  %v4385_v12 = vsel %vm1128_vm2, %v1251_v45, %v1255_v36  ;;  %v1272_v16 = vrot.slane %v1270_v52, 1  ;;  %v1281_v4 = vshll.u32 %v4359_v32, 16 }
  0x3c   : > { %v1277_v17 = vrot.slane %v1275_v55, 1  ;;  %v1286_v25 = vshll.u32 %v4375_v6, 16  ;;  %v4398_v26 = vsel %vm4139_vm3, %v393_v46, 0  ;;  %v1290_v33 = vshrl.u32 %v4363_v37, 16 }
  0x3d   : > { %v4393_v53 = vsel %vm1128_vm2, %v1262_v58, %v1266_v59  ;;  %v1273_v36 = vor.u32 %v1272_v16, %v1268_v49  ;;  %v1283_v39 = vrot.slane %v1281_v4, 1  ;;  %v1292_v43 = vshll.u32 %v4363_v37, 16 }
  0x3e   : > { %v1297_v45 = vshll.u32 %v4398_v26, 16  ;;  %v1288_v52 = vrot.slane %v1286_v25, 1  ;;  %v398_v55 = vshrl.u32 %v4062_v10, 16  ;;  %v401_v46 = vshll.u32 %v4062_v10, 16 }
  0x3f   : > { %v4410_v58 = vsel %vm2000_vm5, %v2003_v21, %v2004_v9  ;;  %v1284_v49 = vor.u32 %v1283_v39, %v1279_v7  ;;  %v1294_v59 = vrot.slane %v1292_v43, 1  ;;  %v4447_v43 = vsel %vm4139_vm3, %v4295_v19, 0 }
  0x40   : > { %v1299_v16 = vrot.slane %v1297_v45, 1  ;;  %v400_v4 = vrot.slane %v398_v55, 7  ;;  %v1224_v45 = vshrl.u32 %v4313_v3, 16 }
  0x41   : > { %v4416_v1 = vsel %vm1128_vm2, %v1284_v49, %v1288_v52  ;;  %v1235_v49 = vshrl.u32 %v4320_v0, 16 }
  0x42   : > { %3459 = vmatmul.mubr.msk.bf16.gmra.mrb[20].mxu1 %vm479_vm4, %v4329_v11  ;;  %3609 = vmatmul.mubr.msk.bf16.vlgmr.msra.gmra.mrb[0].mxu0 %vm479_vm4, %v4227_v18  ;;  %v1295_v18 = vor.u32 %v1294_v59, %v1290_v33  ;;  %v470_v10 = vsel %vm4139_vm3, %v400_v4, 0  ;;  %v4441_v33 = vsel %vm4139_vm3, %v4280_v60, 0  ;;  %v1242_v60 = vshll.u32 %v4447_v43, 16 }
  0x43   : > { %3641 = vmatpush3.bf16.msra.mxu0 %v4187_v51  ;;  %3462 = vmatprep.mubr.msk.bf16.mxu1 %vm479_vm4, %v4341_v20  ;;  %v4413_v51 = vsel %vm1128_vm2, %v1273_v36, %v1277_v17  ;;  %v1558_v9 = vshll.u32 %v470_v10, 16  ;;  %v1231_v55 = vshll.u32 %v4441_v33, 16 }
  0x44   : > { %3612 = vmatprep.mubr.msk.bf16.mxu0 %vm479_vm4, %v4233_v23  ;;  %3674 = vmatprep.subr.bf16.mxu0 %v4382_v50  ;;  %v403_v23 = vor.u32 %v401_v46, %v400_v4  ;;  %v4421_v25 = vsel %vm1128_vm2, %v1295_v18, %v1299_v16  ;;  %v1226_v18 = vshll.u32 %v4313_v3, 16 }
  0x45   : > { %v1560_v39 = vrot.slane %v1558_v9, 1  ;;  %v1233_v19 = vrot.slane %v1231_v55, 1  ;;  %v1244_v9 = vrot.slane %v1242_v60, 1 }
  0x46   : > { %v4429_v21 = vsel %vm4139_vm3, 0, %v403_v23  ;;  %v1237_v23 = vshll.u32 %v4320_v0, 16  ;;  %v1228_v52 = vrot.slane %v1226_v18, 1 }
  0x47   : > { %v1551_v7 = vshrl.u32 %v4429_v21, 16  ;;  %v1553_v17 = vshll.u32 %v4429_v21, 16 }
  0x48   : > { %v1239_v59 = vrot.slane %v1237_v23, 1  ;;  %v1229_v15 = vor.u32 %v1228_v52, %v1224_v45  ;;  %v2300_v23 = vrot.slane %v4429_v21, 1  ;;  %v2006_v45 = vrot.slane %v4160_v30, 1 }
  0x49   : > { %v1555_v36 = vrot.slane %v1553_v17, 1  ;;  %v2007_v52 = vrot.slane %v4154_v28, 1  ;;  %v2009_v28 = vrot.slane %v4175_v42, 1 }
  0x4a   : > { %3463 = vmatmul.mubr.msk.bf16.gmra.mrb[24].mxu1 %vm479_vm4, %v4355_v29  ;;  %3613 = vmatmul.mubr.msk.bf16.gmra.mrb[4].mxu0 %vm479_vm4, %v4255_v40  ;;  %v1240_v4 = vor.u32 %v1239_v59, %v1235_v49  ;;  %v4465_v18 = vsel %vm1128_vm2, %v1229_v15, %v1233_v19  ;;  %v2012_v49 = vrot.slane %v4180_v48, 1  ;;  %v2013_v59 = vrot.slane %v4195_v57, 1 }
  0x4b   : > { %3466 = vmatprep.mubr.msk.bf16.mxu1 %vm479_vm4, %v4359_v32  ;;  %3616 = vmatprep.mubr.msk.bf16.mxu0 %vm479_vm4, %v4293_v14  ;;  %v1556_v46 = vor.u32 %v1555_v36, %v1551_v7  ;;  %v4470_v7 = vld [vmem:[%s4924_s1 + $0x8] sm:$0xff]   ;;  %v2301_v36 = vrot.slane %v470_v10, 1  ;;  %v4529_v10 = vld [vmem:[%s4924_s1 + $0x40] sm:$0xff]   ;;  %v4532_v55 = vsel %vm2000_vm5, %v2006_v45, %v2007_v52  ;;  %v2016_v57 = vrot.slane %v4217_v8, 1 }
  0x4c   : > { %v4473_v17 = vsel %vm1128_vm2, %v1240_v4, %v1244_v9  ;;  %v2018_v15 = vrot.slane %v4246_v35, 1  ;;  %v2019_v19 = vrot.slane %v4237_v31, 1  ;;  %v2021_v8 = vrot.slane %v4267_v47, 1 }
  0x4d   : > { %v4454_v16 = vsel %vm1128_vm2, %v1556_v46, %v1560_v39  ;;  %v4514_v39 = vsel %vm2000_vm5, %v2300_v23, %v2301_v36  ;;  %v2010_v46 = vrot.slane %v4171_v41, 1  ;;  %v2015_v41 = vrot.slane %v4207_v63, 1 }
  0x4e   : > { %v4570_v9 = vsel %vm2000_vm5, %v2018_v15, %v2019_v19  ;;  %v2022_v31 = vrot.slane %v4251_v38, 1  ;;  %v2024_v23 = vrot.slane %v4276_v54, 1  ;;  %v2025_v36 = vrot.slane %v4284_v62, 1 }
  0x4f   : > { %v4549_v60 = vsel %vm2000_vm5, %v2009_v28, %v2010_v46  ;;  %v4567_v4 = vsel %vm2000_vm5, %v2015_v41, %v2016_v57  ;;  %v2028_v38 = vrot.slane %v4441_v33, 1  ;;  %v2030_v62 = vrot.slane %v4320_v0, 1 }
  0x50   : > { %v4585_v45 = vsel %vm2000_vm5, %v2021_v8, %v2022_v31  ;;  %v4588_v52 = vsel %vm2000_vm5, %v2024_v23, %v2025_v36  ;;  %v2031_v28 = vrot.slane %v4447_v43, 1  ;;  %v2034_v33 = vrot.slane %v4333_v13, 1 }
  0x51   : > { %v2036_v43 = vrot.slane %v4341_v20, 1  ;;  %v2037_v46 = vrot.slane %v4349_v24, 1  ;;  %v2040_v13 = vrot.slane %v4368_v44, 1  ;;  %v2042_v24 = vrot.slane %v4359_v32, 1 }
  0x52   : > { %3467 = vmatmul.mubr.msk.bf16.gmra.mrb[28].mxu1 %vm479_vm4, %v4363_v37  ;;  %3617 = vmatmul.mubr.msk.bf16.gmra.mrb[8].mxu0 %vm479_vm4, %v4299_v22  ;;  %v2046_v44 = vrot.slane %v4398_v26, 1 }
  0x53   : > { %3472 = vmatprep.mubr.msk.bf16.mxu1 %vm479_vm4, %v4150_v27  ;;  %3620 = vmatprep.mubr.msk.bf16.mxu0 %vm479_vm4, %v4316_v5  ;;  %v4935_v27 = vmov 0  }
  0x5a   : > { %3473 = vmatmul.mubr.msk.bf16.vlgmr.msra.gmra.mrb[0].mxu1 %vm479_vm4, %v4160_v30  ;;  %3621 = vmatmul.mubr.msk.bf16.gmra.mrb[12].mxu0 %vm479_vm4, %v4465_v18 }
  0x5b   : > { %3505 = vmatpush3.bf16.msra.mxu1 %v4242_v34  ;;  %3476 = vmatprep.mubr.msk.bf16.mxu1 %vm479_vm4, %v4175_v42  ;;  %v4510_v34 = vrot.slane %v4935_v27, 1 }
  0x5c   : > { %3624 = vmatprep.mubr.msk.bf16.mxu0 %vm479_vm4, %v4473_v17  ;;  %3538 = vmatprep.subr.bf16.mxu1 %v4470_v7 }
  0x62   : > { %3477 = vmatmul.mubr.msk.bf16.gmra.mrb[4].mxu1 %vm479_vm4, %v4180_v48  ;;  %3625 = vmatmul.mubr.msk.bf16.gmra.mrb[16].mxu0 %vm479_vm4, %v4385_v12 }
  0x63   : > { %3480 = vmatprep.mubr.msk.bf16.mxu1 %vm479_vm4, %v4207_v63  ;;  %3628 = vmatprep.mubr.msk.bf16.mxu0 %vm479_vm4, %v4393_v53 }
  0x6a   : > { %3481 = vmatmul.mubr.msk.bf16.gmra.mrb[8].mxu1 %vm479_vm4, %v4246_v35  ;;  %3629 = vmatmul.mubr.msk.bf16.gmra.mrb[20].mxu0 %vm479_vm4, %v4413_v51 }
  0x6b   : > { %3484 = vmatprep.mubr.msk.bf16.mxu1 %vm479_vm4, %v4267_v47  ;;  %3632 = vmatprep.mubr.msk.bf16.mxu0 %vm479_vm4, %v4416_v1 }
  0x72   : > { %3485 = vmatmul.mubr.msk.bf16.gmra.mrb[12].mxu1 %vm479_vm4, %v4276_v54  ;;  %3633 = vmatmul.mubr.msk.bf16.gmra.mrb[24].mxu0 %vm479_vm4, %v4421_v25 }
  0x73   : > { %3488 = vmatprep.mubr.msk.bf16.mxu1 %vm479_vm4, %v4313_v3  ;;  %3636 = vmatprep.mubr.msk.bf16.mxu0 %vm479_vm4, %v4454_v16 }
  0x7a   : > { %3489 = vmatmul.mubr.msk.bf16.gmra.mrb[16].mxu1 %vm479_vm4, %v4320_v0  ;;  %3637 = vmatmul.mubr.msk.bf16.gmra.mrb[28].mxu0 %vm479_vm4, %v4510_v34 }
  0x7b   : > { %3492 = vmatprep.mubr.msk.bf16.mxu1 %vm479_vm4, %v4329_v11  ;;  %3642 = vmatprep.mubr.msk.bf16.mxu0 %vm479_vm4, %v4510_v34 }
  0x82   : > { %3493 = vmatmul.mubr.msk.bf16.gmra.mrb[20].mxu1 %vm479_vm4, %v4341_v20  ;;  %3643 = vmatmul.mubr.msk.bf16.vlgmr.msra.gmra.mrb[0].mxu0 %vm479_vm4, %v4410_v58 }
  0x83   : > { %3675 = vmatpush3.bf16.msra.mxu0 %v4382_v50  ;;  %3496 = vmatprep.mubr.msk.bf16.mxu1 %vm479_vm4, %v4355_v29  ;;  %v4552_v50 = vsel %vm2000_vm5, %v2012_v49, %v2013_v59  ;;  %v2043_v59 = vrot.slane %v4375_v6, 1 }
  0x84   : > { %3646 = vmatprep.mubr.msk.bf16.mxu0 %vm479_vm4, %v4532_v55  ;;  %3708 = vmatprep.subr.bf16.mxu0 %v4529_v10 }
  0x8a   : > { %3497 = vmatmul.mubr.msk.bf16.gmra.mrb[24].mxu1 %vm479_vm4, %v4359_v32  ;;  %3647 = vmatmul.mubr.msk.bf16.gmra.mrb[4].mxu0 %vm479_vm4, %v4549_v60 }
  0x8b   : > { %3500 = vmatprep.mubr.msk.bf16.mxu1 %vm479_vm4, %v4363_v37  ;;  %3650 = vmatprep.mubr.msk.bf16.mxu0 %vm479_vm4, %v4552_v50 }
  0x92   : > { %3501 = vmatmul.mubr.msk.bf16.gmra.mrb[28].mxu1 %vm479_vm4, %v4429_v21  ;;  %3651 = vmatmul.mubr.msk.bf16.gmra.mrb[8].mxu0 %vm479_vm4, %v4567_v4 }
  0x93   : > { %3506 = vmatprep.mubr.msk.bf16.mxu1 %vm479_vm4, %v4160_v30  ;;  %3654 = vmatprep.mubr.msk.bf16.mxu0 %vm479_vm4, %v4570_v9  ;;  %v2027_v30 = vrot.slane %v4313_v3, 1 }
  0x9a   : > { %3507 = vmatmul.mubr.msk.bf16.vlgmr.msra.gmra.mrb[0].mxu1 %vm479_vm4, %v4175_v42  ;;  %3655 = vmatmul.mubr.msk.bf16.gmra.mrb[12].mxu0 %vm479_vm4, %v4585_v45  ;;  %v4605_v42 = vsel %vm2000_vm5, %v2027_v30, %v2028_v38 }
  0x9b   : > { %3539 = vmatpush3.bf16.msra.mxu1 %v4470_v7  ;;  %3510 = vmatprep.mubr.msk.bf16.mxu1 %vm479_vm4, %v4180_v48  ;;  %v4608_v7 = vsel %vm2000_vm5, %v2030_v62, %v2031_v28  ;;  %v2033_v48 = vrot.slane %v4329_v11, 1 }
  0x9c   : > { %3658 = vmatprep.mubr.msk.bf16.mxu0 %vm479_vm4, %v4588_v52  ;;  %3742 = vmatprep.subr.bf16.mxu1 %v4112_v2 }
  0x9d   : > { %v4623_v49 = vsel %vm2000_vm5, %v2033_v48, %v2034_v33 }
  0xa2   : > { %3511 = vmatmul.mubr.msk.bf16.gmra.mrb[4].mxu1 %vm479_vm4, %v4207_v63  ;;  %3659 = vmatmul.mubr.msk.bf16.gmra.mrb[16].mxu0 %vm479_vm4, %v4605_v42  ;;  %v4626_v63 = vsel %vm2000_vm5, %v2036_v43, %v2037_v46 }
  0xa3   : > { %3514 = vmatprep.mubr.msk.bf16.mxu1 %vm479_vm4, %v4246_v35  ;;  %3662 = vmatprep.mubr.msk.bf16.mxu0 %vm479_vm4, %v4608_v7  ;;  %v2039_v35 = vrot.slane %v4355_v29, 1 }
  0xa5   : > { %v4641_v41 = vsel %vm2000_vm5, %v2039_v35, %v2040_v13 }
  0xaa   : > { %3515 = vmatmul.mubr.msk.bf16.gmra.mrb[8].mxu1 %vm479_vm4, %v4267_v47  ;;  %3663 = vmatmul.mubr.msk.bf16.gmra.mrb[20].mxu0 %vm479_vm4, %v4623_v49  ;;  %v4644_v47 = vsel %vm2000_vm5, %v2042_v24, %v2043_v59 }
  0xab   : > { %3518 = vmatprep.mubr.msk.bf16.mxu1 %vm479_vm4, %v4276_v54  ;;  %3666 = vmatprep.mubr.msk.bf16.mxu0 %vm479_vm4, %v4626_v63  ;;  %v2045_v54 = vrot.slane %v4363_v37, 1 }
  0xad   : > { %v4657_v6 = vsel %vm2000_vm5, %v2045_v54, %v2046_v44 }
  0xb2   : > { %3519 = vmatmul.mubr.msk.bf16.gmra.mrb[12].mxu1 %vm479_vm4, %v4313_v3  ;;  %3667 = vmatmul.mubr.msk.bf16.gmra.mrb[24].mxu0 %vm479_vm4, %v4641_v41  ;;  %v4936_v3 = vld [vmem:[#allocation2_spill] sm:$0xff] }
  0xb3   : > { %3522 = vmatprep.mubr.msk.bf16.mxu1 %vm479_vm4, %v4320_v0  ;;  %3670 = vmatprep.mubr.msk.bf16.mxu0 %vm479_vm4, %v4644_v47  ;;  %v4937_v0 = vld [vmem:[#allocation3_spill] sm:$0xff] }
  0xba   : > { %3523 = vmatmul.mubr.msk.bf16.gmra.mrb[16].mxu1 %vm479_vm4, %v4329_v11  ;;  %3671 = vmatmul.mubr.msk.bf16.gmra.mrb[28].mxu0 %vm479_vm4, %v4657_v6 }
  0xbb   : > { %3526 = vmatprep.mubr.msk.bf16.mxu1 %vm479_vm4, %v4341_v20  ;;  %3676 = vmatprep.mubr.msk.bf16.mxu0 %vm479_vm4, %v4410_v58  ;;  %v4807_v58 = vld [vmem:[%s4925_s2] ss:$0 sm:$0xff] }
  0xc2   : > { %3527 = vmatmul.mubr.msk.bf16.gmra.mrb[20].mxu1 %vm479_vm4, %v4355_v29  ;;  %3677 = vmatmul.mubr.msk.bf16.vlgmr.msra.gmra.mrb[0].mxu0 %vm479_vm4, %v4532_v55 }
  0xc3   : > { %3709 = vmatpush3.bf16.msra.mxu0 %v4529_v10  ;;  %3530 = vmatprep.mubr.msk.bf16.mxu1 %vm479_vm4, %v4359_v32 }
  0xc4   : > { %3680 = vmatprep.mubr.msk.bf16.mxu0 %vm479_vm4, %v4549_v60 }
  0xca   : > { %3531 = vmatmul.mubr.msk.bf16.gmra.mrb[24].mxu1 %vm479_vm4, %v4363_v37  ;;  %3681 = vmatmul.mubr.msk.bf16.gmra.mrb[4].mxu0 %vm479_vm4, %v4552_v50 }
  0xcb   : > { %3534 = vmatprep.mubr.msk.bf16.mxu1 %vm479_vm4, %v4429_v21  ;;  %3684 = vmatprep.mubr.msk.bf16.mxu0 %vm479_vm4, %v4567_v4 }
  0xd2   : > { %3535 = vmatmul.mubr.bf16.gmra.mrb[28].mxu1 %v4935_v27  ;;  %3685 = vmatmul.mubr.msk.bf16.gmra.mrb[8].mxu0 %vm479_vm4, %v4570_v9 }
  0xd3   : > { %3540 = vmatprep.mubr.msk.bf16.mxu1 %vm479_vm4, %v4510_v34  ;;  %3688 = vmatprep.mubr.msk.bf16.mxu0 %vm479_vm4, %v4585_v45 }
  0xda   : > { %3541 = vmatmul.mubr.msk.bf16.vlgmr.msra.gmra.mrb[0].mxu1 %vm479_vm4, %v4191_v56  ;;  %3689 = vmatmul.mubr.msk.bf16.gmra.mrb[12].mxu0 %vm479_vm4, %v4588_v52 }
  0xdb   : > { %3743 = vmatpush3.bf16.msra.mxu1 %v4112_v2  ;;  %3544 = vmatprep.mubr.msk.bf16.mxu1 %vm479_vm4, %v4203_v61 }
  0xdc   : > { %3692 = vmatprep.mubr.msk.bf16.mxu0 %vm479_vm4, %v4605_v42 }
  0xe2   : > { %3545 = vmatmul.mubr.msk.bf16.gmra.mrb[4].mxu1 %vm479_vm4, %v4936_v3  ;;  %3693 = vmatmul.mubr.msk.bf16.gmra.mrb[16].mxu0 %vm479_vm4, %v4608_v7 }
  0xe3   : > { %3548 = vmatprep.mubr.msk.bf16.mxu1 %vm479_vm4, %v4937_v0  ;;  %3696 = vmatprep.mubr.msk.bf16.mxu0 %vm479_vm4, %v4623_v49 }
  0xea   : > { %3549 = vmatmul.mubr.msk.bf16.gmra.mrb[8].mxu1 %vm479_vm4, %v4255_v40  ;;  %3697 = vmatmul.mubr.msk.bf16.gmra.mrb[20].mxu0 %vm479_vm4, %v4626_v63 }
  0xeb   : > { %3552 = vmatprep.mubr.msk.bf16.mxu1 %vm479_vm4, %v4293_v14  ;;  %3700 = vmatprep.mubr.msk.bf16.mxu0 %vm479_vm4, %v4641_v41 }
  0xf2   : > { %3553 = vmatmul.mubr.msk.bf16.gmra.mrb[12].mxu1 %vm479_vm4, %v4299_v22  ;;  %3701 = vmatmul.mubr.msk.bf16.gmra.mrb[24].mxu0 %vm479_vm4, %v4644_v47 }
  0xf3   : > { %3556 = vmatprep.mubr.msk.bf16.mxu1 %vm479_vm4, %v4316_v5  ;;  %3704 = vmatprep.mubr.msk.bf16.mxu0 %vm479_vm4, %v4657_v6 }
  0xfa   : > { %3557 = vmatmul.mubr.msk.bf16.gmra.mrb[16].mxu1 %vm479_vm4, %v4465_v18  ;;  %3705 = vmatmul.mubr.msk.bf16.gmra.mrb[28].mxu0 %vm479_vm4, %v4514_v39 }
  0xfb   : > { %3560 = vmatprep.mubr.msk.bf16.mxu1 %vm479_vm4, %v4473_v17  ;;  %3710 = vmatprep.mubr.msk.bf16.mxu0 %vm479_vm4, %v4532_v55 }
 0x102   : > { %3561 = vmatmul.mubr.msk.bf16.gmra.mrb[20].mxu1 %vm479_vm4, %v4385_v12  ;;  %3711 = vmatmul.mubr.msk.bf16.vlgmr.msra.gmra.mrb[0].mxu0 %vm479_vm4, %v4549_v60 }
 0x103   : > { %3564 = vmatprep.mubr.msk.bf16.mxu1 %vm479_vm4, %v4393_v53  ;;  %3714 = vmatprep.mubr.msk.bf16.mxu0 %vm479_vm4, %v4552_v50 }
 0x10a   : > { %3565 = vmatmul.mubr.msk.bf16.gmra.mrb[24].mxu1 %vm479_vm4, %v4413_v51  ;;  %3715 = vmatmul.mubr.msk.bf16.gmra.mrb[4].mxu0 %vm479_vm4, %v4567_v4 }
 0x10b   : > { %3568 = vmatprep.mubr.msk.bf16.mxu1 %vm479_vm4, %v4416_v1  ;;  %3718 = vmatprep.mubr.msk.bf16.mxu0 %vm479_vm4, %v4570_v9 }
 0x112   : > { %3569 = vmatmul.mubr.msk.bf16.gmra.mrb[28].mxu1 %vm479_vm4, %v4421_v25  ;;  %3719 = vmatmul.mubr.msk.bf16.gmra.mrb[8].mxu0 %vm479_vm4, %v4585_v45 }
 0x113   : > { %3590 = vmatprep.mubr.msk.bf16.mxu1 %vm479_vm4, %v4465_v18  ;;  %3722 = vmatprep.mubr.msk.bf16.mxu0 %vm479_vm4, %v4588_v52 }
 0x11a   : > { %3591 = vmatmul.mubr.msk.bf16.vlgmr.msra.gmra.mrb[16].mxu1 %vm479_vm4, %v4473_v17  ;;  %3723 = vmatmul.mubr.msk.bf16.gmra.mrb[12].mxu0 %vm479_vm4, %v4605_v42 }
 0x11b   : > { %3594 = vmatprep.mubr.msk.bf16.mxu1 %vm479_vm4, %v4385_v12  ;;  %3726 = vmatprep.mubr.msk.bf16.mxu0 %vm479_vm4, %v4608_v7 }
 0x122   : > { %3595 = vmatmul.mubr.msk.bf16.gmra.mrb[20].mxu1 %vm479_vm4, %v4393_v53  ;;  %3727 = vmatmul.mubr.msk.bf16.gmra.mrb[16].mxu0 %vm479_vm4, %v4623_v49 }
 0x123   : > { %3598 = vmatprep.mubr.msk.bf16.mxu1 %vm479_vm4, %v4413_v51  ;;  %3730 = vmatprep.mubr.msk.bf16.mxu0 %vm479_vm4, %v4626_v63 }
 0x12a   : > { %3599 = vmatmul.mubr.msk.bf16.gmra.mrb[24].mxu1 %vm479_vm4, %v4416_v1  ;;  %3731 = vmatmul.mubr.msk.bf16.gmra.mrb[20].mxu0 %vm479_vm4, %v4641_v41 }
 0x12b   : > { %3602 = vmatprep.mubr.msk.bf16.mxu1 %vm479_vm4, %v4421_v25  ;;  %3734 = vmatprep.mubr.msk.bf16.mxu0 %vm479_vm4, %v4644_v47 }
 0x132   : > { %3603 = vmatmul.mubr.msk.bf16.gmra.mrb[28].mxu1 %vm479_vm4, %v4454_v16  ;;  %3735 = vmatmul.mubr.msk.bf16.gmra.mrb[24].mxu0 %vm479_vm4, %v4657_v6 }
 0x133   : > { %3738 = vmatprep.mubr.msk.bf16.mxu0 %vm479_vm4, %v4514_v39 }
 0x13a   : > { %3739 = vmatmul.mubr.msk.bf16.gmra.mrb[28].mxu0 %vm479_vm4, %v4510_v34 }
 0x1ad   : > { %v3542_v1 = vpop.f32.mrb[0].mxu1 }
 0x1ae   : > { %v1392_v2 = vpop.f32.mrb[1].mxu1  ;;  %v3744_v51 = vadd.f32 %v3542_v1, %v4807_v58 }
 0x1af   : > { %v3543_v56 = vpop.f32.mrb[2].mxu1  ;;  %v3746_v25 = vadd.f32 %v4807_v58, %v1392_v2 }
 0x1b0   : > { %v1395_v61 = vpop.f32.mrb[3].mxu1  ;;  %v3748_v16 = vadd.f32 %v3543_v56, %v4807_v58 }
 0x1b1   : > { %v3750_v27 = vadd.f32 %v4807_v58, %v1395_v61 }
 0x1b5   : > { %v3546_v40 = vpop.f32.mrb[4].mxu1 }
 0x1b6   : > { %v1408_v14 = vpop.f32.mrb[5].mxu1  ;;  %v3752_v31 = vadd.f32 %v3546_v40, %v4807_v58 }
 0x1b7   : > { %v3547_v22 = vpop.f32.mrb[6].mxu1  ;;  %v3754_v45 = vadd.f32 %v4807_v58, %v1408_v14 }
 0x1b8   : > { %v1411_v5 = vpop.f32.mrb[7].mxu1  ;;  %v3756_v62 = vadd.f32 %v3547_v22, %v4807_v58 }
 0x1b9   : > { %v3758_v48 = vadd.f32 %v4807_v58, %v1411_v5 }
 0x1bd   : > { %v4788_v11 = vpop.f32.mrb[8].mxu1 }
 0x1be   : > { %v4790_v20 = vpop.f32.mrb[9].mxu1  ;;  %v3760_v44 = vadd.f32 %v4788_v11, %v4807_v58 }
 0x1bf   : > { %v4792_v29 = vpop.f32.mrb[10].mxu1  ;;  %v3762_v0 = vadd.f32 %v4807_v58, %v4790_v20 }
 0x1c0   : > { %v4794_v32 = vpop.f32.mrb[11].mxu1  ;;  %v3764_v61 = vadd.f32 %v4792_v29, %v4807_v58 }
 0x1c1   : > { %v3766_v5 = vadd.f32 %v4807_v58, %v4794_v32 }
 0x1c5   : > { %v4796_v37 = vpop.f32.mrb[12].mxu1 }
 0x1c6   : > { %v4798_v12 = vpop.f32.mrb[13].mxu1 }
 0x1c7   : > { %v4800_v53 = vpop.f32.mrb[14].mxu1 }
 0x1c8   : > { %v4802_v26 = vpop.f32.mrb[15].mxu1 }
 0x1d5   : > { %v3712_v21 = vpop.f32.mrb[0].mxu0 }
 0x1d6   : > { %v3745_v18 = vadd.f32 %v3744_v51, %v3712_v21  ;;  %v2551_v17 = vpop.f32.mrb[1].mxu0 }
 0x1d7   : > { %v3747_v34 = vadd.f32 %v3746_v25, %v2551_v17  ;;  %v3713_v39 = vpop.f32.mrb[2].mxu0 }
 0x1d8   : > { %vm2712_vm6 = vcmp.gt.f32.partialorder %v3745_v18, 0.0  ;;  %v2744_v10 = vmul.f32 0.2, %v3745_v18  ;;  %v3749_v55 = vadd.f32 %v3748_v16, %v3713_v39  ;;  %v2554_v60 = vpop.f32.mrb[3].mxu0  ;;  %v3768_v39 = vadd.f32 %v4796_v37, %v4807_v58 }
 0x1d9   : > { %vm2710_vm7 = vcmp.gt.f32.partialorder %v3747_v34, 0.0  ;;  %v2742_v50 = vmul.f32 0.2, %v3747_v34  ;;  %v3751_v57 = vadd.f32 %v3750_v27, %v2554_v60  ;;  %v3770_v60 = vadd.f32 %v4807_v58, %v4798_v12 }
 0x1da   : > { %v2776_v15 = vsel %vm2712_vm6, %v3745_v18, %v2744_v10  ;;  %vm2713_vm9 = vcmp.gt.f32.partialorder %v3749_v55, 0.0  ;;  %v2745_v19 = vmul.f32 0.2, %v3749_v55 }
 0x1db   : > { %v3253_v4 = vpack.c.bf16 %v2776_v15, %v2776_v15  ;;  %v2774_v9 = vsel %vm2710_vm7, %v3747_v34, %v2742_v50  ;;  %vm2711_vm10 = vcmp.gt.f32.partialorder %v3751_v57, 0.0  ;;  %v2743_v8 = vmul.f32 0.2, %v3751_v57 }
 0x1dc   : > { %v3251_v23 = vpack.c.bf16 %v2774_v9, %v2774_v9  ;;  %v2777_v36 = vsel %vm2713_vm9, %v3749_v55, %v2745_v19 }
 0x1dd   : > { %2937 = vst.msk [vmem:[%s4818_s15 + $0x8] sm:$0xf] %vm2934_vm8, %v3253_v4  ;;  %v3254_v52 = vpack.c.bf16 %v2777_v36, %v2777_v36  ;;  %v2775_v30 = vsel %vm2711_vm10, %v3751_v57, %v2743_v8  ;;  %v3716_v38 = vpop.f32.mrb[4].mxu0  ;;  %v3772_v4 = vadd.f32 %v4800_v53, %v4807_v58 }
 0x1de   : > { %2935 = vst.msk [vmem:[%s4818_s15] sm:$0xf] %vm2934_vm8, %v3251_v23  ;;  %v3252_v28 = vpack.c.bf16 %v2775_v30, %v2775_v30  ;;  %v3753_v42 = vadd.f32 %v3752_v31, %v3716_v38  ;;  %v2567_v7 = vpop.f32.mrb[5].mxu0  ;;  %v3774_v23 = vadd.f32 %v4807_v58, %v4802_v26 }
 0x1df   : > { %2938 = vst.msk [vmem:[%s4818_s15 + $0xc] sm:$0xf] %vm2934_vm8, %v3254_v52  ;;  %v3755_v33 = vadd.f32 %v3754_v45, %v2567_v7  ;;  %v3717_v43 = vpop.f32.mrb[6].mxu0 }
 0x1e0   : > { %2936 = vst.msk [vmem:[%s4818_s15 + $0x4] sm:$0xf] %vm2934_vm8, %v3252_v28  ;;  %vm2716_vm11 = vcmp.gt.f32.partialorder %v3753_v42, 0.0  ;;  %v2748_v46 = vmul.f32 0.2, %v3753_v42  ;;  %v3757_v49 = vadd.f32 %v3756_v62, %v3717_v43  ;;  %v2570_v63 = vpop.f32.mrb[7].mxu0 }
 0x1e1   : > { %vm2714_vm12 = vcmp.gt.f32.partialorder %v3755_v33, 0.0  ;;  %v2746_v35 = vmul.f32 0.2, %v3755_v33  ;;  %v3759_v13 = vadd.f32 %v3758_v48, %v2570_v63 }
 0x1e2   : > { %v2780_v24 = vsel %vm2716_vm11, %v3753_v42, %v2748_v46  ;;  %vm2717_vm13 = vcmp.gt.f32.partialorder %v3757_v49, 0.0  ;;  %v2749_v59 = vmul.f32 0.2, %v3757_v49 }
 0x1e3   : > { %v3257_v41 = vpack.c.bf16 %v2780_v24, %v2780_v24  ;;  %v2778_v47 = vsel %vm2714_vm12, %v3755_v33, %v2746_v35  ;;  %vm2715_vm14 = vcmp.gt.f32.partialorder %v3759_v13, 0.0  ;;  %v2747_v54 = vmul.f32 0.2, %v3759_v13 }
 0x1e4   : > { %v3255_v6 = vpack.c.bf16 %v2778_v47, %v2778_v47  ;;  %v2781_v3 = vsel %vm2717_vm13, %v3757_v49, %v2749_v59 }
 0x1e5   : > { %2941 = vst.msk [vmem:[%s4818_s15 + $0x18] sm:$0xf] %vm2934_vm8, %v3257_v41  ;;  %v3258_v1 = vpack.c.bf16 %v2781_v3, %v2781_v3  ;;  %v2779_v2 = vsel %vm2715_vm14, %v3759_v13, %v2747_v54  ;;  %v3720_v56 = vpop.f32.mrb[8].mxu0 }
 0x1e6   : > { %2939 = vst.msk [vmem:[%s4818_s15 + $0x10] sm:$0xf] %vm2934_vm8, %v3255_v6  ;;  %v3256_v40 = vpack.c.bf16 %v2779_v2, %v2779_v2  ;;  %v3761_v14 = vadd.f32 %v3760_v44, %v3720_v56  ;;  %v2583_v22 = vpop.f32.mrb[9].mxu0 }
 0x1e7   : > { %2942 = vst.msk [vmem:[%s4818_s15 + $0x1c] sm:$0xf] %vm2934_vm8, %v3258_v1  ;;  %v3763_v11 = vadd.f32 %v3762_v0, %v2583_v22  ;;  %v3721_v20 = vpop.f32.mrb[10].mxu0 }
 0x1e8   : > { %2940 = vst.msk [vmem:[%s4818_s15 + $0x14] sm:$0xf] %vm2934_vm8, %v3256_v40  ;;  %vm2720_vm15 = vcmp.gt.f32.partialorder %v3761_v14, 0.0  ;;  %v2752_v51 = vmul.f32 0.2, %v3761_v14  ;;  %v3765_v25 = vadd.f32 %v3764_v61, %v3721_v20  ;;  %v2586_v21 = vpop.f32.mrb[11].mxu0 }
 0x1e9   : > { %vm2718_vm0 = vcmp.gt.f32.partialorder %v3763_v11, 0.0  ;;  %v2750_v29 = vmul.f32 0.2, %v3763_v11  ;;  %v3767_v16 = vadd.f32 %v3766_v5, %v2586_v21 }
 0x1ea   : > { %v2784_v18 = vsel %vm2720_vm15, %v3761_v14, %v2752_v51  ;;  %vm2721_vm1 = vcmp.gt.f32.partialorder %v3765_v25, 0.0  ;;  %v2753_v17 = vmul.f32 0.2, %v3765_v25 }
 0x1eb   : > { %v3261_v27 = vpack.c.bf16 %v2784_v18, %v2784_v18  ;;  %v2782_v32 = vsel %vm2718_vm0, %v3763_v11, %v2750_v29  ;;  %vm2719_vm2 = vcmp.gt.f32.partialorder %v3767_v16, 0.0  ;;  %v2751_v34 = vmul.f32 0.2, %v3767_v16 }
 0x1ec   : > { %v3259_v10 = vpack.c.bf16 %v2782_v32, %v2782_v32  ;;  %v2785_v55 = vsel %vm2721_vm1, %v3765_v25, %v2753_v17 }
 0x1ed   : > { %2945 = vst.msk [vmem:[%s4818_s15 + $0x28] sm:$0xf] %vm2934_vm8, %v3261_v27  ;;  %v3262_v50 = vpack.c.bf16 %v2785_v55, %v2785_v55  ;;  %v2783_v57 = vsel %vm2719_vm2, %v3767_v16, %v2751_v34  ;;  %v3592_v15 = vpop.f32.mrb[16].mxu1  ;;  %v3724_v19 = vpop.f32.mrb[12].mxu0 }
 0x1ee   : > { %2943 = vst.msk [vmem:[%s4818_s15 + $0x20] sm:$0xf] %vm2934_vm8, %v3259_v10  ;;  %v3260_v9 = vpack.c.bf16 %v2783_v57, %v2783_v57  ;;  %v3769_v37 = vadd.f32 %v3768_v39, %v3724_v19  ;;  %v1672_v8 = vpop.f32.mrb[17].mxu1  ;;  %v2599_v31 = vpop.f32.mrb[13].mxu0  ;;  %v3776_v43 = vadd.f32 %v3592_v15, %v4807_v58 }
 0x1ef   : > { %2946 = vst.msk [vmem:[%s4818_s15 + $0x2c] sm:$0xf] %vm2934_vm8, %v3262_v50  ;;  %v3771_v12 = vadd.f32 %v3770_v60, %v2599_v31  ;;  %v3593_v36 = vpop.f32.mrb[18].mxu1  ;;  %v3725_v45 = vpop.f32.mrb[14].mxu0  ;;  %v3778_v63 = vadd.f32 %v4807_v58, %v1672_v8 }
 0x1f0   : > { %2944 = vst.msk [vmem:[%s4818_s15 + $0x24] sm:$0xf] %vm2934_vm8, %v3260_v9  ;;  %vm2724_vm3 = vcmp.gt.f32.partialorder %v3769_v37, 0.0  ;;  %v2756_v52 = vmul.f32 0.2, %v3769_v37  ;;  %v3773_v30 = vadd.f32 %v3772_v4, %v3725_v45  ;;  %v1675_v53 = vpop.f32.mrb[19].mxu1  ;;  %v3780_v41 = vadd.f32 %v3593_v36, %v4807_v58 }
 0x1f1   : > { %v2602_v38 = vpop.f32.mrb[15].mxu0  ;;  %vm2722_vm4 = vcmp.gt.f32.partialorder %v3771_v12, 0.0  ;;  %v2754_v62 = vmul.f32 0.2, %v3771_v12  ;;  %v3782_v3 = vadd.f32 %v4807_v58, %v1675_v53 }
 0x1f2   : > { %v3775_v28 = vadd.f32 %v3774_v23, %v2602_v38  ;;  %v2788_v42 = vsel %vm2724_vm3, %v3769_v37, %v2756_v52  ;;  %vm2725_vm5 = vcmp.gt.f32.partialorder %v3773_v30, 0.0  ;;  %v2757_v26 = vmul.f32 0.2, %v3773_v30 }
 0x1f3   : > { %v3265_v7 = vpack.c.bf16 %v2788_v42, %v2788_v42  ;;  %v2786_v48 = vsel %vm2722_vm4, %v3771_v12, %v2754_v62 }
 0x1f4   : > { %vm2723_vm6 = vcmp.gt.f32.partialorder %v3775_v28, 0.0  ;;  %v2755_v33 = vmul.f32 0.2, %v3775_v28  ;;  %v3263_v46 = vpack.c.bf16 %v2786_v48, %v2786_v48  ;;  %v2789_v49 = vsel %vm2725_vm5, %v3773_v30, %v2757_v26 }
 0x1f5   : > { %2949 = vst.msk [vmem:[%s4818_s15 + $0x38] sm:$0xf] %vm2934_vm8, %v3265_v7  ;;  %v3266_v35 = vpack.c.bf16 %v2789_v49, %v2789_v49  ;;  %v3596_v24 = vpop.f32.mrb[20].mxu1  ;;  %v3728_v59 = vpop.f32.mrb[16].mxu0 }
 0x1f6   : > { %v2787_v13 = vsel %vm2723_vm6, %v3775_v28, %v2755_v33  ;;  %2947 = vst.msk [vmem:[%s4818_s15 + $0x30] sm:$0xf] %vm2934_vm8, %v3263_v46  ;;  %v3777_v54 = vadd.f32 %v3776_v43, %v3728_v59  ;;  %v1688_v44 = vpop.f32.mrb[21].mxu1  ;;  %v2615_v6 = vpop.f32.mrb[17].mxu0  ;;  %v3784_v29 = vadd.f32 %v3596_v24, %v4807_v58 }
 0x1f7   : > { %v3264_v47 = vpack.c.bf16 %v2787_v13, %v2787_v13  ;;  %2950 = vst.msk [vmem:[%s4818_s15 + $0x3c] sm:$0xf] %vm2934_vm8, %v3266_v35  ;;  %v3779_v0 = vadd.f32 %v3778_v63, %v2615_v6  ;;  %v3597_v1 = vpop.f32.mrb[22].mxu1  ;;  %v3729_v2 = vpop.f32.mrb[18].mxu0  ;;  %v3786_v17 = vadd.f32 %v4807_v58, %v1688_v44 }
 0x1f8   : > { %vm2728_vm7 = vcmp.gt.f32.partialorder %v3777_v54, 0.0  ;;  %v2760_v56 = vmul.f32 0.2, %v3777_v54  ;;  %v3781_v61 = vadd.f32 %v3780_v41, %v3729_v2  ;;  %v1691_v40 = vpop.f32.mrb[23].mxu1  ;;  %v2618_v14 = vpop.f32.mrb[19].mxu0  ;;  %v3788_v10 = vadd.f32 %v3597_v1, %v4807_v58 }
 0x1f9   : > { %2948 = vst.msk [vmem:[%s4818_s15 + $0x34] sm:$0xf] %vm2934_vm8, %v3264_v47  ;;  %vm2726_vm9 = vcmp.gt.f32.partialorder %v3779_v0, 0.0  ;;  %v2758_v22 = vmul.f32 0.2, %v3779_v0  ;;  %v3783_v5 = vadd.f32 %v3782_v3, %v2618_v14  ;;  %v3790_v15 = vadd.f32 %v4807_v58, %v1691_v40 }
 0x1fa   : > { %v2792_v11 = vsel %vm2728_vm7, %v3777_v54, %v2760_v56  ;;  %vm2729_vm10 = vcmp.gt.f32.partialorder %v3781_v61, 0.0  ;;  %v2761_v20 = vmul.f32 0.2, %v3781_v61 }
 0x1fb   : > { %v3269_v51 = vpack.c.bf16 %v2792_v11, %v2792_v11  ;;  %v2790_v25 = vsel %vm2726_vm9, %v3779_v0, %v2758_v22  ;;  %vm2727_vm11 = vcmp.gt.f32.partialorder %v3783_v5, 0.0  ;;  %v2759_v21 = vmul.f32 0.2, %v3783_v5 }
 0x1fc   : > { %v3267_v16 = vpack.c.bf16 %v2790_v25, %v2790_v25  ;;  %v2793_v18 = vsel %vm2729_vm10, %v3781_v61, %v2761_v20 }
 0x1fd   : > { %2953 = vst.msk [vmem:[%s4818_s15 + $0x48] sm:$0xf] %vm2934_vm8, %v3269_v51  ;;  %v3270_v27 = vpack.c.bf16 %v2793_v18, %v2793_v18  ;;  %v2791_v32 = vsel %vm2727_vm11, %v3783_v5, %v2759_v21  ;;  %v3600_v34 = vpop.f32.mrb[24].mxu1  ;;  %v3732_v39 = vpop.f32.mrb[20].mxu0 }
 0x1fe   : > { %2951 = vst.msk [vmem:[%s4818_s15 + $0x40] sm:$0xf] %vm2934_vm8, %v3267_v16  ;;  %v3268_v55 = vpack.c.bf16 %v2791_v32, %v2791_v32  ;;  %v3785_v60 = vadd.f32 %v3784_v29, %v3732_v39  ;;  %v1704_v50 = vpop.f32.mrb[25].mxu1  ;;  %v2631_v57 = vpop.f32.mrb[21].mxu0  ;;  %v3792_v62 = vadd.f32 %v3600_v34, %v4807_v58 }
 0x1ff   : > { %2954 = vst.msk [vmem:[%s4818_s15 + $0x4c] sm:$0xf] %vm2934_vm8, %v3270_v27  ;;  %v3787_v19 = vadd.f32 %v3786_v17, %v2631_v57  ;;  %v3601_v4 = vpop.f32.mrb[26].mxu1  ;;  %v3733_v9 = vpop.f32.mrb[22].mxu0  ;;  %v3794_v26 = vadd.f32 %v4807_v58, %v1704_v50 }
 0x200   : > { %2952 = vst.msk [vmem:[%s4818_s15 + $0x44] sm:$0xf] %vm2934_vm8, %v3268_v55  ;;  %vm2732_vm12 = vcmp.gt.f32.partialorder %v3785_v60, 0.0  ;;  %v2764_v37 = vmul.f32 0.2, %v3785_v60  ;;  %v3789_v8 = vadd.f32 %v3788_v10, %v3733_v9  ;;  %v1707_v31 = vpop.f32.mrb[27].mxu1  ;;  %v3796_v46 = vadd.f32 %v3601_v4, %v4807_v58 }
 0x201   : > { %v2634_v23 = vpop.f32.mrb[23].mxu0  ;;  %vm2730_vm13 = vcmp.gt.f32.partialorder %v3787_v19, 0.0  ;;  %v2762_v12 = vmul.f32 0.2, %v3787_v19  ;;  %v3798_v24 = vadd.f32 %v4807_v58, %v1707_v31 }
 0x202   : > { %v3791_v36 = vadd.f32 %v3790_v15, %v2634_v23  ;;  %v2796_v45 = vsel %vm2732_vm12, %v3785_v60, %v2764_v37  ;;  %vm2733_vm14 = vcmp.gt.f32.partialorder %v3789_v8, 0.0  ;;  %v2765_v52 = vmul.f32 0.2, %v3789_v8 }
 0x203   : > { %v3273_v30 = vpack.c.bf16 %v2796_v45, %v2796_v45  ;;  %v2794_v53 = vsel %vm2730_vm13, %v3787_v19, %v2762_v12 }
 0x204   : > { %vm2731_vm15 = vcmp.gt.f32.partialorder %v3791_v36, 0.0  ;;  %v2763_v38 = vmul.f32 0.2, %v3791_v36  ;;  %v3271_v28 = vpack.c.bf16 %v2794_v53, %v2794_v53  ;;  %v2797_v42 = vsel %vm2733_vm14, %v3789_v8, %v2765_v52 }
 0x205   : > { %2957 = vst.msk [vmem:[%s4818_s15 + $0x58] sm:$0xf] %vm2934_vm8, %v3273_v30  ;;  %v3274_v7 = vpack.c.bf16 %v2797_v42, %v2797_v42  ;;  %v3604_v33 = vpop.f32.mrb[28].mxu1  ;;  %v3736_v43 = vpop.f32.mrb[24].mxu0 }
 0x206   : > { %v2795_v48 = vsel %vm2731_vm15, %v3791_v36, %v2763_v38  ;;  %2955 = vst.msk [vmem:[%s4818_s15 + $0x50] sm:$0xf] %vm2934_vm8, %v3271_v28  ;;  %v3793_v63 = vadd.f32 %v3792_v62, %v3736_v43  ;;  %v1720_v35 = vpop.f32.mrb[29].mxu1  ;;  %v2647_v13 = vpop.f32.mrb[25].mxu0  ;;  %v3800_v22 = vadd.f32 %v3604_v33, %v4807_v58 }
 0x207   : > { %v3272_v49 = vpack.c.bf16 %v2795_v48, %v2795_v48  ;;  %2958 = vst.msk [vmem:[%s4818_s15 + $0x5c] sm:$0xf] %vm2934_vm8, %v3274_v7  ;;  %v3795_v59 = vadd.f32 %v3794_v26, %v2647_v13  ;;  %v3605_v41 = vpop.f32.mrb[30].mxu1  ;;  %v3737_v47 = vpop.f32.mrb[26].mxu0  ;;  %v3802_v20 = vadd.f32 %v4807_v58, %v1720_v35 }
 0x208   : > { %vm2736_vm0 = vcmp.gt.f32.partialorder %v3793_v63, 0.0  ;;  %v2768_v54 = vmul.f32 0.2, %v3793_v63  ;;  %v3797_v44 = vadd.f32 %v3796_v46, %v3737_v47  ;;  %v1723_v6 = vpop.f32.mrb[31].mxu1  ;;  %v2650_v3 = vpop.f32.mrb[27].mxu0  ;;  %v3804_v29 = vadd.f32 %v3605_v41, %v4807_v58 }
 0x209   : > { %2956 = vst.msk [vmem:[%s4818_s15 + $0x54] sm:$0xf] %vm2934_vm8, %v3272_v49  ;;  %vm2734_vm1 = vcmp.gt.f32.partialorder %v3795_v59, 0.0  ;;  %v2766_v0 = vmul.f32 0.2, %v3795_v59  ;;  %v3799_v1 = vadd.f32 %v3798_v24, %v2650_v3  ;;  %v3806_v27 = vadd.f32 %v4807_v58, %v1723_v6 }
 0x20a   : > { %v2800_v2 = vsel %vm2736_vm0, %v3793_v63, %v2768_v54  ;;  %vm2737_vm2 = vcmp.gt.f32.partialorder %v3797_v44, 0.0  ;;  %v2769_v56 = vmul.f32 0.2, %v3797_v44 }
 0x20b   : > { %v3277_v61 = vpack.c.bf16 %v2800_v2, %v2800_v2  ;;  %v2798_v40 = vsel %vm2734_vm1, %v3795_v59, %v2766_v0  ;;  %vm2735_vm3 = vcmp.gt.f32.partialorder %v3799_v1, 0.0  ;;  %v2767_v14 = vmul.f32 0.2, %v3799_v1 }
 0x20c   : > { %v3275_v5 = vpack.c.bf16 %v2798_v40, %v2798_v40  ;;  %v2801_v11 = vsel %vm2737_vm2, %v3797_v44, %v2769_v56 }
 0x20d   : > { %2961 = vst.msk [vmem:[%s4818_s15 + $0x68] sm:$0xf] %vm2934_vm8, %v3277_v61  ;;  %v3278_v51 = vpack.c.bf16 %v2801_v11, %v2801_v11  ;;  %v2799_v25 = vsel %vm2735_vm3, %v3799_v1, %v2767_v14  ;;  %v3740_v21 = vpop.f32.mrb[28].mxu0 }
 0x20e   : > { %2959 = vst.msk [vmem:[%s4818_s15 + $0x60] sm:$0xf] %vm2934_vm8, %v3275_v5  ;;  %v3276_v16 = vpack.c.bf16 %v2799_v25, %v2799_v25  ;;  %v3801_v18 = vadd.f32 %v3800_v22, %v3740_v21  ;;  %v2663_v17 = vpop.f32.mrb[29].mxu0 }
 0x20f   : > { %2962 = vst.msk [vmem:[%s4818_s15 + $0x6c] sm:$0xf] %vm2934_vm8, %v3278_v51  ;;  %v3803_v32 = vadd.f32 %v3802_v20, %v2663_v17  ;;  %v3741_v34 = vpop.f32.mrb[30].mxu0 }
 0x210   : > { %2960 = vst.msk [vmem:[%s4818_s15 + $0x64] sm:$0xf] %vm2934_vm8, %v3276_v16  ;;  %vm2740_vm4 = vcmp.gt.f32.partialorder %v3801_v18, 0.0  ;;  %v2772_v39 = vmul.f32 0.2, %v3801_v18  ;;  %v3805_v10 = vadd.f32 %v3804_v29, %v3741_v34  ;;  %v2666_v55 = vpop.f32.mrb[31].mxu0 }
 0x211   : > { %vm2738_vm5 = vcmp.gt.f32.partialorder %v3803_v32, 0.0  ;;  %v2770_v60 = vmul.f32 0.2, %v3803_v32  ;;  %v3807_v50 = vadd.f32 %v3806_v27, %v2666_v55 }
 0x212   : > { %v2804_v57 = vsel %vm2740_vm4, %v3801_v18, %v2772_v39  ;;  %vm2741_vm6 = vcmp.gt.f32.partialorder %v3805_v10, 0.0  ;;  %v2773_v15 = vmul.f32 0.2, %v3805_v10 }
 0x213   : > { %v3281_v19 = vpack.c.bf16 %v2804_v57, %v2804_v57  ;;  %v2802_v58 = vsel %vm2738_vm5, %v3803_v32, %v2770_v60  ;;  %vm2739_vm7 = vcmp.gt.f32.partialorder %v3807_v50, 0.0  ;;  %v2771_v4 = vmul.f32 0.2, %v3807_v50 }
 0x214   : > { %v3279_v9 = vpack.c.bf16 %v2802_v58, %v2802_v58  ;;  %v2805_v37 = vsel %vm2741_vm6, %v3805_v10, %v2773_v15 }
 0x215   : > { %2965 = vst.msk [vmem:[%s4818_s15 + $0x78] sm:$0xf] %vm2934_vm8, %v3281_v19  ;;  %v3282_v8 = vpack.c.bf16 %v2805_v37, %v2805_v37  ;;  %v2803_v31 = vsel %vm2739_vm7, %v3807_v50, %v2771_v4 }
 0x216   : > { %2963 = vst.msk [vmem:[%s4818_s15 + $0x70] sm:$0xf] %vm2934_vm8, %v3279_v9  ;;  %v3280_v23 = vpack.c.bf16 %v2803_v31, %v2803_v31 }
 0x217   : > { %2966 = vst.msk [vmem:[%s4818_s15 + $0x7c] sm:$0xf] %vm2934_vm8, %v3282_v8 }
 0x218   : > { %2964 = vst.msk [vmem:[%s4818_s15 + $0x74] sm:$0xf] %vm2934_vm8, %v3280_v23 }
 0x219 PF: > { %s13_s12 = sadd.s32 1, %s4072_s12  }
 0x21a   : > { %p10_p4 = scmp.ge.s32.totalorder %s13_s12, 4  }
 0x21c   :  { %12 = sbr.rel (!%p10_p4) target bundleno = 1 (0x1), region = 70 }

// kernel: upblock_forward.8
= control target key start
LH: loop header
LB: loop body
LE: loop exit
PB: predicated region body
PF: predicated region fallthrough
CT: control target
= control target key end

     0   :  { %s7652_s18 = smov 0   ;;  %s9202_s0 = inlined_call_operand.vmem [shape: bf16[2,16,16,16], index: 0, kind: input, shape index: {}]   ;;  %s9203_s1 = inlined_call_operand.vmem [shape: bf16[2,16,16,16], index: 1, kind: input, shape index: {}]   ;;  %s9204_s2 = inlined_call_operand.vmem [shape: bf16[9,16,16], index: 2, kind: input, shape index: {}]   ;;  %s9205_s3 = inlined_call_operand.vmem [shape: bf16[9,16,16], index: 3, kind: input, shape index: {}]   ;;  %s9206_s4 = inlined_call_operand.vmem [shape: f32[1,16], index: 4, kind: input, shape index: {}]   ;;  %s9207_s5 = inlined_call_operand.vmem [shape: bf16[2,16,16,16], index: 5, kind: output, shape index: {}]  }
   0x1 LB: > { %s5613_s19 = sadd.s32 4294967295, %s7619_s18   ;;  %p5617_p0 = scmp.ge.s32.totalorder %s7619_s18, 1  ;;  %s7619_s18 = sphi %s7652_s18, %s15_s18  }
   0x2   : > { %p197_p1 = scmp.lt.s32.totalorder %s7619_s18, 3 }
   0x4   : > { %p198_p2 = pnand %p5617_p0, %p197_p1 }
   0x6   : > { %201 = sbr.rel (%p198_p2) target bundleno = 819 (0x333), region = 40 }
   0xd   : > { %v7563_v0 = vld [vmem:[%s9204_s2] sm:$0xff]   ;;  %v9208_v2 = vmov 0   ;;  %v7565_v3 = vld [vmem:[%s9204_s2 + $0x18] sm:$0xff]   ;;  %p230_p3 = scmp.lt.s32.totalorder %s5613_s19, 1  ;;  %vm511_vm0 = vsmask.f32 256 }
   0xe   : > { %v7564_v1 = vld [vmem:[%s9205_s3] sm:$0xff]   ;;  %6368 = vmatprep.mubr.bf16.mxu1 %v9208_v2  ;;  %6674 = vmatprep.mubr.bf16.mxu0 %v9208_v2  ;;  %v7568_v4 = vld [vmem:[%s9205_s3 + $0x18] sm:$0xff]   ;;  %vm510_vm1 = vcmask 1040384   ;;  %vm553_vm3 = vcmask 130048   ;;  %v7707_v23 = vld [vmem:[%s9204_s2 + $0x30] sm:$0xff]   ;;  %vm2074_vm5 = vcmask 1046528  }
   0xf   : > { %6366 = vmatprep.subr.bf16.mxu1 %v7563_v0  ;;  %6672 = vmatprep.subr.bf16.mxu0 %v7564_v1  ;;  %s9398_s19 = smov (!%p230_p3, %s5613_s19), 1  ;;  %vm7696_vm2 = vmand %vm510_vm1, %vm511_vm0  ;;  %v7719_v27 = vld [vmem:[%s9205_s3 + $0x30] sm:$0xff]   ;;  %vm1202_vm4 = vsmask.f32 7424  ;;  %vm5513_vm8 = vcmask 125952  }
  0x10   : > { %6367 = vmatpush3.bf16.msra.mxu1 %v7563_v0  ;;  %6673 = vmatpush3.bf16.msra.mxu0 %v7564_v1  ;;  %s7674_s28 = sshll.u32 %s9398_s19, 7 }
  0x11   : > { %6400 = vmatprep.subr.bf16.mxu1 %v7565_v3  ;;  %6706 = vmatprep.subr.bf16.mxu0 %v7568_v4  ;;  %s7680_s6 = scalar_lea.vmem %s9202_s0, %s7674_s28  ;;  %s7686_s9 = scalar_lea.vmem %s9203_s1, %s7674_s28 }
  0x12   : > { %v7566_v5 = vld [vmem:[%s7680_s6] sm:$0xff]   ;;  %v7569_v11 = vld [vmem:[%s7680_s6 + $0x8] sm:$0xff]   ;;  %v7571_v14 = vld [vmem:[%s7680_s6 + $0x10] sm:$0xff]   ;;  %s9105_s20 = scalar_lea.vmem %s9207_s5, %s7674_s28 }
  0x13   : > { %v7567_v6 = vld [vmem:[%s7686_s9] sm:$0xff]   ;;  %v367_v7 = vshrl.u32 %v7566_v5, 16  ;;  %v370_v8 = vshll.u32 %v7566_v5, 16  ;;  %v7570_v12 = vld [vmem:[%s7686_s9 + $0x8] sm:$0xff]   ;;  %v374_v17 = vshrl.u32 %v7569_v11, 16  ;;  %v377_v19 = vshll.u32 %v7569_v11, 16 }
  0x14   : > { %v2897_v9 = vshrl.u32 %v7567_v6, 16  ;;  %v2900_v10 = vshll.u32 %v7567_v6, 16  ;;  %v2904_v21 = vshrl.u32 %v7570_v12, 16  ;;  %v381_v22 = vshrl.u32 %v7571_v14, 16  ;;  %v7572_v26 = vld [vmem:[%s7686_s9 + $0x10] sm:$0xff]   ;;  %v7573_v30 = vld [vmem:[%s7680_s6 + $0x18] sm:$0xff]  }
  0x15   : > { %v7692_v13 = vrot.slane %v367_v7, 7  ;;  %v7713_v25 = vrot.slane %v374_v17, 7  ;;  %v2907_v29 = vshll.u32 %v7570_v12, 16  ;;  %v7574_v32 = vld [vmem:[%s7686_s9 + $0x18] sm:$0xff]   ;;  %v384_v35 = vshll.u32 %v7571_v14, 16  ;;  %v7575_v43 = vld [vmem:[%s7680_s6 + $0x20] sm:$0xff]  }
  0x16   : > { %v7700_v16 = vrot.slane %v2897_v9, 7  ;;  %v7732_v33 = vrot.slane %v2904_v21, 7  ;;  %v7734_v34 = vrot.slane %v381_v22, 7  ;;  %v2911_v37 = vshrl.u32 %v7572_v26, 16  ;;  %v7576_v44 = vld [vmem:[%s7686_s9 + $0x20] sm:$0xff]   ;;  %v7577_v48 = vld [vmem:[%s7680_s6 + $0x28] sm:$0xff]  }
  0x17   : > { %v372_v18 = vor.u32 %v370_v8, %v7692_v13  ;;  %v379_v31 = vor.u32 %v377_v19, %v7713_v25  ;;  %v2914_v38 = vshll.u32 %v7572_v26, 16  ;;  %v388_v41 = vshrl.u32 %v7573_v30, 16  ;;  %v7578_v57 = vld [vmem:[%s7686_s9 + $0x28] sm:$0xff]   ;;  %v7579_v62 = vld [vmem:[%s7680_s6 + $0x30] sm:$0xff]   ;;  %v7581_v9 = vld [vmem:[%s7680_s6 + $0x38] sm:$0xff]  }
  0x18   : > { %v2902_v20 = vor.u32 %v2900_v10, %v7700_v16  ;;  %v2909_v39 = vor.u32 %v2907_v29, %v7732_v33  ;;  %v386_v40 = vor.u32 %v384_v35, %v7734_v34  ;;  %v391_v42 = vshll.u32 %v7573_v30, 16 }
  0x19   : > { %v7711_v24 = vsel %vm7696_vm2, 0, %v372_v18  ;;  %v7739_v36 = vsel %vm7696_vm2, 0, %v379_v31  ;;  %v7748_v45 = vrot.slane %v2911_v37, 7  ;;  %v2918_v46 = vshrl.u32 %v7574_v32, 16 }
  0x1a   : > { %9276 = vst [vmem:[#allocation2_spill] sm:$0xff] %v7711_v24  ;;  %6369 = vmatmul.mubr.msk.bf16.vlgmr.msra.gmra.mrb[0].mxu1 %vm553_vm3, %v7711_v24  ;;  %v7725_v28 = vsel %vm7696_vm2, 0, %v2902_v20  ;;  %9278 = vst [vmem:[#allocation4_spill] sm:$0xff] %v7739_v36  ;;  %v2921_v47 = vshll.u32 %v7574_v32, 16  ;;  %v7753_v49 = vsel %vm7696_vm2, 0, %v2909_v39  ;;  %v7757_v50 = vsel %vm7696_vm2, 0, %v386_v40 }
  0x1b   : > { %9277 = vst [vmem:[#allocation3_spill] sm:$0xff] %v7725_v28  ;;  %6401 = vmatpush3.bf16.msra.mxu1 %v7565_v3  ;;  %6675 = vmatmul.mubr.msk.bf16.vlgmr.msra.gmra.mrb[0].mxu0 %vm553_vm3, %v7725_v28  ;;  %9279 = vst [vmem:[#allocation5_spill] sm:$0xff] %v7753_v49  ;;  %v7759_v51 = vrot.slane %v388_v41, 7  ;;  %v395_v52 = vshrl.u32 %v7575_v43, 16  ;;  %v2916_v53 = vor.u32 %v2914_v38, %v7748_v45  ;;  %v7764_v54 = vrot.slane %v2918_v46, 7  ;;  %v7582_v20 = vld [vmem:[%s7686_s9 + $0x38] sm:$0xff]  }
  0x1c   : > { %6707 = vmatpush3.bf16.msra.mxu0 %v7568_v4  ;;  %6434 = vmatprep.subr.bf16.mxu1 %v7707_v23  ;;  %9280 = vst [vmem:[#allocation6_spill] sm:$0xff] %v7757_v50  ;;  %v398_v55 = vshll.u32 %v7575_v43, 16  ;;  %v2925_v56 = vshrl.u32 %v7576_v44, 16  ;;  %v2928_v60 = vshll.u32 %v7576_v44, 16  ;;  %v402_v61 = vshrl.u32 %v7577_v48, 16  ;;  %v7580_v4 = vld [vmem:[%s7686_s9 + $0x30] sm:$0xff]  }
  0x1d   : > { %6740 = vmatprep.subr.bf16.mxu0 %v7719_v27  ;;  %6372 = vmatprep.mubr.msk.bf16.mxu1 %vm553_vm3, %v7739_v36  ;;  %v393_v58 = vor.u32 %v391_v42, %v7759_v51  ;;  %v7770_v59 = vrot.slane %v395_v52, 7  ;;  %v7775_v63 = vsel %vm7696_vm2, 0, %v2916_v53  ;;  %v2923_v0 = vor.u32 %v2921_v47, %v7764_v54  ;;  %v7583_v47 = vld [vmem:[%s7680_s6 + $0x40] sm:$0xff]   ;;  %v7585_v53 = vld [vmem:[%s7680_s6 + $0x48] sm:$0xff]  }
  0x1e   : > { %6678 = vmatprep.mubr.msk.bf16.mxu0 %vm553_vm3, %v7753_v49  ;;  %9281 = vst [vmem:[#allocation7_spill] sm:$0xff] %v7775_v63  ;;  %v7778_v1 = vrot.slane %v2925_v56, 7  ;;  %v405_v3 = vshll.u32 %v7577_v48, 16  ;;  %v7788_v7 = vrot.slane %v402_v61, 7  ;;  %v2932_v8 = vshrl.u32 %v7578_v57, 16  ;;  %v7584_v48 = vld [vmem:[%s7686_s9 + $0x40] sm:$0xff]  }
  0x1f   : > { %v7785_v5 = vsel %vm7696_vm2, 0, %v393_v58  ;;  %v400_v6 = vor.u32 %v398_v55, %v7770_v59  ;;  %v7795_v10 = vsel %vm7696_vm2, 0, %v2923_v0  ;;  %v2935_v12 = vshll.u32 %v7578_v57, 16 }
  0x20   : > { %9282 = vst [vmem:[#allocation8_spill] sm:$0xff] %v7795_v10  ;;  %v2930_v11 = vor.u32 %v2928_v60, %v7778_v1  ;;  %v407_v17 = vor.u32 %v405_v3, %v7788_v7  ;;  %v7805_v18 = vrot.slane %v2932_v8, 7  ;;  %v409_v19 = vshrl.u32 %v7579_v62, 16 }
  0x21   : > { %v7802_v14 = vsel %vm7696_vm2, 0, %v400_v6  ;;  %v412_v22 = vshll.u32 %v7579_v62, 16  ;;  %v2939_v26 = vshrl.u32 %v7580_v4, 16  ;;  %v2942_v29 = vshll.u32 %v7580_v4, 16 }
  0x22   : > { %6373 = vmatmul.mubr.msk.bf16.gmra.mrb[4].mxu1 %vm553_vm3, %v7757_v50  ;;  %v7810_v21 = vsel %vm7696_vm2, 0, %v2930_v11  ;;  %v7814_v30 = vsel %vm7696_vm2, 0, %v407_v17  ;;  %v2937_v31 = vor.u32 %v2935_v12, %v7805_v18  ;;  %v7817_v32 = vrot.slane %v409_v19, 7  ;;  %v7586_v12 = vld [vmem:[%s7686_s9 + $0x48] sm:$0xff]   ;;  %v7587_v17 = vld [vmem:[%s7680_s6 + $0x50] sm:$0xff]  }
  0x23   : > { %6679 = vmatmul.mubr.msk.bf16.gmra.mrb[4].mxu0 %vm553_vm3, %v7775_v63  ;;  %6376 = vmatprep.mubr.msk.bf16.mxu1 %vm553_vm3, %v7785_v5  ;;  %9283 = vst [vmem:[#allocation9_spill] sm:$0xff] %v7810_v21  ;;  %9284 = vst [vmem:[#allocation10_spill] sm:$0xff] %v7814_v30  ;;  %v7819_v35 = vrot.slane %v2939_v26, 7  ;;  %v416_v37 = vshrl.u32 %v7581_v9, 16  ;;  %v419_v38 = vshll.u32 %v7581_v9, 16  ;;  %v2946_v39 = vshrl.u32 %v7582_v20, 16 }
  0x24   : > { %6682 = vmatprep.mubr.msk.bf16.mxu0 %vm553_vm3, %v7795_v10  ;;  %v7825_v40 = vsel %vm7696_vm2, 0, %v2937_v31  ;;  %v414_v41 = vor.u32 %v412_v22, %v7817_v32  ;;  %v2949_v42 = vshll.u32 %v7582_v20, 16  ;;  %v423_v58 = vshrl.u32 %v7583_v47, 16  ;;  %v7588_v31 = vld [vmem:[%s7686_s9 + $0x50] sm:$0xff]  }
  0x25   : > { %v2944_v43 = vor.u32 %v2942_v29, %v7819_v35  ;;  %v7831_v44 = vrot.slane %v416_v37, 7  ;;  %v7833_v46 = vrot.slane %v2946_v39, 7  ;;  %v426_v60 = vshll.u32 %v7583_v47, 16  ;;  %v7589_v37 = vld [vmem:[%s7680_s6 + $0x58] sm:$0xff]  }
  0x26   : > { %v7841_v52 = vsel %vm7696_vm2, 0, %v414_v41  ;;  %v2953_v61 = vshrl.u32 %v7584_v48, 16  ;;  %v2956_v62 = vshll.u32 %v7584_v48, 16  ;;  %v430_v0 = vshrl.u32 %v7585_v53, 16  ;;  %v7590_v39 = vld [vmem:[%s7686_s9 + $0x58] sm:$0xff]  }
  0x27   : > { %9285 = vst [vmem:[#allocation11_spill] sm:$0xff] %v7841_v52  ;;  %v7848_v55 = vsel %vm7696_vm2, 0, %v2944_v43  ;;  %v421_v56 = vor.u32 %v419_v38, %v7831_v44  ;;  %v2951_v57 = vor.u32 %v2949_v42, %v7833_v46  ;;  %v7860_v6 = vrot.slane %v423_v58, 7 }
  0x28   : > { %9286 = vst [vmem:[#allocation12_spill] sm:$0xff] %v7848_v55  ;;  %v433_v8 = vshll.u32 %v7585_v53, 16  ;;  %v7862_v9 = vrot.slane %v2953_v61, 7  ;;  %v7864_v11 = vrot.slane %v430_v0, 7  ;;  %v2960_v26 = vshrl.u32 %v7586_v12, 16 }
  0x29   : > { %v7854_v3 = vsel %vm7696_vm2, 0, %v421_v56  ;;  %v7858_v4 = vsel %vm7696_vm2, 0, %v2951_v57  ;;  %9289 = vst [vmem:[#allocation15_spill] sm:$0xff] %v7860_v6  ;;  %v428_v19 = vor.u32 %v426_v60, %v7860_v6  ;;  %v2963_v29 = vshll.u32 %v7586_v12, 16 }
  0x2a   : > { %6377 = vmatmul.mubr.msk.bf16.gmra.mrb[8].mxu1 %vm553_vm3, %v7802_v14  ;;  %9287 = vst [vmem:[#allocation13_spill] sm:$0xff] %v7854_v3  ;;  %9288 = vst [vmem:[#allocation14_spill] sm:$0xff] %v7858_v4  ;;  %v2958_v20 = vor.u32 %v2956_v62, %v7862_v9  ;;  %v435_v22 = vor.u32 %v433_v8, %v7864_v11  ;;  %v437_v38 = vshrl.u32 %v7587_v17, 16  ;;  %v7884_v42 = vrot.slane %v2960_v26, 7  ;;  %v7591_v62 = vld [vmem:[%s7680_s6 + $0x60] sm:$0xff]   ;;  %v7593_v26 = vld [vmem:[%s7680_s6 + $0x68] sm:$0xff]  }
  0x2b   : > { %6380 = vmatprep.mubr.msk.bf16.mxu1 %vm553_vm3, %v7814_v30  ;;  %6683 = vmatmul.mubr.msk.bf16.gmra.mrb[8].mxu0 %vm553_vm3, %v7810_v21  ;;  %9290 = vst [vmem:[#allocation16_spill] sm:$0xff] %v7862_v9  ;;  %9291 = vst [vmem:[#allocation17_spill] sm:$0xff] %v7864_v11  ;;  %v7882_v41 = vsel %vm7696_vm2, 0, %v428_v19  ;;  %v2967_v43 = vshrl.u32 %v7588_v31, 16  ;;  %v440_v53 = vshll.u32 %v7587_v17, 16  ;;  %v444_v56 = vshrl.u32 %v7589_v37, 16 }
  0x2c   : > { %6686 = vmatprep.mubr.msk.bf16.mxu0 %vm553_vm3, %v7825_v40  ;;  %9292 = vst [vmem:[#allocation18_spill] sm:$0xff] %v7884_v42  ;;  %v7890_v47 = vsel %vm7696_vm2, 0, %v2958_v20  ;;  %v7892_v48 = vrot.slane %v437_v38, 7  ;;  %v7896_v57 = vsel %vm7696_vm2, 0, %v435_v22  ;;  %v2965_v58 = vor.u32 %v2963_v29, %v7884_v42  ;;  %v7592_v8 = vld [vmem:[%s7686_s9 + $0x60] sm:$0xff]   ;;  %v7595_v42 = vld [vmem:[%s7680_s6 + $0x70] sm:$0xff]  }
  0x2d   : > { %9293 = vst [vmem:[#allocation19_spill] sm:$0xff] %v7890_v47  ;;  %v447_v60 = vshll.u32 %v7589_v37, 16  ;;  %v2974_v61 = vshrl.u32 %v7590_v39, 16  ;;  %v7900_v0 = vrot.slane %v444_v56, 7  ;;  %v7903_v12 = vrot.slane %v2967_v43, 7  ;;  %v7594_v37 = vld [vmem:[%s7686_s9 + $0x68] sm:$0xff]  }
  0x2e   : > { %9294 = vst [vmem:[#allocation20_spill] sm:$0xff] %v7892_v48  ;;  %v2970_v19 = vshll.u32 %v7588_v31, 16  ;;  %v451_v20 = vshrl.u32 %v7591_v62, 16  ;;  %v7908_v17 = vsel %vm7696_vm2, 0, %v2965_v58  ;;  %v442_v22 = vor.u32 %v440_v53, %v7892_v48  ;;  %v7596_v9 = vld [vmem:[%s7686_s9 + $0x70] sm:$0xff]  }
  0x2f   : > { %9295 = vst [vmem:[#allocation21_spill] sm:$0xff] %v7900_v0  ;;  %9296 = vst [vmem:[#allocation22_spill] sm:$0xff] %v7903_v12  ;;  %v2977_v38 = vshll.u32 %v7590_v39, 16  ;;  %v2981_v29 = vshrl.u32 %v7592_v8, 16  ;;  %v449_v56 = vor.u32 %v447_v60, %v7900_v0  ;;  %v7915_v43 = vrot.slane %v2974_v61, 7 }
  0x30   : > { %9297 = vst [vmem:[#allocation23_spill] sm:$0xff] %v7908_v17  ;;  %v7917_v31 = vrot.slane %v451_v20, 7  ;;  %v454_v2 = vshll.u32 %v7591_v62, 16  ;;  %v458_v58 = vshrl.u32 %v7593_v26, 16  ;;  %v2984_v53 = vshll.u32 %v7592_v8, 16 }
  0x31   : > { %v7923_v39 = vrot.slane %v2981_v29, 7  ;;  %v2988_v48 = vshrl.u32 %v7594_v37, 16  ;;  %v2972_v60 = vor.u32 %v2970_v19, %v7903_v12  ;;  %v7931_v61 = vsel %vm7696_vm2, 0, %v442_v22 }
  0x32   : > { %6381 = vmatmul.mubr.msk.bf16.gmra.mrb[12].mxu1 %vm553_vm3, %v7841_v52  ;;  %9298 = vst [vmem:[#allocation24_spill] sm:$0xff] %v7931_v61  ;;  %v7935_v62 = vsel %vm7696_vm2, 0, %v449_v56  ;;  %v2979_v20 = vor.u32 %v2977_v38, %v7915_v43  ;;  %v456_v29 = vor.u32 %v454_v2, %v7917_v31  ;;  %v7939_v8 = vrot.slane %v458_v58, 7 }
  0x33   : > { %6384 = vmatprep.mubr.msk.bf16.mxu1 %vm553_vm3, %v7854_v3  ;;  %6687 = vmatmul.mubr.msk.bf16.gmra.mrb[12].mxu0 %vm553_vm3, %v7848_v55  ;;  %v461_v0 = vshll.u32 %v7593_v26, 16  ;;  %v2991_v11 = vshll.u32 %v7594_v37, 16  ;;  %v2986_v6 = vor.u32 %v2984_v53, %v7923_v39  ;;  %v7943_v19 = vrot.slane %v2988_v48, 7 }
  0x34   : > { %6690 = vmatprep.mubr.msk.bf16.mxu0 %vm553_vm3, %v7858_v4  ;;  %v465_v12 = vshrl.u32 %v7595_v42, 16  ;;  %v7947_v22 = vsel %vm7696_vm2, 0, %v2972_v60  ;;  %v7953_v2 = vsel %vm7696_vm2, 0, %v2979_v20  ;;  %v7957_v26 = vsel %vm7696_vm2, 0, %v456_v29 }
  0x35   : > { %9299 = vst [vmem:[#allocation25_spill] sm:$0xff] %v7943_v19  ;;  %9300 = vst [vmem:[#allocation26_spill] sm:$0xff] %v7953_v2  ;;  %v468_v48 = vshll.u32 %v7595_v42, 16  ;;  %v2995_v38 = vshrl.u32 %v7596_v9, 16  ;;  %v7965_v37 = vsel %vm7696_vm2, 0, %v2986_v6  ;;  %v463_v56 = vor.u32 %v461_v0, %v7939_v8 }
  0x36   : > { %9301 = vst [vmem:[#allocation27_spill] sm:$0xff] %v7957_v26  ;;  %9302 = vst [vmem:[#allocation28_spill] sm:$0xff] %v7965_v37  ;;  %v2993_v58 = vor.u32 %v2991_v11, %v7943_v19  ;;  %v7969_v53 = vrot.slane %v465_v12, 7  ;;  %v2998_v42 = vshll.u32 %v7596_v9, 16  ;;  %v7993_v9 = vsel %vm7696_vm2, %v7692_v13, 0 }
  0x37   : > { %v7973_v60 = vrot.slane %v2995_v38, 7  ;;  %v7977_v20 = vsel %vm7696_vm2, 0, %v463_v56  ;;  %9307 = vst [vmem:[#allocation33_spill] sm:$0xff] %v7993_v9  ;;  %v1212_v0 = vshll.u32 %v7711_v24, 16  ;;  %v8007_v38 = vsel %vm7696_vm2, %v7700_v16, 0 }
  0x38   : > { %9303 = vst [vmem:[#allocation29_spill] sm:$0xff] %v7969_v53  ;;  %9305 = vst [vmem:[#allocation31_spill] sm:$0xff] %v7977_v20  ;;  %v7981_v6 = vsel %vm7696_vm2, 0, %v2993_v58  ;;  %v470_v11 = vor.u32 %v468_v48, %v7969_v53  ;;  %v1217_v48 = vshll.u32 %v7993_v9, 16  ;;  %v1210_v13 = vshrl.u32 %v7711_v24, 16 }
  0x39   : > { %9304 = vst [vmem:[#allocation30_spill] sm:$0xff] %v7973_v60  ;;  %9306 = vst [vmem:[#allocation32_spill] sm:$0xff] %v7981_v6  ;;  %v3000_v12 = vor.u32 %v2998_v42, %v7973_v60  ;;  %v1214_v56 = vrot.slane %v1212_v0, 1  ;;  %v3727_v58 = vshll.u32 %v7725_v28, 16  ;;  %v3725_v42 = vshrl.u32 %v7725_v28, 16 }
  0x3a   : > { %6385 = vmatmul.mubr.msk.bf16.gmra.mrb[16].mxu1 %vm553_vm3, %v7882_v41  ;;  %v8001_v29 = vsel %vm7696_vm2, 0, %v470_v11  ;;  %9308 = vst [vmem:[#allocation34_spill] sm:$0xff] %v8007_v38  ;;  %v3732_v16 = vshll.u32 %v8007_v38, 16 }
  0x3b   : > { %6388 = vmatprep.mubr.msk.bf16.mxu1 %vm553_vm3, %v7896_v57  ;;  %6691 = vmatmul.mubr.msk.bf16.gmra.mrb[16].mxu0 %vm553_vm3, %v7890_v47  ;;  %v8013_v53 = vsel %vm7696_vm2, 0, %v3000_v12  ;;  %v3729_v11 = vrot.slane %v3727_v58, 1  ;;  %v1215_v0 = vor.u32 %v1214_v56, %v1210_v13  ;;  %v1219_v12 = vrot.slane %v1217_v48, 1  ;;  %v7602_v58 = vld [vmem:[%s9205_s3 + $0x8] sm:$0xff]  }
  0x3c   : > { %6694 = vmatprep.mubr.msk.bf16.mxu0 %vm553_vm3, %v7908_v17  ;;  %9309 = vst [vmem:[#allocation35_spill] sm:$0xff] %v8013_v53  ;;  %v3734_v19 = vrot.slane %v3732_v16, 1 }
  0x3d   : > { %v8026_v9 = vsel %vm1202_vm4, %v1215_v0, %v1219_v12  ;;  %v3730_v60 = vor.u32 %v3729_v11, %v3725_v42 }
  0x3f   : > { %v8040_v48 = vsel %vm1202_vm4, %v3730_v60, %v3734_v19 }
  0x42   : > { %6389 = vmatmul.mubr.msk.bf16.gmra.mrb[20].mxu1 %vm553_vm3, %v7931_v61 }
  0x43   : > { %6392 = vmatprep.mubr.msk.bf16.mxu1 %vm553_vm3, %v7935_v62  ;;  %6695 = vmatmul.mubr.msk.bf16.gmra.mrb[20].mxu0 %vm553_vm3, %v7947_v22 }
  0x44   : > { %6698 = vmatprep.mubr.msk.bf16.mxu0 %vm553_vm3, %v7953_v2 }
  0x4a   : > { %6393 = vmatmul.mubr.msk.bf16.gmra.mrb[24].mxu1 %vm553_vm3, %v7957_v26 }
  0x4b   : > { %6396 = vmatprep.mubr.msk.bf16.mxu1 %vm553_vm3, %v7977_v20  ;;  %6699 = vmatmul.mubr.msk.bf16.gmra.mrb[24].mxu0 %vm553_vm3, %v7965_v37 }
  0x4c   : > { %6702 = vmatprep.mubr.msk.bf16.mxu0 %vm553_vm3, %v7981_v6 }
  0x52   : > { %6397 = vmatmul.mubr.msk.bf16.gmra.mrb[28].mxu1 %vm553_vm3, %v8001_v29 }
  0x53   : > { %6402 = vmatprep.mubr.msk.bf16.mxu1 %vm553_vm3, %v7711_v24  ;;  %6703 = vmatmul.mubr.msk.bf16.gmra.mrb[28].mxu0 %vm553_vm3, %v8013_v53  ;;  %v7601_v24 = vld [vmem:[%s9204_s2 + $0x8] sm:$0xff]  }
  0x54   : > { %6708 = vmatprep.mubr.msk.bf16.mxu0 %vm553_vm3, %v7725_v28  ;;  %v1245_v28 = vshll.u32 %v7785_v5, 16 }
  0x5a   : > { %6403 = vmatmul.mubr.msk.bf16.vlgmr.msra.gmra.mrb[0].mxu1 %vm553_vm3, %v7739_v36 }
  0x5b   : > { %6435 = vmatpush3.bf16.msra.mxu1 %v7707_v23  ;;  %6406 = vmatprep.mubr.msk.bf16.mxu1 %vm553_vm3, %v7757_v50  ;;  %v7599_v23 = vld [vmem:[%s7680_s6 + $0x78] sm:$0xff]  }
  0x5c   : > { %6709 = vmatmul.mubr.msk.bf16.vlgmr.msra.gmra.mrb[0].mxu0 %vm553_vm3, %v7753_v49  ;;  %6468 = vmatprep.subr.bf16.mxu1 %v7601_v24  ;;  %v472_v19 = vshrl.u32 %v7599_v23, 16  ;;  %v475_v56 = vshll.u32 %v7599_v23, 16 }
  0x5d   : > { %6741 = vmatpush3.bf16.msra.mxu0 %v7719_v27  ;;  %6712 = vmatprep.mubr.msk.bf16.mxu0 %vm553_vm3, %v7775_v63  ;;  %v7600_v27 = vld [vmem:[%s7686_s9 + $0x78] sm:$0xff]  }
  0x5e   : > { %6774 = vmatprep.subr.bf16.mxu0 %v7602_v58  ;;  %v3002_v60 = vshrl.u32 %v7600_v27, 16  ;;  %v8089_v13 = vrot.slane %v472_v19, 7  ;;  %v3005_v16 = vshll.u32 %v7600_v27, 16  ;;  %v8122_v27 = vld [vmem:[%s9204_s2 + $0x20] sm:$0xff]  }
  0x5f   : > { %v8129_v19 = vld [vmem:[%s9205_s3 + $0x20] sm:$0xff]  }
  0x60   : > { %9310 = vst [vmem:[#allocation36_spill] sm:$0xff] %v8089_v13  ;;  %v8091_v42 = vrot.slane %v3002_v60, 7  ;;  %v477_v11 = vor.u32 %v475_v56, %v8089_v13  ;;  %v3738_v60 = vshll.u32 %v7753_v49, 16  ;;  %v8197_v56 = vsel %vm7696_vm2, %v7732_v33, 0 }
  0x61   : > { %9315 = vst [vmem:[#allocation41_spill] sm:$0xff] %v8197_v56  ;;  %v3743_v38 = vshll.u32 %v8197_v56, 16  ;;  %v8211_v33 = vsel %vm7696_vm2, %v7734_v34, 0  ;;  %v3749_v56 = vshll.u32 %v7775_v63, 16  ;;  %v8225_v34 = vsel %vm7696_vm2, %v7759_v51, 0 }
  0x62   : > { %6407 = vmatmul.mubr.msk.bf16.gmra.mrb[4].mxu1 %vm553_vm3, %v7785_v5  ;;  %9311 = vst [vmem:[#allocation37_spill] sm:$0xff] %v8091_v42  ;;  %v3007_v0 = vor.u32 %v3005_v16, %v8091_v42  ;;  %v8105_v12 = vsel %vm7696_vm2, 0, %v477_v11  ;;  %v9316_v16 = vmov 0   ;;  %9319 = vst [vmem:[#allocation44_spill] sm:$0xff] %v8225_v34  ;;  %v3747_v51 = vshrl.u32 %v7775_v63, 16 }
  0x63   : > { %6410 = vmatprep.mubr.msk.bf16.mxu1 %vm553_vm3, %v7802_v14  ;;  %9312 = vst [vmem:[#allocation38_spill] sm:$0xff] %v8105_v12  ;;  %v8200_v11 = vrot.slane %v9316_v16, 1 }
  0x64   : > { %6713 = vmatmul.mubr.msk.bf16.gmra.mrb[4].mxu0 %vm553_vm3, %v7795_v10  ;;  %v8109_v23 = vsel %vm7696_vm2, 0, %v3007_v0  ;;  %v1221_v0 = vshrl.u32 %v7739_v36, 16 }
  0x65   : > { %6716 = vmatprep.mubr.msk.bf16.mxu0 %vm553_vm3, %v7810_v21  ;;  %9313 = vst [vmem:[#allocation39_spill] sm:$0xff] %v8109_v23  ;;  %9317 = vst [vmem:[#allocation42_spill] sm:$0xff] %v8200_v11 }
  0x6a   : > { %6411 = vmatmul.mubr.msk.bf16.gmra.mrb[8].mxu1 %vm553_vm3, %v7814_v30 }
  0x6b   : > { %6414 = vmatprep.mubr.msk.bf16.mxu1 %vm553_vm3, %v7841_v52 }
  0x6c   : > { %6717 = vmatmul.mubr.msk.bf16.gmra.mrb[8].mxu0 %vm553_vm3, %v7825_v40 }
  0x6d   : > { %6720 = vmatprep.mubr.msk.bf16.mxu0 %vm553_vm3, %v7848_v55 }
  0x72   : > { %6415 = vmatmul.mubr.msk.bf16.gmra.mrb[12].mxu1 %vm553_vm3, %v7854_v3 }
  0x73   : > { %6418 = vmatprep.mubr.msk.bf16.mxu1 %vm553_vm3, %v7882_v41 }
  0x74   : > { %6721 = vmatmul.mubr.msk.bf16.gmra.mrb[12].mxu0 %vm553_vm3, %v7858_v4 }
  0x75   : > { %6724 = vmatprep.mubr.msk.bf16.mxu0 %vm553_vm3, %v7890_v47 }
  0x7a   : > { %6419 = vmatmul.mubr.msk.bf16.gmra.mrb[16].mxu1 %vm553_vm3, %v7896_v57 }
  0x7b   : > { %6422 = vmatprep.mubr.msk.bf16.mxu1 %vm553_vm3, %v7931_v61 }
  0x7c   : > { %6725 = vmatmul.mubr.msk.bf16.gmra.mrb[16].mxu0 %vm553_vm3, %v7908_v17 }
  0x7d   : > { %6728 = vmatprep.mubr.msk.bf16.mxu0 %vm553_vm3, %v7947_v22 }
  0x82   : > { %6423 = vmatmul.mubr.msk.bf16.gmra.mrb[20].mxu1 %vm553_vm3, %v7935_v62 }
  0x83   : > { %6426 = vmatprep.mubr.msk.bf16.mxu1 %vm553_vm3, %v7957_v26 }
  0x84   : > { %6729 = vmatmul.mubr.msk.bf16.gmra.mrb[20].mxu0 %vm553_vm3, %v7953_v2 }
  0x85   : > { %6732 = vmatprep.mubr.msk.bf16.mxu0 %vm553_vm3, %v7965_v37 }
  0x8a   : > { %6427 = vmatmul.mubr.msk.bf16.gmra.mrb[24].mxu1 %vm553_vm3, %v7977_v20 }
  0x8b   : > { %6430 = vmatprep.mubr.msk.bf16.mxu1 %vm553_vm3, %v8001_v29 }
  0x8c   : > { %6733 = vmatmul.mubr.msk.bf16.gmra.mrb[24].mxu0 %vm553_vm3, %v7981_v6 }
  0x8d   : > { %6736 = vmatprep.mubr.msk.bf16.mxu0 %vm553_vm3, %v8013_v53 }
  0x92   : > { %6431 = vmatmul.mubr.msk.bf16.gmra.mrb[28].mxu1 %vm553_vm3, %v8105_v12 }
  0x93   : > { %6436 = vmatprep.mubr.msk.bf16.mxu1 %vm553_vm3, %v7739_v36 }
  0x94   : > { %6737 = vmatmul.mubr.msk.bf16.gmra.mrb[28].mxu0 %vm553_vm3, %v8109_v23 }
  0x95   : > { %6742 = vmatprep.mubr.msk.bf16.mxu0 %vm553_vm3, %v7753_v49 }
  0x9a   : > { %6437 = vmatmul.mubr.msk.bf16.vlgmr.msra.gmra.mrb[0].mxu1 %vm553_vm3, %v7757_v50 }
  0x9b   : > { %6469 = vmatpush3.bf16.msra.mxu1 %v7601_v24  ;;  %6440 = vmatprep.mubr.msk.bf16.mxu1 %vm553_vm3, %v7785_v5  ;;  %v1223_v24 = vshll.u32 %v7739_v36, 16 }
  0x9c   : > { %6743 = vmatmul.mubr.msk.bf16.vlgmr.msra.gmra.mrb[0].mxu0 %vm553_vm3, %v7775_v63  ;;  %6502 = vmatprep.subr.bf16.mxu1 %v8122_v27  ;;  %v8252_v63 = vld [vmem:[%s9204_s2 + $0x38] sm:$0xff]  }
  0x9d   : > { %6775 = vmatpush3.bf16.msra.mxu0 %v7602_v58  ;;  %6746 = vmatprep.mubr.msk.bf16.mxu0 %vm553_vm3, %v7795_v10  ;;  %v8189_v58 = vsel %vm7696_vm2, %v7713_v25, 0  ;;  %v1225_v42 = vrot.slane %v1223_v24, 1  ;;  %v3736_v25 = vshrl.u32 %v7753_v49, 16 }
  0x9e   : > { %6808 = vmatprep.subr.bf16.mxu0 %v8129_v19  ;;  %9314 = vst [vmem:[#allocation40_spill] sm:$0xff] %v8189_v58  ;;  %v1228_v13 = vshll.u32 %v8189_v58, 16  ;;  %v3745_v58 = vrot.slane %v3743_v38, 1  ;;  %v3760_v38 = vshll.u32 %v7795_v10, 16 }
  0x9f   : > { %v1226_v24 = vor.u32 %v1225_v42, %v1221_v0  ;;  %v8234_v42 = vsel %vm7696_vm2, %v7764_v54, 0  ;;  %v3751_v0 = vrot.slane %v3749_v56, 1  ;;  %v1243_v54 = vshrl.u32 %v7785_v5, 16 }
  0xa0   : > { %v1230_v36 = vrot.slane %v1228_v13, 1  ;;  %v1232_v13 = vshrl.u32 %v7757_v50, 16  ;;  %9320 = vst [vmem:[#allocation45_spill] sm:$0xff] %v8234_v42  ;;  %v3758_v56 = vshrl.u32 %v7795_v10, 16 }
  0xa2   : > { %6441 = vmatmul.mubr.msk.bf16.gmra.mrb[4].mxu1 %vm553_vm3, %v7802_v14 }
  0xa3   : > { %6444 = vmatprep.mubr.msk.bf16.mxu1 %vm553_vm3, %v7814_v30 }
  0xa4   : > { %6747 = vmatmul.mubr.msk.bf16.gmra.mrb[4].mxu0 %vm553_vm3, %v7810_v21 }
  0xa5   : > { %6750 = vmatprep.mubr.msk.bf16.mxu0 %vm553_vm3, %v7825_v40 }
  0xaa   : > { %6445 = vmatmul.mubr.msk.bf16.gmra.mrb[8].mxu1 %vm553_vm3, %v7841_v52 }
  0xab   : > { %6448 = vmatprep.mubr.msk.bf16.mxu1 %vm553_vm3, %v7854_v3 }
  0xac   : > { %6751 = vmatmul.mubr.msk.bf16.gmra.mrb[8].mxu0 %vm553_vm3, %v7848_v55 }
  0xad   : > { %6754 = vmatprep.mubr.msk.bf16.mxu0 %vm553_vm3, %v7858_v4 }
  0xb2   : > { %6449 = vmatmul.mubr.msk.bf16.gmra.mrb[12].mxu1 %vm553_vm3, %v7882_v41 }
  0xb3   : > { %6452 = vmatprep.mubr.msk.bf16.mxu1 %vm553_vm3, %v7896_v57 }
  0xb4   : > { %6755 = vmatmul.mubr.msk.bf16.gmra.mrb[12].mxu0 %vm553_vm3, %v7890_v47 }
  0xb5   : > { %6758 = vmatprep.mubr.msk.bf16.mxu0 %vm553_vm3, %v7908_v17 }
  0xba   : > { %6453 = vmatmul.mubr.msk.bf16.gmra.mrb[16].mxu1 %vm553_vm3, %v7931_v61 }
  0xbb   : > { %6456 = vmatprep.mubr.msk.bf16.mxu1 %vm553_vm3, %v7935_v62 }
  0xbc   : > { %6759 = vmatmul.mubr.msk.bf16.gmra.mrb[16].mxu0 %vm553_vm3, %v7947_v22 }
  0xbd   : > { %6762 = vmatprep.mubr.msk.bf16.mxu0 %vm553_vm3, %v7953_v2 }
  0xc2   : > { %6457 = vmatmul.mubr.msk.bf16.gmra.mrb[20].mxu1 %vm553_vm3, %v7957_v26 }
  0xc3   : > { %6460 = vmatprep.mubr.msk.bf16.mxu1 %vm553_vm3, %v7977_v20 }
  0xc4   : > { %6763 = vmatmul.mubr.msk.bf16.gmra.mrb[20].mxu0 %vm553_vm3, %v7965_v37 }
  0xc5   : > { %6766 = vmatprep.mubr.msk.bf16.mxu0 %vm553_vm3, %v7981_v6 }
  0xca   : > { %6461 = vmatmul.mubr.msk.bf16.gmra.mrb[24].mxu1 %vm553_vm3, %v8001_v29 }
  0xcb   : > { %6464 = vmatprep.mubr.msk.bf16.mxu1 %vm553_vm3, %v8105_v12  ;;  %v3740_v12 = vrot.slane %v3738_v60, 1  ;;  %v8218_v60 = vsel %vm7696_vm2, %v7748_v45, 0 }
  0xcc   : > { %6767 = vmatmul.mubr.msk.bf16.gmra.mrb[24].mxu0 %vm553_vm3, %v8013_v53  ;;  %9318 = vst [vmem:[#allocation43_spill] sm:$0xff] %v8218_v60  ;;  %v3765_v53 = vshll.u32 %v8234_v42, 16  ;;  %v1254_v42 = vshrl.u32 %v7802_v14, 16 }
  0xcd   : > { %6770 = vmatprep.mubr.msk.bf16.mxu0 %vm553_vm3, %v8109_v23  ;;  %v1234_v23 = vshll.u32 %v7757_v50, 16  ;;  %v3741_v49 = vor.u32 %v3740_v12, %v3736_v25  ;;  %v1239_v12 = vshll.u32 %v8211_v33, 16  ;;  %v3754_v25 = vshll.u32 %v8218_v60, 16 }
  0xce   : > { %v1250_v50 = vshll.u32 %v8225_v34, 16  ;;  %v1256_v60 = vshll.u32 %v7802_v14, 16  ;;  %v3767_v10 = vrot.slane %v3765_v53, 1  ;;  %v8283_v34 = vsel %vm7696_vm2, %v7788_v7, 0 }
  0xcf   : > { %v1236_v45 = vrot.slane %v1234_v23, 1  ;;  %v8245_v23 = vsel %vm1202_vm4, %v3741_v49, %v3745_v58  ;;  %v1241_v49 = vrot.slane %v1239_v12, 1  ;;  %v8266_v58 = vsel %vm7696_vm2, %v7778_v1, 0  ;;  %9322 = vst [vmem:[#allocation47_spill] sm:$0xff] %v8283_v34 }
  0xd0   : > { %9321 = vst [vmem:[#allocation46_spill] sm:$0xff] %v8266_v58  ;;  %v1252_v12 = vrot.slane %v1250_v50, 1  ;;  %v3776_v53 = vshll.u32 %v8266_v58, 16  ;;  %v3769_v7 = vshrl.u32 %v7810_v21, 16 }
  0xd2   : > { %6465 = vmatmul.mubr.bf16.gmra.mrb[28].mxu1 %v9316_v16 }
  0xd3   : > { %6470 = vmatprep.mubr.msk.bf16.mxu1 %vm553_vm3, %v8200_v11 }
  0xd4   : > { %6771 = vmatmul.mubr.bf16.gmra.mrb[28].mxu0 %v9316_v16  ;;  %v8240_v16 = vsel %vm1202_vm4, %v1226_v24, %v1230_v36  ;;  %v1237_v36 = vor.u32 %v1236_v45, %v1232_v13  ;;  %v3762_v24 = vrot.slane %v3760_v38, 1  ;;  %v3771_v13 = vshll.u32 %v7810_v21, 16  ;;  %v8272_v45 = vld [vmem:[%s9205_s3 + $0x38] sm:$0xff]  }
  0xd5   : > { %6776 = vmatprep.mubr.msk.bf16.mxu0 %vm553_vm3, %v8200_v11  ;;  %v1247_v11 = vrot.slane %v1245_v28, 1  ;;  %v8261_v28 = vsel %vm7696_vm2, %v7770_v59, 0  ;;  %v3752_v38 = vor.u32 %v3751_v0, %v3747_v51  ;;  %v3756_v59 = vrot.slane %v3754_v25, 1 }
  0xd6   : > { %v3763_v50 = vor.u32 %v3762_v24, %v3758_v56  ;;  %v1258_v51 = vrot.slane %v1256_v60, 1  ;;  %v1261_v0 = vshll.u32 %v8261_v28, 16  ;;  %v3773_v25 = vrot.slane %v3771_v13, 1 }
  0xd7   : > { %v1248_v1 = vor.u32 %v1247_v11, %v1243_v54  ;;  %v8293_v11 = vsel %vm1202_vm4, %v1237_v36, %v1241_v49  ;;  %v3782_v54 = vshll.u32 %v7825_v40, 16  ;;  %v1272_v56 = vshll.u32 %v8283_v34, 16 }
  0xd8   : > { %v8305_v60 = vsel %vm7696_vm2, %v7805_v18, 0  ;;  %v1278_v36 = vshll.u32 %v7841_v52, 16  ;;  %v1265_v49 = vshrl.u32 %v7814_v30, 16  ;;  %v1259_v58 = vor.u32 %v1258_v51, %v1254_v42 }
  0xd9   : > { %9323 = vst [vmem:[#allocation48_spill] sm:$0xff] %v8305_v60  ;;  %v8309_v24 = vsel %vm1202_vm4, %v1248_v1, %v1252_v12  ;;  %v1263_v21 = vrot.slane %v1261_v0, 1  ;;  %v3778_v18 = vrot.slane %v3776_v53, 1  ;;  %v3774_v34 = vor.u32 %v3773_v25, %v3769_v7 }
  0xda   : > { %6471 = vmatmul.mubr.msk.bf16.vlgmr.msra.gmra.mrb[0].mxu1 %vm553_vm3, %v8026_v9  ;;  %v3780_v12 = vshrl.u32 %v7825_v40, 16  ;;  %v3784_v1 = vrot.slane %v3782_v54, 1  ;;  %v8333_v51 = vsel %vm7696_vm2, %v7819_v35, 0  ;;  %v8338_v0 = vsel %vm7696_vm2, %v7831_v44, 0 }
  0xdb   : > { %6503 = vmatpush3.bf16.msra.mxu1 %v8122_v27  ;;  %6474 = vmatprep.mubr.msk.bf16.mxu1 %vm553_vm3, %v8240_v16  ;;  %v1267_v27 = vshll.u32 %v7814_v30, 16  ;;  %v1276_v30 = vshrl.u32 %v7841_v52, 16  ;;  %9325 = vst [vmem:[#allocation50_spill] sm:$0xff] %v8333_v51  ;;  %9326 = vst [vmem:[#allocation51_spill] sm:$0xff] %v8338_v0  ;;  %v1289_v53 = vshll.u32 %v7854_v3, 16  ;;  %v8344_v7 = vsel %vm1202_vm4, %v1259_v58, %v1263_v21 }
  0xdc   : > { %6777 = vmatmul.mubr.msk.bf16.vlgmr.msra.gmra.mrb[0].mxu0 %vm553_vm3, %v8040_v48  ;;  %6536 = vmatprep.subr.bf16.mxu1 %v8252_v63  ;;  %v3793_v25 = vshll.u32 %v7848_v55, 16  ;;  %v3804_v54 = vshll.u32 %v7858_v4, 16  ;;  %v8349_v35 = vsel %vm1202_vm4, %v3774_v34, %v3778_v18  ;;  %v8354_v44 = vsel %vm7696_vm2, %v7833_v46, 0 }
  0xdd   : > { %6809 = vmatpush3.bf16.msra.mxu0 %v8129_v19  ;;  %6780 = vmatprep.mubr.msk.bf16.mxu0 %vm553_vm3, %v8245_v23  ;;  %v8299_v19 = vsel %vm1202_vm4, %v3752_v38, %v3756_v59  ;;  %v1269_v13 = vrot.slane %v1267_v27, 1  ;;  %v8315_v38 = vsel %vm7696_vm2, %v7817_v32, 0  ;;  %v8318_v59 = vsel %vm1202_vm4, %v3763_v50, %v3767_v10  ;;  %9327 = vst [vmem:[#allocation52_spill] sm:$0xff] %v8354_v44 }
  0xde   : > { %6842 = vmatprep.subr.bf16.mxu0 %v8272_v45  ;;  %9324 = vst [vmem:[#allocation49_spill] sm:$0xff] %v8315_v38  ;;  %v3787_v27 = vshll.u32 %v8305_v60, 16  ;;  %v1274_v32 = vrot.slane %v1272_v56, 1  ;;  %v1280_v10 = vrot.slane %v1278_v36, 1  ;;  %v1283_v42 = vshll.u32 %v8315_v38, 16  ;;  %v9332_v60 = vld [vmem:[#allocation18_spill] sm:$0xff] }
  0xdf   : > { %v1270_v50 = vor.u32 %v1269_v13, %v1265_v49  ;;  %v3785_v56 = vor.u32 %v3784_v1, %v3780_v12  ;;  %v3798_v38 = vshll.u32 %v8333_v51, 16  ;;  %v1294_v21 = vshll.u32 %v8338_v0, 16 }
  0xe0   : > { %v3789_v36 = vrot.slane %v3787_v27, 1  ;;  %v1281_v49 = vor.u32 %v1280_v10, %v1276_v30  ;;  %v1285_v13 = vrot.slane %v1283_v42, 1  ;;  %v3791_v52 = vshrl.u32 %v7848_v55, 16  ;;  %v9328_v10 = vld [vmem:[#allocation15_spill] sm:$0xff] }
  0xe1   : > { %v8359_v58 = vsel %vm1202_vm4, %v1270_v50, %v1274_v32  ;;  %v1287_v34 = vshrl.u32 %v7854_v3, 16  ;;  %v1291_v18 = vrot.slane %v1289_v53, 1  ;;  %v3795_v12 = vrot.slane %v3793_v25, 1 }
  0xe2   : > { %6475 = vmatmul.mubr.msk.bf16.gmra.mrb[4].mxu1 %vm553_vm3, %v8293_v11  ;;  %v3802_v1 = vshrl.u32 %v7858_v4, 16  ;;  %v3806_v27 = vrot.slane %v3804_v54, 1  ;;  %v3809_v46 = vshll.u32 %v8354_v44, 16  ;;  %v8368_v30 = vsel %vm1202_vm4, %v3785_v56, %v3789_v36  ;;  %v9329_v36 = vld [vmem:[#allocation16_spill] sm:$0xff]  ;;  %v9331_v44 = vld [vmem:[#allocation17_spill] sm:$0xff] }
  0xe3   : > { %6478 = vmatprep.mubr.msk.bf16.mxu1 %vm553_vm3, %v8309_v24  ;;  %v8373_v32 = vsel %vm7696_vm2, %v9328_v10, 0  ;;  %v1300_v42 = vshll.u32 %v7882_v41, 16  ;;  %v8379_v50 = vsel %vm1202_vm4, %v1281_v49, %v1285_v13  ;;  %v3800_v53 = vrot.slane %v3798_v38, 1 }
  0xe4   : > { %6781 = vmatmul.mubr.msk.bf16.gmra.mrb[4].mxu0 %vm553_vm3, %v8299_v19  ;;  %v1296_v25 = vrot.slane %v1294_v21, 1  ;;  %v3815_v54 = vshll.u32 %v7890_v47, 16  ;;  %v1292_v56 = vor.u32 %v1291_v18, %v1287_v34  ;;  %v8387_v10 = vsel %vm7696_vm2, %v9329_v36, 0 }
  0xe5   : > { %6784 = vmatprep.mubr.msk.bf16.mxu0 %vm553_vm3, %v8318_v59  ;;  %9330 = vst [vmem:[#allocation15_spill] sm:$0xff] %v8387_v10  ;;  %v8392_v4 = vsel %vm7696_vm2, %v9331_v44, 0  ;;  %v1311_v49 = vshll.u32 %v7896_v57, 16  ;;  %v3796_v38 = vor.u32 %v3795_v12, %v3791_v52  ;;  %v3807_v13 = vor.u32 %v3806_v27, %v3802_v1 }
  0xe6   : > { %v3811_v21 = vrot.slane %v3809_v46, 1  ;;  %v1305_v34 = vshll.u32 %v8373_v32, 16  ;;  %v1298_v18 = vshrl.u32 %v7882_v41, 16  ;;  %v1302_v51 = vrot.slane %v1300_v42, 1 }
  0xe7   : > { %v3813_v36 = vshrl.u32 %v7890_v47, 16  ;;  %v3826_v55 = vshll.u32 %v7908_v17, 16  ;;  %v3817_v0 = vrot.slane %v3815_v54, 1  ;;  %v3820_v44 = vshll.u32 %v8387_v10, 16 }
  0xe8   : > { %v1316_v3 = vshll.u32 %v8392_v4, 16  ;;  %v8406_v52 = vsel %vm7696_vm2, %v9332_v60, 0  ;;  %v8409_v12 = vsel %vm1202_vm4, %v1292_v56, %v1296_v25  ;;  %v1309_v1 = vshrl.u32 %v7896_v57, 16  ;;  %v9334_v56 = vld [vmem:[#allocation20_spill] sm:$0xff] }
  0xe9   : > { %9333 = vst [vmem:[#allocation16_spill] sm:$0xff] %v8406_v52  ;;  %v1313_v27 = vrot.slane %v1311_v49, 1  ;;  %v8413_v46 = vsel %vm1202_vm4, %v3796_v38, %v3800_v53  ;;  %v8416_v42 = vsel %vm1202_vm4, %v3807_v13, %v3811_v21  ;;  %v1307_v54 = vrot.slane %v1305_v34, 1 }
  0xea   : > { %6479 = vmatmul.mubr.msk.bf16.gmra.mrb[8].mxu1 %vm553_vm3, %v8344_v7  ;;  %v1322_v10 = vshll.u32 %v7931_v61, 16  ;;  %v3824_v60 = vshrl.u32 %v7908_v17, 16  ;;  %v3828_v47 = vrot.slane %v3826_v55, 1  ;;  %v3831_v25 = vshll.u32 %v8406_v52, 16  ;;  %v9336_v17 = vld [vmem:[#allocation22_spill] sm:$0xff] }
  0xeb   : > { %6482 = vmatprep.mubr.msk.bf16.mxu1 %vm553_vm3, %v8359_v58  ;;  %v8426_v49 = vsel %vm7696_vm2, %v9334_v56, 0  ;;  %v1303_v53 = vor.u32 %v1302_v51, %v1298_v18  ;;  %v3818_v38 = vor.u32 %v3817_v0, %v3813_v36  ;;  %v3822_v13 = vrot.slane %v3820_v44, 1  ;;  %v9338_v18 = vld [vmem:[#allocation21_spill] sm:$0xff] }
  0xec   : > { %6785 = vmatmul.mubr.msk.bf16.gmra.mrb[8].mxu0 %vm553_vm3, %v8349_v35  ;;  %9335 = vst [vmem:[#allocation17_spill] sm:$0xff] %v8426_v49  ;;  %v1318_v21 = vrot.slane %v1316_v3, 1  ;;  %v1314_v34 = vor.u32 %v1313_v27, %v1309_v1  ;;  %v1320_v55 = vshrl.u32 %v7931_v61, 16  ;;  %v8436_v52 = vsel %vm7696_vm2, %v9336_v17, 0 }
  0xed   : > { %6788 = vmatprep.mubr.msk.bf16.mxu0 %vm553_vm3, %v8368_v30  ;;  %9337 = vst [vmem:[#allocation18_spill] sm:$0xff] %v8436_v52  ;;  %v1333_v56 = vshll.u32 %v7935_v62, 16  ;;  %v1324_v51 = vrot.slane %v1322_v10, 1  ;;  %v1327_v0 = vshll.u32 %v8426_v49, 16  ;;  %v3837_v3 = vshll.u32 %v7947_v22, 16 }
  0xee   : > { %v8446_v36 = vsel %vm7696_vm2, %v9338_v18, 0  ;;  %v3829_v44 = vor.u32 %v3828_v47, %v3824_v60  ;;  %v3833_v1 = vrot.slane %v3831_v25, 1  ;;  %v3848_v17 = vshll.u32 %v7953_v2, 16 }
  0xef   : > { %v8450_v27 = vsel %vm1202_vm4, %v1303_v53, %v1307_v54  ;;  %v8453_v61 = vsel %vm1202_vm4, %v3818_v38, %v3822_v13  ;;  %v3842_v10 = vshll.u32 %v8436_v52, 16  ;;  %v8459_v49 = vsel %vm7696_vm2, %v7915_v43, 0 }
  0xf0   : > { %9339 = vst [vmem:[#allocation20_spill] sm:$0xff] %v8459_v49  ;;  %v8462_v18 = vsel %vm1202_vm4, %v1314_v34, %v1318_v21  ;;  %v1331_v47 = vshrl.u32 %v7935_v62, 16  ;;  %v1335_v60 = vrot.slane %v1333_v56, 1  ;;  %v1338_v25 = vshll.u32 %v8446_v36, 16 }
  0xf1   : > { %v1325_v54 = vor.u32 %v1324_v51, %v1320_v55  ;;  %v1329_v53 = vrot.slane %v1327_v0, 1  ;;  %v3835_v38 = vshrl.u32 %v7947_v22, 16  ;;  %v3839_v13 = vrot.slane %v3837_v3, 1 }
  0xf2   : > { %6483 = vmatmul.mubr.msk.bf16.gmra.mrb[12].mxu1 %vm553_vm3, %v8379_v50  ;;  %v8470_v52 = vsel %vm1202_vm4, %v3829_v44, %v3833_v1  ;;  %v3846_v43 = vshrl.u32 %v7953_v2, 16  ;;  %v3850_v21 = vrot.slane %v3848_v17, 1  ;;  %v3853_v34 = vshll.u32 %v8459_v49, 16 }
  0xf3   : > { %6486 = vmatprep.mubr.msk.bf16.mxu1 %vm553_vm3, %v8409_v12  ;;  %v3844_v56 = vrot.slane %v3842_v10, 1  ;;  %v1344_v55 = vshll.u32 %v7957_v26, 16  ;;  %v1336_v51 = vor.u32 %v1335_v60, %v1331_v47  ;;  %v1340_v0 = vrot.slane %v1338_v25, 1 }
  0xf4   : > { %6789 = vmatmul.mubr.msk.bf16.gmra.mrb[12].mxu0 %vm553_vm3, %v8413_v46  ;;  %v8482_v3 = vsel %vm7696_vm2, %v7917_v31, 0  ;;  %v1355_v44 = vshll.u32 %v7977_v20, 16  ;;  %v8488_v1 = vsel %vm1202_vm4, %v1325_v54, %v1329_v53  ;;  %v3840_v17 = vor.u32 %v3839_v13, %v3835_v38  ;;  %v9343_v13 = vld [vmem:[#allocation25_spill] sm:$0xff] }
  0xf5   : > { %6792 = vmatprep.mubr.msk.bf16.mxu0 %vm553_vm3, %v8416_v42  ;;  %9340 = vst [vmem:[#allocation22_spill] sm:$0xff] %v8482_v3  ;;  %v3859_v10 = vshll.u32 %v7965_v37, 16  ;;  %v8494_v47 = vsel %vm7696_vm2, %v7939_v8, 0  ;;  %v3851_v60 = vor.u32 %v3850_v21, %v3846_v43  ;;  %v3855_v25 = vrot.slane %v3853_v34, 1 }
  0xf6   : > { %9341 = vst [vmem:[#allocation21_spill] sm:$0xff] %v8494_v47  ;;  %v8499_v31 = vsel %vm7696_vm2, %v7923_v39, 0  ;;  %v3870_v49 = vshll.u32 %v7981_v6, 16  ;;  %v1342_v54 = vshrl.u32 %v7957_v26, 16  ;;  %v1346_v53 = vrot.slane %v1344_v55, 1 }
  0xf7   : > { %9342 = vst [vmem:[#allocation53_spill] sm:$0xff] %v8499_v31  ;;  %v1349_v38 = vshll.u32 %v8482_v3, 16  ;;  %v8507_v2 = vsel %vm7696_vm2, %v9343_v13, 0  ;;  %v8510_v8 = vsel %vm1202_vm4, %v1336_v51, %v1340_v0  ;;  %v1353_v43 = vshrl.u32 %v7977_v20, 16 }
  0xf8   : > { %9344 = vst [vmem:[#allocation25_spill] sm:$0xff] %v8507_v2  ;;  %v1357_v21 = vrot.slane %v1355_v44, 1  ;;  %v1360_v39 = vshll.u32 %v8494_v47, 16  ;;  %v8515_v34 = vsel %vm1202_vm4, %v3840_v17, %v3844_v56  ;;  %v3857_v55 = vshrl.u32 %v7965_v37, 16  ;;  %v9345_v47 = vld [vmem:[#allocation29_spill] sm:$0xff] }
  0xf9   : > { %v3861_v26 = vrot.slane %v3859_v10, 1  ;;  %v3864_v3 = vshll.u32 %v8499_v31, 16  ;;  %v8522_v13 = vsel %vm1202_vm4, %v3851_v60, %v3855_v25  ;;  %v3868_v51 = vshrl.u32 %v7981_v6, 16  ;;  %v9347_v6 = vld [vmem:[#allocation30_spill] sm:$0xff] }
  0xfa   : > { %6487 = vmatmul.mubr.msk.bf16.gmra.mrb[16].mxu1 %vm553_vm3, %v8450_v27  ;;  %v3872_v0 = vrot.slane %v3870_v49, 1  ;;  %v3875_v44 = vshll.u32 %v8507_v2, 16  ;;  %v1347_v56 = vor.u32 %v1346_v53, %v1342_v54  ;;  %v1351_v17 = vrot.slane %v1349_v38, 1  ;;  %v9346_v2 = vld [vmem:[#allocation35_spill] sm:$0xff] }
  0xfb   : > { %6490 = vmatprep.mubr.msk.bf16.mxu1 %vm553_vm3, %v8462_v18  ;;  %v1366_v10 = vshll.u32 %v8001_v29, 16  ;;  %v1358_v31 = vor.u32 %v1357_v21, %v1353_v43  ;;  %v1362_v37 = vrot.slane %v1360_v39, 1  ;;  %v8534_v60 = vsel %vm7696_vm2, %v9345_v47, 0 }
  0xfc   : > { %6793 = vmatmul.mubr.msk.bf16.gmra.mrb[16].mxu0 %vm553_vm3, %v8453_v61  ;;  %v3862_v49 = vor.u32 %v3861_v26, %v3857_v55  ;;  %v3866_v25 = vrot.slane %v3864_v3, 1  ;;  %v3881_v54 = vshll.u32 %v9346_v2, 16  ;;  %v3873_v53 = vor.u32 %v3872_v0, %v3868_v51 }
  0xfd   : > { %6796 = vmatprep.mubr.msk.bf16.mxu0 %vm553_vm3, %v8470_v52  ;;  %v3877_v38 = vrot.slane %v3875_v44, 1  ;;  %v8542_v20 = vsel %vm7696_vm2, %v9347_v6, 0  ;;  %v8545_v43 = vsel %vm1202_vm4, %v1347_v56, %v1351_v17  ;;  %v1364_v47 = vshrl.u32 %v8001_v29, 16 }
  0xfe   : > { %v1368_v21 = vrot.slane %v1366_v10, 1  ;;  %v1371_v39 = vshll.u32 %v8534_v60, 16  ;;  %v8550_v26 = vsel %vm1202_vm4, %v1358_v31, %v1362_v37  ;;  %v8553_v3 = vsel %vm1202_vm4, %v3862_v49, %v3866_v25  ;;  %v9348_v49 = vld [vmem:[#allocation2_spill] sm:$0xff] }
  0xff   : > { %v3879_v55 = vshrl.u32 %v9346_v2, 16  ;;  %v3883_v51 = vrot.slane %v3881_v54, 1  ;;  %v3886_v6 = vshll.u32 %v8542_v20, 16  ;;  %v8560_v0 = vsel %vm1202_vm4, %v3873_v53, %v3877_v38  ;;  %v9349_v54 = vld [vmem:[#allocation33_spill] sm:$0xff] }
 0x100   : > { %v1369_v44 = vor.u32 %v1368_v21, %v1364_v47  ;;  %v1373_v37 = vrot.slane %v1371_v39, 1  ;;  %v2077_v25 = vrot.slane %v9348_v49, 1  ;;  %v2078_v53 = vrot.slane %v9349_v54, 1  ;;  %v9350_v47 = vld [vmem:[#allocation3_spill] sm:$0xff]  ;;  %v9351_v39 = vld [vmem:[#allocation34_spill] sm:$0xff] }
 0x101   : > { %v3884_v31 = vor.u32 %v3883_v51, %v3879_v55  ;;  %v3888_v56 = vrot.slane %v3886_v6, 1  ;;  %v4585_v21 = vrot.slane %v9350_v47, 1  ;;  %v4586_v55 = vrot.slane %v9351_v39, 1  ;;  %v7607_v51 = vld [vmem:[%s9204_s2 + $0x10] sm:$0xff]  }
 0x102   : > { %6491 = vmatmul.mubr.msk.bf16.gmra.mrb[20].mxu1 %vm553_vm3, %v8488_v1  ;;  %v8569_v17 = vsel %vm1202_vm4, %v1369_v44, %v1373_v37  ;;  %v8585_v38 = vsel %vm2074_vm5, %v2077_v25, %v2078_v53  ;;  %v9353_v6 = vld [vmem:[#allocation36_spill] sm:$0xff]  ;;  %v9354_v37 = vld [vmem:[#allocation39_spill] sm:$0xff] }
 0x103   : > { %6494 = vmatprep.mubr.msk.bf16.mxu1 %vm553_vm3, %v8510_v8  ;;  %v8572_v10 = vsel %vm1202_vm4, %v3884_v31, %v3888_v56  ;;  %v8650_v44 = vsel %vm7696_vm2, %v9353_v6, 0  ;;  %v4139_v31 = vshll.u32 %v9354_v37, 16  ;;  %v9355_v56 = vld [vmem:[#allocation37_spill] sm:$0xff]  ;;  %v4137_v47 = vshrl.u32 %v9354_v37, 16 }
 0x104   : > { %6797 = vmatmul.mubr.msk.bf16.gmra.mrb[20].mxu0 %vm553_vm3, %v8515_v34  ;;  %v8658_v49 = vsel %vm7696_vm2, %v9355_v56, 0  ;;  %v1632_v53 = vshll.u32 %v8650_v44, 16 }
 0x105   : > { %6800 = vmatprep.mubr.msk.bf16.mxu0 %vm553_vm3, %v8522_v13  ;;  %v4144_v39 = vshll.u32 %v8658_v49, 16 }
 0x106   : > { %v1634_v15 = vrot.slane %v1632_v53, 1  ;;  %v2090_v53 = vrot.slane %v8261_v28, 1 }
 0x107   : > { %v4146_v6 = vrot.slane %v4144_v39, 1  ;;  %v9368_v39 = vld [vmem:[#allocation47_spill] sm:$0xff] }
 0x10a   : > { %6495 = vmatmul.mubr.msk.bf16.gmra.mrb[24].mxu1 %vm553_vm3, %v8545_v43 }
 0x10b   : > { %6498 = vmatprep.mubr.msk.bf16.mxu1 %vm553_vm3, %v8550_v26 }
 0x10c   : > { %6801 = vmatmul.mubr.msk.bf16.gmra.mrb[24].mxu0 %vm553_vm3, %v8553_v3 }
 0x10d   : > { %6804 = vmatprep.mubr.msk.bf16.mxu0 %vm553_vm3, %v8560_v0 }
 0x112   : > { %6499 = vmatmul.mubr.msk.bf16.gmra.mrb[28].mxu1 %vm553_vm3, %v8569_v17 }
 0x113   : > { %6504 = vmatprep.mubr.msk.bf16.mxu1 %vm553_vm3, %v8026_v9  ;;  %v7608_v9 = vld [vmem:[%s9205_s3 + $0x10] sm:$0xff]  }
 0x114   : > { %6805 = vmatmul.mubr.msk.bf16.gmra.mrb[28].mxu0 %vm553_vm3, %v8572_v10 }
 0x115   : > { %6810 = vmatprep.mubr.msk.bf16.mxu0 %vm553_vm3, %v8040_v48  ;;  %v8601_v48 = vsel %vm2074_vm5, %v4585_v21, %v4586_v55  ;;  %v4141_v21 = vrot.slane %v4139_v31, 1 }
 0x11a   : > { %6505 = vmatmul.mubr.msk.bf16.vlgmr.msra.gmra.mrb[0].mxu1 %vm553_vm3, %v8240_v16 }
 0x11b   : > { %6537 = vmatpush3.bf16.msra.mxu1 %v8252_v63  ;;  %6508 = vmatprep.mubr.msk.bf16.mxu1 %vm553_vm3, %v8293_v11  ;;  %v9352_v63 = vld [vmem:[#allocation38_spill] sm:$0xff] }
 0x11c   : > { %6811 = vmatmul.mubr.msk.bf16.vlgmr.msra.gmra.mrb[0].mxu0 %vm553_vm3, %v8245_v23  ;;  %6570 = vmatprep.subr.bf16.mxu1 %v7607_v51  ;;  %v1625_v25 = vshrl.u32 %v9352_v63, 16 }
 0x11d   : > { %6843 = vmatpush3.bf16.msra.mxu0 %v8272_v45  ;;  %6814 = vmatprep.mubr.msk.bf16.mxu0 %vm553_vm3, %v8299_v19  ;;  %v1627_v45 = vshll.u32 %v9352_v63, 16 }
 0x11e   : > { %6876 = vmatprep.subr.bf16.mxu0 %v7608_v9 }
 0x11f   : > { %v1629_v54 = vrot.slane %v1627_v45, 1  ;;  %v4142_v45 = vor.u32 %v4141_v21, %v4137_v47  ;;  %v9367_v47 = vld [vmem:[#allocation10_spill] sm:$0xff] }
 0x120   : > { %v2092_v21 = vrot.slane %v9367_v47, 1  ;;  %v2105_v47 = vrot.slane %v8392_v4, 1 }
 0x121   : > { %v1630_v55 = vor.u32 %v1629_v54, %v1625_v25  ;;  %v4147_v56 = vsel %vm1202_vm4, %v4142_v45, %v4146_v6  ;;  %v7609_v25 = vld [vmem:[%s9204_s2 + $0x28] sm:$0xff]   ;;  %v9370_v6 = vld [vmem:[#allocation46_spill] sm:$0xff] }
 0x122   : > { %6509 = vmatmul.mubr.msk.bf16.gmra.mrb[4].mxu1 %vm553_vm3, %v8309_v24  ;;  %v7610_v54 = vld [vmem:[%s9205_s3 + $0x28] sm:$0xff]  }
 0x123   : > { %6512 = vmatprep.mubr.msk.bf16.mxu1 %vm553_vm3, %v8344_v7  ;;  %v1635_v31 = vsel %vm1202_vm4, %v1630_v55, %v1634_v15  ;;  %v2093_v55 = vrot.slane %v9368_v39, 1  ;;  %v9369_v15 = vld [vmem:[#allocation9_spill] sm:$0xff] }
 0x124   : > { %6815 = vmatmul.mubr.msk.bf16.gmra.mrb[4].mxu0 %vm553_vm3, %v8318_v59  ;;  %v4597_v45 = vrot.slane %v9369_v15, 1 }
 0x125   : > { %6818 = vmatprep.mubr.msk.bf16.mxu0 %vm553_vm3, %v8349_v35 }
 0x12a   : > { %6513 = vmatmul.mubr.msk.bf16.gmra.mrb[8].mxu1 %vm553_vm3, %v8359_v58 }
 0x12b   : > { %6516 = vmatprep.mubr.msk.bf16.mxu1 %vm553_vm3, %v8379_v50 }
 0x12c   : > { %6819 = vmatmul.mubr.msk.bf16.gmra.mrb[8].mxu0 %vm553_vm3, %v8368_v30 }
 0x12d   : > { %6822 = vmatprep.mubr.msk.bf16.mxu0 %vm553_vm3, %v8413_v46 }
 0x132   : > { %6517 = vmatmul.mubr.msk.bf16.gmra.mrb[12].mxu1 %vm553_vm3, %v8409_v12 }
 0x133   : > { %6520 = vmatprep.mubr.msk.bf16.mxu1 %vm553_vm3, %v8450_v27 }
 0x134   : > { %6823 = vmatmul.mubr.msk.bf16.gmra.mrb[12].mxu0 %vm553_vm3, %v8416_v42 }
 0x135   : > { %6826 = vmatprep.mubr.msk.bf16.mxu0 %vm553_vm3, %v8453_v61 }
 0x13a   : > { %6521 = vmatmul.mubr.msk.bf16.gmra.mrb[16].mxu1 %vm553_vm3, %v8462_v18 }
 0x13b   : > { %6524 = vmatprep.mubr.msk.bf16.mxu1 %vm553_vm3, %v8488_v1 }
 0x13c   : > { %6827 = vmatmul.mubr.msk.bf16.gmra.mrb[16].mxu0 %vm553_vm3, %v8470_v52 }
 0x13d   : > { %6830 = vmatprep.mubr.msk.bf16.mxu0 %vm553_vm3, %v8515_v34 }
 0x142   : > { %6525 = vmatmul.mubr.msk.bf16.gmra.mrb[20].mxu1 %vm553_vm3, %v8510_v8 }
 0x143   : > { %6528 = vmatprep.mubr.msk.bf16.mxu1 %vm553_vm3, %v8545_v43 }
 0x144   : > { %6831 = vmatmul.mubr.msk.bf16.gmra.mrb[20].mxu0 %vm553_vm3, %v8522_v13 }
 0x145   : > { %6834 = vmatprep.mubr.msk.bf16.mxu0 %vm553_vm3, %v8553_v3 }
 0x14a   : > { %6529 = vmatmul.mubr.msk.bf16.gmra.mrb[24].mxu1 %vm553_vm3, %v8550_v26 }
 0x14b   : > { %6532 = vmatprep.mubr.msk.bf16.mxu1 %vm553_vm3, %v8569_v17 }
 0x14c   : > { %6835 = vmatmul.mubr.msk.bf16.gmra.mrb[24].mxu0 %vm553_vm3, %v8560_v0 }
 0x14d   : > { %6838 = vmatprep.mubr.msk.bf16.mxu0 %vm553_vm3, %v8572_v10 }
 0x152   : > { %6533 = vmatmul.mubr.msk.bf16.gmra.mrb[28].mxu1 %vm553_vm3, %v1635_v31 }
 0x153   : > { %6538 = vmatprep.mubr.msk.bf16.mxu1 %vm553_vm3, %v8240_v16  ;;  %v9357_v16 = vld [vmem:[#allocation4_spill] sm:$0xff] }
 0x154   : > { %6839 = vmatmul.mubr.msk.bf16.gmra.mrb[28].mxu0 %vm553_vm3, %v4147_v56 }
 0x155   : > { %6844 = vmatprep.mubr.msk.bf16.mxu0 %vm553_vm3, %v8245_v23  ;;  %v2080_v23 = vrot.slane %v9357_v16, 1 }
 0x15a   : > { %6539 = vmatmul.mubr.msk.bf16.vlgmr.msra.gmra.mrb[0].mxu1 %vm553_vm3, %v8293_v11  ;;  %v9358_v11 = vld [vmem:[#allocation40_spill] sm:$0xff] }
 0x15b   : > { %6571 = vmatpush3.bf16.msra.mxu1 %v7607_v51  ;;  %6542 = vmatprep.mubr.msk.bf16.mxu1 %vm553_vm3, %v8309_v24  ;;  %v9359_v24 = vld [vmem:[#allocation5_spill] sm:$0xff] }
 0x15c   : > { %6845 = vmatmul.mubr.msk.bf16.vlgmr.msra.gmra.mrb[0].mxu0 %vm553_vm3, %v8299_v19  ;;  %6604 = vmatprep.subr.bf16.mxu1 %v7609_v25  ;;  %v2081_v19 = vrot.slane %v9358_v11, 1 }
 0x15d   : > { %6877 = vmatpush3.bf16.msra.mxu0 %v7608_v9  ;;  %6848 = vmatprep.mubr.msk.bf16.mxu0 %vm553_vm3, %v8318_v59  ;;  %v4588_v59 = vrot.slane %v9359_v24, 1  ;;  %v2089_v9 = vrot.slane %v7802_v14, 1 }
 0x15e   : > { %6910 = vmatprep.subr.bf16.mxu0 %v7610_v54 }
 0x15f   : > { %v8815_v28 = vsel %vm2074_vm5, %v2089_v9, %v2090_v53  ;;  %v2102_v9 = vrot.slane %v8373_v32, 1  ;;  %v2104_v53 = vrot.slane %v7896_v57, 1 }
 0x162   : > { %6543 = vmatmul.mubr.msk.bf16.gmra.mrb[4].mxu1 %vm553_vm3, %v8344_v7  ;;  %v9360_v7 = vld [vmem:[#allocation41_spill] sm:$0xff] }
 0x163   : > { %6546 = vmatprep.mubr.msk.bf16.mxu1 %vm553_vm3, %v8359_v58  ;;  %v8753_v58 = vsel %vm2074_vm5, %v2080_v23, %v2081_v19  ;;  %v9373_v19 = vld [vmem:[#allocation49_spill] sm:$0xff] }
 0x164   : > { %6849 = vmatmul.mubr.msk.bf16.gmra.mrb[4].mxu0 %vm553_vm3, %v8349_v35  ;;  %v4589_v35 = vrot.slane %v9360_v7, 1  ;;  %v2096_v24 = vrot.slane %v9373_v19, 1  ;;  %v2110_v19 = vrot.slane %v7935_v62, 1 }
 0x165   : > { %6852 = vmatprep.mubr.msk.bf16.mxu0 %vm553_vm3, %v8368_v30  ;;  %v8758_v30 = vld [vmem:[%s9204_s2 + $0x40] sm:$0xff]  }
 0x16a   : > { %6547 = vmatmul.mubr.msk.bf16.gmra.mrb[8].mxu1 %vm553_vm3, %v8379_v50  ;;  %v8763_v50 = vsel %vm2074_vm5, %v4588_v59, %v4589_v35  ;;  %v9374_v59 = vld [vmem:[#allocation13_spill] sm:$0xff]  ;;  %v9375_v35 = vld [vmem:[#allocation51_spill] sm:$0xff] }
 0x16b   : > { %6550 = vmatprep.mubr.msk.bf16.mxu1 %vm553_vm3, %v8409_v12  ;;  %v9361_v12 = vld [vmem:[#allocation6_spill] sm:$0xff]  ;;  %v2098_v7 = vrot.slane %v9374_v59, 1  ;;  %v4615_v59 = vrot.slane %v7947_v22, 1 }
 0x16c   : > { %6853 = vmatmul.mubr.msk.bf16.gmra.mrb[8].mxu0 %vm553_vm3, %v8413_v46  ;;  %v2083_v46 = vrot.slane %v9361_v12, 1  ;;  %v2099_v12 = vrot.slane %v9375_v35, 1 }
 0x16d   : > { %6856 = vmatprep.mubr.msk.bf16.mxu0 %vm553_vm3, %v8416_v42  ;;  %v2084_v42 = vrot.slane %v8211_v33, 1  ;;  %v9366_v33 = vld [vmem:[#allocation45_spill] sm:$0xff] }
 0x172   : > { %6551 = vmatmul.mubr.msk.bf16.gmra.mrb[12].mxu1 %vm553_vm3, %v8450_v27  ;;  %v2086_v27 = vrot.slane %v7785_v5, 1  ;;  %v8787_v5 = vsel %vm2074_vm5, %v2083_v46, %v2084_v42  ;;  %v9376_v46 = vld [vmem:[#allocation12_spill] sm:$0xff] }
 0x173   : > { %6554 = vmatprep.mubr.msk.bf16.mxu1 %vm553_vm3, %v8462_v18  ;;  %v9362_v18 = vld [vmem:[#allocation44_spill] sm:$0xff]  ;;  %v4603_v42 = vrot.slane %v9376_v46, 1 }
 0x174   : > { %6857 = vmatmul.mubr.msk.bf16.gmra.mrb[12].mxu0 %vm553_vm3, %v8453_v61  ;;  %v9356_v61 = vld [vmem:[#allocation42_spill] sm:$0xff] }
 0x175   : > { %6860 = vmatprep.mubr.msk.bf16.mxu0 %vm553_vm3, %v8470_v52  ;;  %v8768_v52 = vld [vmem:[%s9205_s3 + $0x40] sm:$0xff]  }
 0x17a   : > { %6555 = vmatmul.mubr.msk.bf16.gmra.mrb[16].mxu1 %vm553_vm3, %v8488_v1  ;;  %v2087_v1 = vrot.slane %v9362_v18, 1 }
 0x17b   : > { %6558 = vmatprep.mubr.msk.bf16.mxu1 %vm553_vm3, %v8510_v8  ;;  %v9363_v8 = vld [vmem:[#allocation7_spill] sm:$0xff] }
 0x17c   : > { %6861 = vmatmul.mubr.msk.bf16.gmra.mrb[16].mxu0 %vm553_vm3, %v8515_v34  ;;  %v4591_v34 = vrot.slane %v9363_v8, 1 }
 0x17d   : > { %6864 = vmatprep.mubr.msk.bf16.mxu0 %vm553_vm3, %v8522_v13  ;;  %v9364_v13 = vld [vmem:[#allocation43_spill] sm:$0xff] }
 0x182   : > { %6559 = vmatmul.mubr.msk.bf16.gmra.mrb[20].mxu1 %vm553_vm3, %v8545_v43  ;;  %v4592_v43 = vrot.slane %v9364_v13, 1 }
 0x183   : > { %6562 = vmatprep.mubr.msk.bf16.mxu1 %vm553_vm3, %v8550_v26  ;;  %v9365_v26 = vld [vmem:[#allocation8_spill] sm:$0xff] }
 0x184   : > { %6865 = vmatmul.mubr.msk.bf16.gmra.mrb[20].mxu0 %vm553_vm3, %v8553_v3  ;;  %v4594_v3 = vrot.slane %v9365_v26, 1  ;;  %v8846_v26 = vsel %vm2074_vm5, %v2098_v7, %v2099_v12  ;;  %v9386_v7 = vld [vmem:[#allocation18_spill] sm:$0xff] }
 0x185   : > { %6868 = vmatprep.mubr.msk.bf16.mxu0 %vm553_vm3, %v8560_v0  ;;  %v4595_v0 = vrot.slane %v9366_v33, 1  ;;  %v4616_v35 = vrot.slane %v9386_v7, 1  ;;  %v9387_v12 = vld [vmem:[#allocation26_spill] sm:$0xff]  ;;  %v4628_v7 = vrot.slane %v8542_v20, 1  ;;  %v2375_v20 = vrot.slane %v8650_v44, 1 }
 0x186   : > { %v4618_v46 = vrot.slane %v9387_v12, 1 }
 0x187   : > { %v8798_v51 = vsel %vm2074_vm5, %v4594_v3, %v4595_v0  ;;  %v2101_v0 = vrot.slane %v7882_v41, 1  ;;  %v8905_v62 = vsel %vm2074_vm5, %v4615_v59, %v4616_v35  ;;  %v4627_v59 = vrot.slane %v9346_v2, 1 }
 0x188   : > { %v2374_v2 = vrot.slane %v9352_v63, 1  ;;  %v9095_v63 = vld [vmem:[%s9206_s4] ss:$0 sm:$0xff] }
 0x189   : > { %v8871_v32 = vsel %vm2074_vm5, %v2101_v0, %v2102_v9  ;;  %v9391_v0 = vld [vmem:[#allocation31_spill] sm:$0xff]  ;;  %v8954_v12 = vsel %vm2074_vm5, %v4627_v59, %v4628_v7 }
 0x18a   : > { %6563 = vmatmul.mubr.msk.bf16.gmra.mrb[24].mxu1 %vm553_vm3, %v8569_v17  ;;  %v8790_v17 = vsel %vm2074_vm5, %v2086_v27, %v2087_v1  ;;  %v9377_v27 = vld [vmem:[#allocation50_spill] sm:$0xff]  ;;  %v2116_v9 = vrot.slane %v9391_v0, 1 }
 0x18b   : > { %6566 = vmatprep.mubr.msk.bf16.mxu1 %vm553_vm3, %v1635_v31  ;;  %v4598_v31 = vrot.slane %v9370_v6, 1  ;;  %v4604_v18 = vrot.slane %v9377_v27, 1  ;;  %v9378_v1 = vld [vmem:[#allocation14_spill] sm:$0xff] }
 0x18c   : > { %6869 = vmatmul.mubr.msk.bf16.gmra.mrb[24].mxu0 %vm553_vm3, %v8572_v10  ;;  %v8793_v10 = vsel %vm2074_vm5, %v4591_v34, %v4592_v43  ;;  %v4606_v8 = vrot.slane %v9378_v1, 1  ;;  %v9379_v34 = vld [vmem:[#allocation52_spill] sm:$0xff] }
 0x18d   : > { %6872 = vmatprep.mubr.msk.bf16.mxu0 %vm553_vm3, %v4147_v56  ;;  %v4600_v56 = vrot.slane %v7825_v40, 1  ;;  %v8821_v16 = vsel %vm2074_vm5, %v4597_v45, %v4598_v31  ;;  %v9372_v40 = vld [vmem:[#allocation11_spill] sm:$0xff]  ;;  %v4607_v13 = vrot.slane %v9379_v34, 1  ;;  %v8849_v3 = vsel %vm2074_vm5, %v4603_v42, %v4604_v18  ;;  %v9383_v31 = vld [vmem:[#allocation16_spill] sm:$0xff]  ;;  %v9390_v34 = vld [vmem:[#allocation22_spill] sm:$0xff] }
 0x18e   : > { %v2095_v11 = vrot.slane %v9372_v40, 1  ;;  %v9382_v45 = vld [vmem:[#allocation23_spill] sm:$0xff]  ;;  %v4613_v41 = vrot.slane %v9383_v31, 1  ;;  %v9385_v40 = vld [vmem:[#allocation17_spill] sm:$0xff]  ;;  %v9388_v42 = vld [vmem:[#allocation20_spill] sm:$0xff] }
 0x18f   : > { %v8854_v33 = vsel %vm2074_vm5, %v4606_v8, %v4607_v13  ;;  %v4612_v6 = vrot.slane %v9382_v45, 1  ;;  %v4619_v27 = vrot.slane %v9388_v42, 1  ;;  %v2114_v13 = vrot.slane %v9390_v34, 1  ;;  %v9395_v45 = vld [vmem:[#allocation32_spill] sm:$0xff]  ;;  %v9396_v31 = vld [vmem:[#allocation25_spill] sm:$0xff] }
 0x190   : > { %v8843_v43 = vsel %vm2074_vm5, %v2095_v11, %v2096_v24  ;;  %v2108_v11 = vrot.slane %v9385_v40, 1  ;;  %v2111_v24 = vrot.slane %v8446_v36, 1  ;;  %v9389_v36 = vld [vmem:[#allocation27_spill] sm:$0xff] }
 0x191   : > { %v8882_v4 = vsel %vm2074_vm5, %v4612_v6, %v4613_v41  ;;  %v8910_v22 = vsel %vm2074_vm5, %v4618_v46, %v4619_v27  ;;  %v2113_v8 = vrot.slane %v9389_v36, 1  ;;  %v4624_v6 = vrot.slane %v9395_v45, 1 }
 0x192   : > { %6567 = vmatmul.mubr.msk.bf16.gmra.mrb[28].mxu1 %vm553_vm3, %v9356_v61  ;;  %v8902_v1 = vsel %vm2074_vm5, %v2110_v19, %v2111_v24  ;;  %v4625_v41 = vrot.slane %v9396_v31, 1  ;;  %v2119_v19 = vrot.slane %v8001_v29, 1  ;;  %v2120_v24 = vrot.slane %v8534_v60, 1 }
 0x193   : > { %6572 = vmatprep.mubr.msk.bf16.mxu1 %vm553_vm3, %v9356_v61  ;;  %v4879_v29 = vrot.slane %v9354_v37, 1  ;;  %v4880_v60 = vrot.slane %v8658_v49, 1 }
 0x194   : > { %6873 = vmatmul.mubr.msk.bf16.gmra.mrb[28].mxu0 %vm553_vm3, %v9356_v61  ;;  %v8951_v35 = vsel %vm2074_vm5, %v2119_v19, %v2120_v24 }
 0x195   : > { %6878 = vmatprep.mubr.msk.bf16.mxu0 %vm553_vm3, %v9356_v61 }
 0x19a   : > { %6573 = vmatmul.mubr.msk.bf16.vlgmr.msra.gmra.mrb[0].mxu1 %vm553_vm3, %v8585_v38 }
 0x19b   : > { %6605 = vmatpush3.bf16.msra.mxu1 %v7609_v25  ;;  %6576 = vmatprep.mubr.msk.bf16.mxu1 %vm553_vm3, %v8753_v58  ;;  %v9371_v25 = vld [vmem:[#allocation48_spill] sm:$0xff] }
 0x19c   : > { %6879 = vmatmul.mubr.msk.bf16.vlgmr.msra.gmra.mrb[0].mxu0 %vm553_vm3, %v8601_v48  ;;  %6638 = vmatprep.subr.bf16.mxu1 %v8758_v30  ;;  %v4601_v14 = vrot.slane %v9371_v25, 1  ;;  %v9384_v25 = vld [vmem:[#allocation24_spill] sm:$0xff] }
 0x19d   : > { %6911 = vmatpush3.bf16.msra.mxu0 %v7610_v54  ;;  %6882 = vmatprep.mubr.msk.bf16.mxu0 %vm553_vm3, %v8763_v50  ;;  %v8818_v54 = vsel %vm2074_vm5, %v2092_v21, %v2093_v55  ;;  %v9380_v21 = vld [vmem:[#allocation19_spill] sm:$0xff] }
 0x19e   : > { %6944 = vmatprep.subr.bf16.mxu0 %v8768_v52  ;;  %v8826_v23 = vsel %vm2074_vm5, %v4600_v56, %v4601_v14  ;;  %v4609_v39 = vrot.slane %v9380_v21, 1  ;;  %v9381_v55 = vld [vmem:[#allocation15_spill] sm:$0xff]  ;;  %v8874_v56 = vsel %vm2074_vm5, %v2104_v53, %v2105_v47  ;;  %v2107_v14 = vrot.slane %v9384_v25, 1  ;;  %v9392_v53 = vld [vmem:[#allocation21_spill] sm:$0xff]  ;;  %v9393_v21 = vld [vmem:[#allocation28_spill] sm:$0xff] }
 0x19f   : > { %v4610_v15 = vrot.slane %v9381_v55, 1  ;;  %v2117_v47 = vrot.slane %v9392_v53, 1  ;;  %v9394_v55 = vld [vmem:[#allocation53_spill] sm:$0xff]  ;;  %v8927_v25 = vsel %vm2074_vm5, %v2113_v8, %v2114_v13 }
 0x1a0   : > { %v8899_v18 = vsel %vm2074_vm5, %v2107_v14, %v2108_v11  ;;  %v8938_v11 = vsel %vm2074_vm5, %v4624_v6, %v4625_v41 }
 0x1a1   : > { %v8877_v57 = vsel %vm2074_vm5, %v4609_v39, %v4610_v15  ;;  %v4621_v39 = vrot.slane %v9393_v21, 1  ;;  %v4622_v15 = vrot.slane %v9394_v55, 1  ;;  %v8930_v14 = vsel %vm2074_vm5, %v2116_v9, %v2117_v47 }
 0x1a2   : > { %6577 = vmatmul.mubr.msk.bf16.gmra.mrb[4].mxu1 %vm553_vm3, %v8787_v5 }
 0x1a3   : > { %6580 = vmatprep.mubr.msk.bf16.mxu1 %vm553_vm3, %v8790_v17  ;;  %v8933_v40 = vsel %vm2074_vm5, %v4621_v39, %v4622_v15 }
 0x1a4   : > { %6883 = vmatmul.mubr.msk.bf16.gmra.mrb[4].mxu0 %vm553_vm3, %v8793_v10 }
 0x1a5   : > { %6886 = vmatprep.mubr.msk.bf16.mxu0 %vm553_vm3, %v8798_v51 }
 0x1aa   : > { %6581 = vmatmul.mubr.msk.bf16.gmra.mrb[8].mxu1 %vm553_vm3, %v8815_v28 }
 0x1ab   : > { %6584 = vmatprep.mubr.msk.bf16.mxu1 %vm553_vm3, %v8818_v54 }
 0x1ac   : > { %6887 = vmatmul.mubr.msk.bf16.gmra.mrb[8].mxu0 %vm553_vm3, %v8821_v16 }
 0x1ad   : > { %6890 = vmatprep.mubr.msk.bf16.mxu0 %vm553_vm3, %v8826_v23 }
 0x1b2   : > { %6585 = vmatmul.mubr.msk.bf16.gmra.mrb[12].mxu1 %vm553_vm3, %v8843_v43 }
 0x1b3   : > { %6588 = vmatprep.mubr.msk.bf16.mxu1 %vm553_vm3, %v8846_v26 }
 0x1b4   : > { %6891 = vmatmul.mubr.msk.bf16.gmra.mrb[12].mxu0 %vm553_vm3, %v8849_v3 }
 0x1b5   : > { %6894 = vmatprep.mubr.msk.bf16.mxu0 %vm553_vm3, %v8854_v33 }
 0x1ba   : > { %6589 = vmatmul.mubr.msk.bf16.gmra.mrb[16].mxu1 %vm553_vm3, %v8871_v32 }
 0x1bb   : > { %6592 = vmatprep.mubr.msk.bf16.mxu1 %vm553_vm3, %v8874_v56 }
 0x1bc   : > { %6895 = vmatmul.mubr.msk.bf16.gmra.mrb[16].mxu0 %vm553_vm3, %v8877_v57 }
 0x1bd   : > { %6898 = vmatprep.mubr.msk.bf16.mxu0 %vm553_vm3, %v8882_v4 }
 0x1c2   : > { %6593 = vmatmul.mubr.msk.bf16.gmra.mrb[20].mxu1 %vm553_vm3, %v8899_v18 }
 0x1c3   : > { %6596 = vmatprep.mubr.msk.bf16.mxu1 %vm553_vm3, %v8902_v1 }
 0x1c4   : > { %6899 = vmatmul.mubr.msk.bf16.gmra.mrb[20].mxu0 %vm553_vm3, %v8905_v62 }
 0x1c5   : > { %6902 = vmatprep.mubr.msk.bf16.mxu0 %vm553_vm3, %v8910_v22 }
 0x1ca   : > { %6597 = vmatmul.mubr.msk.bf16.gmra.mrb[24].mxu1 %vm553_vm3, %v8927_v25 }
 0x1cb   : > { %6600 = vmatprep.mubr.msk.bf16.mxu1 %vm553_vm3, %v8930_v14 }
 0x1cc   : > { %6903 = vmatmul.mubr.msk.bf16.gmra.mrb[24].mxu0 %vm553_vm3, %v8933_v40 }
 0x1cd   : > { %6906 = vmatprep.mubr.msk.bf16.mxu0 %vm553_vm3, %v8938_v11 }
 0x1d2   : > { %6601 = vmatmul.mubr.msk.bf16.gmra.mrb[28].mxu1 %vm553_vm3, %v8951_v35 }
 0x1d3   : > { %6606 = vmatprep.mubr.msk.bf16.mxu1 %vm553_vm3, %v8585_v38  ;;  %v2376_v38 = vsel %vm2074_vm5, %v2374_v2, %v2375_v20 }
 0x1d4   : > { %6907 = vmatmul.mubr.msk.bf16.gmra.mrb[28].mxu0 %vm553_vm3, %v8954_v12 }
 0x1d5   : > { %6912 = vmatprep.mubr.msk.bf16.mxu0 %vm553_vm3, %v8601_v48  ;;  %v4881_v48 = vsel %vm2074_vm5, %v4879_v29, %v4880_v60 }
 0x1da   : > { %6607 = vmatmul.mubr.msk.bf16.vlgmr.msra.gmra.mrb[0].mxu1 %vm553_vm3, %v8753_v58 }
 0x1db   : > { %6639 = vmatpush3.bf16.msra.mxu1 %v8758_v30  ;;  %6610 = vmatprep.mubr.msk.bf16.mxu1 %vm553_vm3, %v8787_v5 }
 0x1dc   : > { %6913 = vmatmul.mubr.msk.bf16.vlgmr.msra.gmra.mrb[0].mxu0 %vm553_vm3, %v8763_v50 }
 0x1dd   : > { %6945 = vmatpush3.bf16.msra.mxu0 %v8768_v52  ;;  %6916 = vmatprep.mubr.msk.bf16.mxu0 %vm553_vm3, %v8793_v10 }
 0x1e2   : > { %6611 = vmatmul.mubr.msk.bf16.gmra.mrb[4].mxu1 %vm553_vm3, %v8790_v17 }
 0x1e3   : > { %6614 = vmatprep.mubr.msk.bf16.mxu1 %vm553_vm3, %v8815_v28 }
 0x1e4   : > { %6917 = vmatmul.mubr.msk.bf16.gmra.mrb[4].mxu0 %vm553_vm3, %v8798_v51 }
 0x1e5   : > { %6920 = vmatprep.mubr.msk.bf16.mxu0 %vm553_vm3, %v8821_v16 }
 0x1ea   : > { %6615 = vmatmul.mubr.msk.bf16.gmra.mrb[8].mxu1 %vm553_vm3, %v8818_v54 }
 0x1eb   : > { %6618 = vmatprep.mubr.msk.bf16.mxu1 %vm553_vm3, %v8843_v43 }
 0x1ec   : > { %6921 = vmatmul.mubr.msk.bf16.gmra.mrb[8].mxu0 %vm553_vm3, %v8826_v23 }
 0x1ed   : > { %6924 = vmatprep.mubr.msk.bf16.mxu0 %vm553_vm3, %v8849_v3 }
 0x1f2   : > { %6619 = vmatmul.mubr.msk.bf16.gmra.mrb[12].mxu1 %vm553_vm3, %v8846_v26 }
 0x1f3   : > { %6622 = vmatprep.mubr.msk.bf16.mxu1 %vm553_vm3, %v8871_v32 }
 0x1f4   : > { %6925 = vmatmul.mubr.msk.bf16.gmra.mrb[12].mxu0 %vm553_vm3, %v8854_v33 }
 0x1f5   : > { %6928 = vmatprep.mubr.msk.bf16.mxu0 %vm553_vm3, %v8877_v57 }
 0x1fa   : > { %6623 = vmatmul.mubr.msk.bf16.gmra.mrb[16].mxu1 %vm553_vm3, %v8874_v56 }
 0x1fb   : > { %6626 = vmatprep.mubr.msk.bf16.mxu1 %vm553_vm3, %v8899_v18 }
 0x1fc   : > { %6929 = vmatmul.mubr.msk.bf16.gmra.mrb[16].mxu0 %vm553_vm3, %v8882_v4 }
 0x1fd   : > { %6932 = vmatprep.mubr.msk.bf16.mxu0 %vm553_vm3, %v8905_v62 }
 0x202   : > { %6627 = vmatmul.mubr.msk.bf16.gmra.mrb[20].mxu1 %vm553_vm3, %v8902_v1 }
 0x203   : > { %6630 = vmatprep.mubr.msk.bf16.mxu1 %vm553_vm3, %v8927_v25 }
 0x204   : > { %6933 = vmatmul.mubr.msk.bf16.gmra.mrb[20].mxu0 %vm553_vm3, %v8910_v22 }
 0x205   : > { %6936 = vmatprep.mubr.msk.bf16.mxu0 %vm553_vm3, %v8933_v40 }
 0x20a   : > { %6631 = vmatmul.mubr.msk.bf16.gmra.mrb[24].mxu1 %vm553_vm3, %v8930_v14 }
 0x20b   : > { %6634 = vmatprep.mubr.msk.bf16.mxu1 %vm553_vm3, %v8951_v35 }
 0x20c   : > { %6937 = vmatmul.mubr.msk.bf16.gmra.mrb[24].mxu0 %vm553_vm3, %v8938_v11 }
 0x20d   : > { %6940 = vmatprep.mubr.msk.bf16.mxu0 %vm553_vm3, %v8954_v12 }
 0x212   : > { %6635 = vmatmul.mubr.msk.bf16.gmra.mrb[28].mxu1 %vm553_vm3, %v2376_v38 }
 0x213   : > { %6640 = vmatprep.mubr.msk.bf16.mxu1 %vm553_vm3, %v8753_v58 }
 0x214   : > { %6941 = vmatmul.mubr.msk.bf16.gmra.mrb[28].mxu0 %vm553_vm3, %v4881_v48 }
 0x215   : > { %6946 = vmatprep.mubr.msk.bf16.mxu0 %vm553_vm3, %v8763_v50 }
 0x21a   : > { %6641 = vmatmul.mubr.msk.bf16.vlgmr.msra.gmra.mrb[0].mxu1 %vm553_vm3, %v8787_v5 }
 0x21b   : > { %6644 = vmatprep.mubr.msk.bf16.mxu1 %vm553_vm3, %v8790_v17 }
 0x21c   : > { %6947 = vmatmul.mubr.msk.bf16.vlgmr.msra.gmra.mrb[0].mxu0 %vm553_vm3, %v8793_v10 }
 0x21d   : > { %6950 = vmatprep.mubr.msk.bf16.mxu0 %vm553_vm3, %v8798_v51 }
 0x222   : > { %6645 = vmatmul.mubr.msk.bf16.gmra.mrb[4].mxu1 %vm553_vm3, %v8815_v28 }
 0x223   : > { %6648 = vmatprep.mubr.msk.bf16.mxu1 %vm553_vm3, %v8818_v54 }
 0x224   : > { %6951 = vmatmul.mubr.msk.bf16.gmra.mrb[4].mxu0 %vm553_vm3, %v8821_v16 }
 0x225   : > { %6954 = vmatprep.mubr.msk.bf16.mxu0 %vm553_vm3, %v8826_v23 }
 0x22a   : > { %6649 = vmatmul.mubr.msk.bf16.gmra.mrb[8].mxu1 %vm553_vm3, %v8843_v43 }
 0x22b   : > { %6652 = vmatprep.mubr.msk.bf16.mxu1 %vm553_vm3, %v8846_v26 }
 0x22c   : > { %6955 = vmatmul.mubr.msk.bf16.gmra.mrb[8].mxu0 %vm553_vm3, %v8849_v3 }
 0x22d   : > { %6958 = vmatprep.mubr.msk.bf16.mxu0 %vm553_vm3, %v8854_v33 }
 0x232   : > { %6653 = vmatmul.mubr.msk.bf16.gmra.mrb[12].mxu1 %vm553_vm3, %v8871_v32 }
 0x233   : > { %6656 = vmatprep.mubr.msk.bf16.mxu1 %vm553_vm3, %v8874_v56 }
 0x234   : > { %6959 = vmatmul.mubr.msk.bf16.gmra.mrb[12].mxu0 %vm553_vm3, %v8877_v57 }
 0x235   : > { %6962 = vmatprep.mubr.msk.bf16.mxu0 %vm553_vm3, %v8882_v4 }
 0x23a   : > { %6657 = vmatmul.mubr.msk.bf16.gmra.mrb[16].mxu1 %vm553_vm3, %v8899_v18 }
 0x23b   : > { %6660 = vmatprep.mubr.msk.bf16.mxu1 %vm553_vm3, %v8902_v1 }
 0x23c   : > { %6963 = vmatmul.mubr.msk.bf16.gmra.mrb[16].mxu0 %vm553_vm3, %v8905_v62 }
 0x23d   : > { %6966 = vmatprep.mubr.msk.bf16.mxu0 %vm553_vm3, %v8910_v22 }
 0x242   : > { %6661 = vmatmul.mubr.msk.bf16.gmra.mrb[20].mxu1 %vm553_vm3, %v8927_v25 }
 0x243   : > { %6664 = vmatprep.mubr.msk.bf16.mxu1 %vm553_vm3, %v8930_v14 }
 0x244   : > { %6967 = vmatmul.mubr.msk.bf16.gmra.mrb[20].mxu0 %vm553_vm3, %v8933_v40 }
 0x245   : > { %6970 = vmatprep.mubr.msk.bf16.mxu0 %vm553_vm3, %v8938_v11 }
 0x24a   : > { %6665 = vmatmul.mubr.msk.bf16.gmra.mrb[24].mxu1 %vm553_vm3, %v8951_v35 }
 0x24b   : > { %6668 = vmatprep.mubr.msk.bf16.mxu1 %vm553_vm3, %v2376_v38 }
 0x24c   : > { %6971 = vmatmul.mubr.msk.bf16.gmra.mrb[24].mxu0 %vm553_vm3, %v8954_v12 }
 0x24d   : > { %6974 = vmatprep.mubr.msk.bf16.mxu0 %vm553_vm3, %v4881_v48 }
 0x252   : > { %6669 = vmatmul.mubr.msk.bf16.gmra.mrb[28].mxu1 %vm553_vm3, %v9356_v61 }
 0x254   : > { %6975 = vmatmul.mubr.msk.bf16.gmra.mrb[28].mxu0 %vm553_vm3, %v9356_v61 }
 0x2ed   : > { %v6642_v44 = vpop.f32.mrb[0].mxu1 }
 0x2ee   : > { %v6978_v37 = vadd.f32 %v6642_v44, %v9095_v63  ;;  %v2625_v49 = vpop.f32.mrb[1].mxu1 }
 0x2ef   : > { %v6948_v58 = vpop.f32.mrb[0].mxu0  ;;  %v6980_v30 = vadd.f32 %v9095_v63, %v2625_v49  ;;  %v6643_v50 = vpop.f32.mrb[2].mxu1 }
 0x2f0   : > { %v6979_v52 = vadd.f32 %v6978_v37, %v6948_v58  ;;  %v5130_v5 = vpop.f32.mrb[1].mxu0  ;;  %v6982_v17 = vadd.f32 %v6643_v50, %v9095_v63  ;;  %v2628_v10 = vpop.f32.mrb[3].mxu1 }
 0x2f1   : > { %v6981_v61 = vadd.f32 %v6980_v30, %v5130_v5  ;;  %v6949_v51 = vpop.f32.mrb[2].mxu0  ;;  %v6984_v28 = vadd.f32 %v9095_v63, %v2628_v10 }
 0x2f2   : > { %vm5291_vm6 = vcmp.gt.f32.partialorder %v6979_v52, 0.0  ;;  %v5323_v54 = vmul.f32 0.2, %v6979_v52  ;;  %v6983_v16 = vadd.f32 %v6982_v17, %v6949_v51  ;;  %v5133_v23 = vpop.f32.mrb[3].mxu0 }
 0x2f3   : > { %vm5289_vm7 = vcmp.gt.f32.partialorder %v6981_v61, 0.0  ;;  %v5321_v43 = vmul.f32 0.2, %v6981_v61  ;;  %v6985_v26 = vadd.f32 %v6984_v28, %v5133_v23 }
 0x2f4   : > { %v5355_v3 = vsel %vm5291_vm6, %v6979_v52, %v5323_v54  ;;  %vm5292_vm9 = vcmp.gt.f32.partialorder %v6983_v16, 0.0  ;;  %v5324_v33 = vmul.f32 0.2, %v6983_v16 }
 0x2f5   : > { %v6030_v32 = vpack.c.bf16 %v5355_v3, %v5355_v3  ;;  %v5353_v56 = vsel %vm5289_vm7, %v6981_v61, %v5321_v43  ;;  %vm5290_vm10 = vcmp.gt.f32.partialorder %v6985_v26, 0.0  ;;  %v5322_v57 = vmul.f32 0.2, %v6985_v26  ;;  %v6646_v4 = vpop.f32.mrb[4].mxu1 }
 0x2f6   : > { %v6028_v46 = vpack.c.bf16 %v5353_v56, %v5353_v56  ;;  %v5356_v42 = vsel %vm5292_vm9, %v6983_v16, %v5324_v33  ;;  %v6986_v27 = vadd.f32 %v6646_v4, %v9095_v63  ;;  %v2641_v18 = vpop.f32.mrb[5].mxu1 }
 0x2f7   : > { %5516 = vst.msk [vmem:[%s9105_s20 + $0x8] sm:$0xf] %vm5513_vm8, %v6030_v32  ;;  %v6031_v1 = vpack.c.bf16 %v5356_v42, %v5356_v42  ;;  %v5354_v62 = vsel %vm5290_vm10, %v6985_v26, %v5322_v57  ;;  %v6952_v22 = vpop.f32.mrb[4].mxu0  ;;  %v6988_v36 = vadd.f32 %v9095_v63, %v2641_v18  ;;  %v6647_v8 = vpop.f32.mrb[6].mxu1 }
 0x2f8   : > { %5514 = vst.msk [vmem:[%s9105_s20] sm:$0xf] %vm5513_vm8, %v6028_v46  ;;  %v6029_v34 = vpack.c.bf16 %v5354_v62, %v5354_v62  ;;  %v6987_v13 = vadd.f32 %v6986_v27, %v6952_v22  ;;  %v5146_v0 = vpop.f32.mrb[5].mxu0  ;;  %v6990_v9 = vadd.f32 %v6647_v8, %v9095_v63  ;;  %v2644_v53 = vpop.f32.mrb[7].mxu1 }
 0x2f9   : > { %5517 = vst.msk [vmem:[%s9105_s20 + $0xc] sm:$0xf] %vm5513_vm8, %v6031_v1  ;;  %v6989_v47 = vadd.f32 %v6988_v36, %v5146_v0  ;;  %v6953_v21 = vpop.f32.mrb[6].mxu0  ;;  %v6992_v39 = vadd.f32 %v9095_v63, %v2644_v53 }
 0x2fa   : > { %5515 = vst.msk [vmem:[%s9105_s20 + $0x4] sm:$0xf] %vm5513_vm8, %v6029_v34  ;;  %vm5295_vm11 = vcmp.gt.f32.partialorder %v6987_v13, 0.0  ;;  %v5327_v55 = vmul.f32 0.2, %v6987_v13  ;;  %v6991_v15 = vadd.f32 %v6990_v9, %v6953_v21  ;;  %v5149_v45 = vpop.f32.mrb[7].mxu0 }
 0x2fb   : > { %vm5293_vm12 = vcmp.gt.f32.partialorder %v6989_v47, 0.0  ;;  %v5325_v6 = vmul.f32 0.2, %v6989_v47  ;;  %v6993_v31 = vadd.f32 %v6992_v39, %v5149_v45 }
 0x2fc   : > { %v5359_v41 = vsel %vm5295_vm11, %v6987_v13, %v5327_v55  ;;  %vm5296_vm13 = vcmp.gt.f32.partialorder %v6991_v15, 0.0  ;;  %v5328_v25 = vmul.f32 0.2, %v6991_v15 }
 0x2fd   : > { %v6034_v14 = vpack.c.bf16 %v5359_v41, %v5359_v41  ;;  %v5357_v40 = vsel %vm5293_vm12, %v6989_v47, %v5325_v6  ;;  %vm5294_vm14 = vcmp.gt.f32.partialorder %v6993_v31, 0.0  ;;  %v5326_v11 = vmul.f32 0.2, %v6993_v31  ;;  %v6650_v19 = vpop.f32.mrb[8].mxu1 }
 0x2fe   : > { %v6032_v24 = vpack.c.bf16 %v5357_v40, %v5357_v40  ;;  %v5360_v59 = vsel %vm5296_vm13, %v6991_v15, %v5328_v25  ;;  %v6994_v7 = vadd.f32 %v6650_v19, %v9095_v63  ;;  %v2657_v35 = vpop.f32.mrb[9].mxu1 }
 0x2ff   : > { %5520 = vst.msk [vmem:[%s9105_s20 + $0x18] sm:$0xf] %vm5513_vm8, %v6034_v14  ;;  %v6035_v12 = vpack.c.bf16 %v5360_v59, %v5360_v59  ;;  %v5358_v2 = vsel %vm5294_vm14, %v6993_v31, %v5326_v11  ;;  %v6956_v20 = vpop.f32.mrb[8].mxu0  ;;  %v6996_v29 = vadd.f32 %v9095_v63, %v2657_v35  ;;  %v6651_v60 = vpop.f32.mrb[10].mxu1 }
 0x300   : > { %5518 = vst.msk [vmem:[%s9105_s20 + $0x10] sm:$0xf] %vm5513_vm8, %v6032_v24  ;;  %v6033_v38 = vpack.c.bf16 %v5358_v2, %v5358_v2  ;;  %v6995_v48 = vadd.f32 %v6994_v7, %v6956_v20  ;;  %v5162_v44 = vpop.f32.mrb[9].mxu0  ;;  %v6998_v37 = vadd.f32 %v6651_v60, %v9095_v63  ;;  %v2660_v49 = vpop.f32.mrb[11].mxu1 }
 0x301   : > { %5521 = vst.msk [vmem:[%s9105_s20 + $0x1c] sm:$0xf] %vm5513_vm8, %v6035_v12  ;;  %v6997_v58 = vadd.f32 %v6996_v29, %v5162_v44  ;;  %v6957_v30 = vpop.f32.mrb[10].mxu0  ;;  %v7000_v50 = vadd.f32 %v9095_v63, %v2660_v49 }
 0x302   : > { %5519 = vst.msk [vmem:[%s9105_s20 + $0x14] sm:$0xf] %vm5513_vm8, %v6033_v38  ;;  %vm5299_vm15 = vcmp.gt.f32.partialorder %v6995_v48, 0.0  ;;  %v5331_v52 = vmul.f32 0.2, %v6995_v48  ;;  %v6999_v5 = vadd.f32 %v6998_v37, %v6957_v30  ;;  %v5165_v17 = vpop.f32.mrb[11].mxu0 }
 0x303   : > { %vm5297_vm0 = vcmp.gt.f32.partialorder %v6997_v58, 0.0  ;;  %v5329_v10 = vmul.f32 0.2, %v6997_v58  ;;  %v7001_v61 = vadd.f32 %v7000_v50, %v5165_v17 }
 0x304   : > { %v5363_v51 = vsel %vm5299_vm15, %v6995_v48, %v5331_v52  ;;  %vm5300_vm1 = vcmp.gt.f32.partialorder %v6999_v5, 0.0  ;;  %v5332_v28 = vmul.f32 0.2, %v6999_v5 }
 0x305   : > { %v6038_v54 = vpack.c.bf16 %v5363_v51, %v5363_v51  ;;  %v5361_v16 = vsel %vm5297_vm0, %v6997_v58, %v5329_v10  ;;  %vm5298_vm2 = vcmp.gt.f32.partialorder %v7001_v61, 0.0  ;;  %v5330_v23 = vmul.f32 0.2, %v7001_v61  ;;  %v6654_v43 = vpop.f32.mrb[12].mxu1 }
 0x306   : > { %v6036_v26 = vpack.c.bf16 %v5361_v16, %v5361_v16  ;;  %v5364_v3 = vsel %vm5300_vm1, %v6999_v5, %v5332_v28  ;;  %v7002_v33 = vadd.f32 %v6654_v43, %v9095_v63  ;;  %v2673_v32 = vpop.f32.mrb[13].mxu1 }
 0x307   : > { %5524 = vst.msk [vmem:[%s9105_s20 + $0x28] sm:$0xf] %vm5513_vm8, %v6038_v54  ;;  %v6039_v56 = vpack.c.bf16 %v5364_v3, %v5364_v3  ;;  %v5362_v57 = vsel %vm5298_vm2, %v7001_v61, %v5330_v23  ;;  %v6960_v4 = vpop.f32.mrb[12].mxu0  ;;  %v7004_v46 = vadd.f32 %v9095_v63, %v2673_v32  ;;  %v6655_v42 = vpop.f32.mrb[14].mxu1 }
 0x308   : > { %5522 = vst.msk [vmem:[%s9105_s20 + $0x20] sm:$0xf] %vm5513_vm8, %v6036_v26  ;;  %v6037_v27 = vpack.c.bf16 %v5362_v57, %v5362_v57  ;;  %v7003_v18 = vadd.f32 %v7002_v33, %v6960_v4  ;;  %v5178_v1 = vpop.f32.mrb[13].mxu0  ;;  %v7006_v62 = vadd.f32 %v6655_v42, %v9095_v63  ;;  %v2676_v22 = vpop.f32.mrb[15].mxu1 }
 0x309   : > { %5525 = vst.msk [vmem:[%s9105_s20 + $0x2c] sm:$0xf] %vm5513_vm8, %v6039_v56  ;;  %v7005_v36 = vadd.f32 %v7004_v46, %v5178_v1  ;;  %v6961_v8 = vpop.f32.mrb[14].mxu0  ;;  %v7008_v34 = vadd.f32 %v9095_v63, %v2676_v22 }
 0x30a   : > { %5523 = vst.msk [vmem:[%s9105_s20 + $0x24] sm:$0xf] %vm5513_vm8, %v6037_v27  ;;  %vm5303_vm3 = vcmp.gt.f32.partialorder %v7003_v18, 0.0  ;;  %v5335_v13 = vmul.f32 0.2, %v7003_v18  ;;  %v7007_v0 = vadd.f32 %v7006_v62, %v6961_v8  ;;  %v5181_v9 = vpop.f32.mrb[15].mxu0 }
 0x30b   : > { %vm5301_vm4 = vcmp.gt.f32.partialorder %v7005_v36, 0.0  ;;  %v5333_v53 = vmul.f32 0.2, %v7005_v36  ;;  %v7009_v47 = vadd.f32 %v7008_v34, %v5181_v9 }
 0x30c   : > { %v5367_v21 = vsel %vm5303_vm3, %v7003_v18, %v5335_v13  ;;  %vm5304_vm5 = vcmp.gt.f32.partialorder %v7007_v0, 0.0  ;;  %v5336_v39 = vmul.f32 0.2, %v7007_v0 }
 0x30d   : > { %v6042_v55 = vpack.c.bf16 %v5367_v21, %v5367_v21  ;;  %v5365_v15 = vsel %vm5301_vm4, %v7005_v36, %v5333_v53  ;;  %vm5302_vm6 = vcmp.gt.f32.partialorder %v7009_v47, 0.0  ;;  %v5334_v45 = vmul.f32 0.2, %v7009_v47  ;;  %v6658_v6 = vpop.f32.mrb[16].mxu1 }
 0x30e   : > { %v6040_v31 = vpack.c.bf16 %v5365_v15, %v5365_v15  ;;  %v5368_v41 = vsel %vm5304_vm5, %v7007_v0, %v5336_v39  ;;  %v7010_v25 = vadd.f32 %v6658_v6, %v9095_v63  ;;  %v2689_v14 = vpop.f32.mrb[17].mxu1 }
 0x30f   : > { %5528 = vst.msk [vmem:[%s9105_s20 + $0x38] sm:$0xf] %vm5513_vm8, %v6042_v55  ;;  %v6043_v40 = vpack.c.bf16 %v5368_v41, %v5368_v41  ;;  %v5366_v11 = vsel %vm5302_vm6, %v7009_v47, %v5334_v45  ;;  %v6964_v19 = vpop.f32.mrb[16].mxu0  ;;  %v7012_v24 = vadd.f32 %v9095_v63, %v2689_v14  ;;  %v6659_v59 = vpop.f32.mrb[18].mxu1 }
 0x310   : > { %5526 = vst.msk [vmem:[%s9105_s20 + $0x30] sm:$0xf] %vm5513_vm8, %v6040_v31  ;;  %v6041_v7 = vpack.c.bf16 %v5366_v11, %v5366_v11  ;;  %v7011_v35 = vadd.f32 %v7010_v25, %v6964_v19  ;;  %v5194_v12 = vpop.f32.mrb[17].mxu0  ;;  %v7014_v2 = vadd.f32 %v6659_v59, %v9095_v63  ;;  %v2692_v20 = vpop.f32.mrb[19].mxu1 }
 0x311   : > { %5529 = vst.msk [vmem:[%s9105_s20 + $0x3c] sm:$0xf] %vm5513_vm8, %v6043_v40  ;;  %v7013_v29 = vadd.f32 %v7012_v24, %v5194_v12  ;;  %v6965_v60 = vpop.f32.mrb[18].mxu0  ;;  %v7016_v38 = vadd.f32 %v9095_v63, %v2692_v20 }
 0x312   : > { %5527 = vst.msk [vmem:[%s9105_s20 + $0x34] sm:$0xf] %vm5513_vm8, %v6041_v7  ;;  %vm5307_vm7 = vcmp.gt.f32.partialorder %v7011_v35, 0.0  ;;  %v5339_v48 = vmul.f32 0.2, %v7011_v35  ;;  %v7015_v44 = vadd.f32 %v7014_v2, %v6965_v60  ;;  %v5197_v37 = vpop.f32.mrb[19].mxu0 }
 0x313   : > { %vm5305_vm9 = vcmp.gt.f32.partialorder %v7013_v29, 0.0  ;;  %v5337_v49 = vmul.f32 0.2, %v7013_v29  ;;  %v7017_v58 = vadd.f32 %v7016_v38, %v5197_v37 }
 0x314   : > { %v5371_v30 = vsel %vm5307_vm7, %v7011_v35, %v5339_v48  ;;  %vm5308_vm10 = vcmp.gt.f32.partialorder %v7015_v44, 0.0  ;;  %v5340_v50 = vmul.f32 0.2, %v7015_v44 }
 0x315   : > { %v6046_v52 = vpack.c.bf16 %v5371_v30, %v5371_v30  ;;  %v5369_v5 = vsel %vm5305_vm9, %v7013_v29, %v5337_v49  ;;  %vm5306_vm11 = vcmp.gt.f32.partialorder %v7017_v58, 0.0  ;;  %v5338_v17 = vmul.f32 0.2, %v7017_v58  ;;  %v6662_v10 = vpop.f32.mrb[20].mxu1 }
 0x316   : > { %v6044_v61 = vpack.c.bf16 %v5369_v5, %v5369_v5  ;;  %v5372_v51 = vsel %vm5308_vm10, %v7015_v44, %v5340_v50  ;;  %v7018_v28 = vadd.f32 %v6662_v10, %v9095_v63  ;;  %v2705_v54 = vpop.f32.mrb[21].mxu1 }
 0x317   : > { %5532 = vst.msk [vmem:[%s9105_s20 + $0x48] sm:$0xf] %vm5513_vm8, %v6046_v52  ;;  %v6047_v16 = vpack.c.bf16 %v5372_v51, %v5372_v51  ;;  %v5370_v23 = vsel %vm5306_vm11, %v7017_v58, %v5338_v17  ;;  %v6968_v43 = vpop.f32.mrb[20].mxu0  ;;  %v7020_v26 = vadd.f32 %v9095_v63, %v2705_v54  ;;  %v6663_v3 = vpop.f32.mrb[22].mxu1 }
 0x318   : > { %5530 = vst.msk [vmem:[%s9105_s20 + $0x40] sm:$0xf] %vm5513_vm8, %v6044_v61  ;;  %v6045_v33 = vpack.c.bf16 %v5370_v23, %v5370_v23  ;;  %v7019_v32 = vadd.f32 %v7018_v28, %v6968_v43  ;;  %v5210_v56 = vpop.f32.mrb[21].mxu0  ;;  %v7022_v57 = vadd.f32 %v6663_v3, %v9095_v63  ;;  %v2708_v4 = vpop.f32.mrb[23].mxu1 }
 0x319   : > { %5533 = vst.msk [vmem:[%s9105_s20 + $0x4c] sm:$0xf] %vm5513_vm8, %v6047_v16  ;;  %v7021_v46 = vadd.f32 %v7020_v26, %v5210_v56  ;;  %v6969_v42 = vpop.f32.mrb[22].mxu0  ;;  %v7024_v27 = vadd.f32 %v9095_v63, %v2708_v4 }
 0x31a   : > { %5531 = vst.msk [vmem:[%s9105_s20 + $0x44] sm:$0xf] %vm5513_vm8, %v6045_v33  ;;  %vm5311_vm12 = vcmp.gt.f32.partialorder %v7019_v32, 0.0  ;;  %v5343_v18 = vmul.f32 0.2, %v7019_v32  ;;  %v7023_v1 = vadd.f32 %v7022_v57, %v6969_v42  ;;  %v5213_v62 = vpop.f32.mrb[23].mxu0 }
 0x31b   : > { %vm5309_vm13 = vcmp.gt.f32.partialorder %v7021_v46, 0.0  ;;  %v5341_v22 = vmul.f32 0.2, %v7021_v46  ;;  %v7025_v36 = vadd.f32 %v7024_v27, %v5213_v62 }
 0x31c   : > { %v5375_v8 = vsel %vm5311_vm12, %v7019_v32, %v5343_v18  ;;  %vm5312_vm14 = vcmp.gt.f32.partialorder %v7023_v1, 0.0  ;;  %v5344_v34 = vmul.f32 0.2, %v7023_v1 }
 0x31d   : > { %v6050_v13 = vpack.c.bf16 %v5375_v8, %v5375_v8  ;;  %v5373_v0 = vsel %vm5309_vm13, %v7021_v46, %v5341_v22  ;;  %vm5310_vm15 = vcmp.gt.f32.partialorder %v7025_v36, 0.0  ;;  %v5342_v9 = vmul.f32 0.2, %v7025_v36  ;;  %v6666_v53 = vpop.f32.mrb[24].mxu1 }
 0x31e   : > { %v6048_v47 = vpack.c.bf16 %v5373_v0, %v5373_v0  ;;  %v5376_v21 = vsel %vm5312_vm14, %v7023_v1, %v5344_v34  ;;  %v7026_v39 = vadd.f32 %v6666_v53, %v9095_v63  ;;  %v2721_v55 = vpop.f32.mrb[25].mxu1 }
 0x31f   : > { %5536 = vst.msk [vmem:[%s9105_s20 + $0x58] sm:$0xf] %vm5513_vm8, %v6050_v13  ;;  %v6051_v15 = vpack.c.bf16 %v5376_v21, %v5376_v21  ;;  %v5374_v45 = vsel %vm5310_vm15, %v7025_v36, %v5342_v9  ;;  %v6972_v6 = vpop.f32.mrb[24].mxu0  ;;  %v7028_v31 = vadd.f32 %v9095_v63, %v2721_v55  ;;  %v6667_v41 = vpop.f32.mrb[26].mxu1 }
 0x320   : > { %5534 = vst.msk [vmem:[%s9105_s20 + $0x50] sm:$0xf] %vm5513_vm8, %v6048_v47  ;;  %v6049_v25 = vpack.c.bf16 %v5374_v45, %v5374_v45  ;;  %v7027_v14 = vadd.f32 %v7026_v39, %v6972_v6  ;;  %v5226_v40 = vpop.f32.mrb[25].mxu0  ;;  %v7030_v11 = vadd.f32 %v6667_v41, %v9095_v63  ;;  %v2724_v19 = vpop.f32.mrb[27].mxu1 }
 0x321   : > { %5537 = vst.msk [vmem:[%s9105_s20 + $0x5c] sm:$0xf] %vm5513_vm8, %v6051_v15  ;;  %v7029_v24 = vadd.f32 %v7028_v31, %v5226_v40  ;;  %v6973_v59 = vpop.f32.mrb[26].mxu0  ;;  %v7032_v7 = vadd.f32 %v9095_v63, %v2724_v19 }
 0x322   : > { %5535 = vst.msk [vmem:[%s9105_s20 + $0x54] sm:$0xf] %vm5513_vm8, %v6049_v25  ;;  %vm5315_vm0 = vcmp.gt.f32.partialorder %v7027_v14, 0.0  ;;  %v5347_v35 = vmul.f32 0.2, %v7027_v14  ;;  %v7031_v12 = vadd.f32 %v7030_v11, %v6973_v59  ;;  %v5229_v2 = vpop.f32.mrb[27].mxu0 }
 0x323   : > { %vm5313_vm1 = vcmp.gt.f32.partialorder %v7029_v24, 0.0  ;;  %v5345_v20 = vmul.f32 0.2, %v7029_v24  ;;  %v7033_v29 = vadd.f32 %v7032_v7, %v5229_v2 }
 0x324   : > { %v5379_v60 = vsel %vm5315_vm0, %v7027_v14, %v5347_v35  ;;  %vm5316_vm2 = vcmp.gt.f32.partialorder %v7031_v12, 0.0  ;;  %v5348_v38 = vmul.f32 0.2, %v7031_v12 }
 0x325   : > { %v6054_v48 = vpack.c.bf16 %v5379_v60, %v5379_v60  ;;  %v5377_v44 = vsel %vm5313_vm1, %v7029_v24, %v5345_v20  ;;  %vm5314_vm3 = vcmp.gt.f32.partialorder %v7033_v29, 0.0  ;;  %v5346_v37 = vmul.f32 0.2, %v7033_v29  ;;  %v6670_v49 = vpop.f32.mrb[28].mxu1 }
 0x326   : > { %v6052_v58 = vpack.c.bf16 %v5377_v44, %v5377_v44  ;;  %v5380_v30 = vsel %vm5316_vm2, %v7031_v12, %v5348_v38  ;;  %v7034_v50 = vadd.f32 %v6670_v49, %v9095_v63  ;;  %v2737_v52 = vpop.f32.mrb[29].mxu1 }
 0x327   : > { %5540 = vst.msk [vmem:[%s9105_s20 + $0x68] sm:$0xf] %vm5513_vm8, %v6054_v48  ;;  %v6055_v5 = vpack.c.bf16 %v5380_v30, %v5380_v30  ;;  %v5378_v17 = vsel %vm5314_vm3, %v7033_v29, %v5346_v37  ;;  %v6976_v10 = vpop.f32.mrb[28].mxu0  ;;  %v7036_v61 = vadd.f32 %v9095_v63, %v2737_v52  ;;  %v6671_v51 = vpop.f32.mrb[30].mxu1 }
 0x328   : > { %5538 = vst.msk [vmem:[%s9105_s20 + $0x60] sm:$0xf] %vm5513_vm8, %v6052_v58  ;;  %v6053_v28 = vpack.c.bf16 %v5378_v17, %v5378_v17  ;;  %v7035_v54 = vadd.f32 %v7034_v50, %v6976_v10  ;;  %v5242_v16 = vpop.f32.mrb[29].mxu0  ;;  %v7038_v23 = vadd.f32 %v6671_v51, %v9095_v63  ;;  %v2740_v43 = vpop.f32.mrb[31].mxu1 }
 0x329   : > { %5541 = vst.msk [vmem:[%s9105_s20 + $0x6c] sm:$0xf] %vm5513_vm8, %v6055_v5  ;;  %v7037_v26 = vadd.f32 %v7036_v61, %v5242_v16  ;;  %v6977_v3 = vpop.f32.mrb[30].mxu0  ;;  %v7040_v33 = vadd.f32 %v9095_v63, %v2740_v43 }
 0x32a   : > { %5539 = vst.msk [vmem:[%s9105_s20 + $0x64] sm:$0xf] %vm5513_vm8, %v6053_v28  ;;  %vm5319_vm4 = vcmp.gt.f32.partialorder %v7035_v54, 0.0  ;;  %v5351_v32 = vmul.f32 0.2, %v7035_v54  ;;  %v7039_v56 = vadd.f32 %v7038_v23, %v6977_v3  ;;  %v5245_v57 = vpop.f32.mrb[31].mxu0 }
 0x32b   : > { %vm5317_vm5 = vcmp.gt.f32.partialorder %v7037_v26, 0.0  ;;  %v5349_v4 = vmul.f32 0.2, %v7037_v26  ;;  %v7041_v46 = vadd.f32 %v7040_v33, %v5245_v57 }
 0x32c   : > { %v5383_v42 = vsel %vm5319_vm4, %v7035_v54, %v5351_v32  ;;  %vm5320_vm6 = vcmp.gt.f32.partialorder %v7039_v56, 0.0  ;;  %v5352_v27 = vmul.f32 0.2, %v7039_v56 }
 0x32d   : > { %v6058_v18 = vpack.c.bf16 %v5383_v42, %v5383_v42  ;;  %v5381_v1 = vsel %vm5317_vm5, %v7037_v26, %v5349_v4  ;;  %vm5318_vm7 = vcmp.gt.f32.partialorder %v7041_v46, 0.0  ;;  %v5350_v63 = vmul.f32 0.2, %v7041_v46 }
 0x32e   : > { %v6056_v62 = vpack.c.bf16 %v5381_v1, %v5381_v1  ;;  %v5384_v22 = vsel %vm5320_vm6, %v7039_v56, %v5352_v27 }
 0x32f   : > { %5544 = vst.msk [vmem:[%s9105_s20 + $0x78] sm:$0xf] %vm5513_vm8, %v6058_v18  ;;  %v6059_v36 = vpack.c.bf16 %v5384_v22, %v5384_v22  ;;  %v5382_v8 = vsel %vm5318_vm7, %v7041_v46, %v5350_v63 }
 0x330   : > { %5542 = vst.msk [vmem:[%s9105_s20 + $0x70] sm:$0xf] %vm5513_vm8, %v6056_v62  ;;  %v6057_v34 = vpack.c.bf16 %v5382_v8, %v5382_v8 }
 0x331   : > { %5545 = vst.msk [vmem:[%s9105_s20 + $0x7c] sm:$0xf] %vm5513_vm8, %v6059_v36 }
 0x332   : > { %5543 = vst.msk [vmem:[%s9105_s20 + $0x74] sm:$0xf] %vm5513_vm8, %v6057_v34 }
 0x333 PF: > { %s15_s18 = sadd.s32 1, %s7619_s18  }
 0x334   : > { %p12_p4 = scmp.ge.s32.totalorder %s15_s18, 4  }
 0x336   :  { %14 = sbr.rel (!%p12_p4) target bundleno = 1 (0x1), region = 89 }

</bundles_post_ra>
